<compile_context>
chip_gen: v7x
topology: tpu7x:2x2x1
jax: 0.10.0
libtpu: 0.0.40
codegen_flags: <defaults>
</compile_context>

<pallas_src>
import functools

import jax
import jax.numpy as jnp
import numpy as np
from jax.experimental import pallas as pl
from jax.experimental.pallas import tpu as pltpu


# ------------------------------- kernel --------------------------------

def _neural_stat_kernel(x_aug_ref, eps_ref, lstm_ref, mlp_ref, out_ref, xg_ref,
                        *, T, H, C, Z, layout):
    f32 = jnp.float32
    B = eps_ref.shape[0]

    # ---- Encoder: fused bidirectional single-layer LSTM ----
    # One K=8 MXU dot produces the input+bias gate contributions for BOTH directions
    # (x_aug columns are [x_fwd, 1, x_rev, 1, 0, 0, 0, 0]); candidate-gate columns of the
    # packed weights are pre-scaled by 2 so tanh(g) = 2*sigmoid(2g) - 1 below.
    xg_ref[...] = jnp.dot(x_aug_ref[...], lstm_ref[0:8, :],
                          preferred_element_type=f32)              # (T*B, 8H)

    whh = lstm_ref[8:8 + 2 * H, :]       # (2H, 8H) block-diag [[whh_f,0],[0,whh_b]] (packed)

    h_cat = jnp.zeros((B, 2 * H), f32)   # [h_fwd, h_bwd]
    c_cat = jnp.zeros((B, 2 * H), f32)
    for t in range(T):                   # static unroll, T=16; xg staged in VMEM scratch
        gin = xg_ref[t * B:(t + 1) * B, :]                          # (B, 8H)
        gates = gin + jnp.dot(h_cat, whh, preferred_element_type=f32)
        sig = jax.nn.sigmoid(gates)      # single full EUP pass per step
        i_cat = sig[:, 0:2 * H]
        f_cat = sig[:, 2 * H:4 * H]
        g_cat = 2.0 * sig[:, 4 * H:6 * H] - 1.0                     # == tanh(g_raw)
        o_cat = sig[:, 6 * H:8 * H]
        c_cat = f_cat * c_cat + i_cat * g_cat
        h_cat = o_cat * (2.0 * jax.nn.sigmoid(2.0 * c_cat) - 1.0)   # == tanh(c_cat)
    h_all = h_cat                        # (B, 2H) == concat(h_fwd_last, h_bwd_last)

    # ---- parameter-slab access (static offsets; one DMA for every MLP weight) ----
    def W(name):
        r, nr, nc = layout[name]
        return mlp_ref[r:r + nr, 0:nc]

    def mlp3(x, p):
        h1 = jnp.maximum(jnp.dot(x, W("w" + p + "1"), preferred_element_type=f32)
                         + W("b" + p + "1"), 0.0)
        h2 = jnp.maximum(jnp.dot(h1, W("w" + p + "2"), preferred_element_type=f32)
                         + W("b" + p + "2"), 0.0)
        return jnp.dot(h2, W("w" + p + "3"), preferred_element_type=f32)   # last layer: no bias

    eps = eps_ref[...]
    eps_c = eps[:, 0:C]
    eps_zL = eps[:, C:C + Z]
    eps_zi = eps[:, C + Z:C + 2 * Z]

    # statistics network q(c|D), c = rsample
    c_params = mlp3(h_all, "c")
    c = c_params[:, :C] + jnp.exp(c_params[:, C:]) * eps_c

    # q(z_L | x, c), z_L = rsample
    conc = jnp.concatenate([c, h_all], axis=-1)
    qz = mlp3(conc, "z")
    z_L = qz[:, :Z] + jnp.exp(qz[:, Z:]) * eps_zL

    # q(z_i | x, c, z_L), z_i = rsample   (z_layers == 2)
    tmp_conc = jnp.concatenate([conc, z_L], axis=-1)
    zpar = mlp3(tmp_conc, "p")
    z_i = zpar[:, :Z] + jnp.exp(zpar[:, Z:]) * eps_zi

    # p(z_L | c)
    pzp = mlp3(c, "d")
    # TODO(synk): the reference module re-chunks p_z_params for prior_z_i (its
    # prior_z_from_z output is dead code), so prior_z_i == prior_z_L and that MLP is skipped.

    # p(x | z, c)
    conc_x = jnp.concatenate([c, z_L, z_i], axis=-1)
    hx = jnp.maximum(jnp.dot(conc_x, W("wx1"), preferred_element_type=f32) + W("bx1"), 0.0)
    px_params = jnp.dot(hx, W("wx2"), preferred_element_type=f32) + W("bx2")   # (B, 2T)

    # single lane-dense packed output; 120 useful lanes + 8 zero pad -> unmasked store
    useful = 2 * T + 3 * C + 8 * Z
    pieces = [px_params, c_params, qz, zpar, pzp, z_L, z_i, c]
    pad = out_ref.shape[1] - useful
    if pad > 0:
        pieces.append(jnp.zeros((B, pad), f32))
    out_ref[...] = jnp.concatenate(pieces, axis=-1)


# --------------------------- host-side packing ---------------------------

_MLP_NAMES = ("wc1", "bc1", "wc2", "bc2", "wc3",
              "wz1", "bz1", "wz2", "bz2", "wz3",
              "wp1", "bp1", "wp2", "bp2", "wp3",
              "wd1", "bd1", "wd2", "bd2", "wd3",
              "wx1", "bx1", "wx2", "bx2")


def pack_neural_stat_params(params, H):
    """One-time packing of all module weights into two lane-dense f32 slabs.

    LSTM slab (8+2H, 8H): rows 0:4 are the [x_fwd, 1, x_rev, 1] input/bias weights for
    both directions (rows 4:8 zero pad so the kernel slices a full sublane tile), rows
    8:8+2H are the block-diagonal recurrent weight.  Gate columns are laid out
    gate-type-major and the candidate-gate columns are pre-scaled by 2.

    MLP slab (rows, 128): every Linear weight/bias row-concatenated (8-row aligned) and
    zero-padded to 128 lanes -> one contiguous DMA instead of 24 tiny ones.
    """
    def npf(a):
        return np.asarray(a, np.float32)

    def scatter_gates(w4h, d):
        w4h = npf(w4h)
        out = np.zeros(w4h.shape[:-1] + (8 * H,), np.float32)
        for g in range(4):                       # torch LSTM gate order: i, f, g, o
            blk = w4h[..., g * H:(g + 1) * H]
            if g == 2:
                blk = 2.0 * blk                  # pre-scale candidate gate (tanh via sigmoid)
            out[..., (2 * g + d) * H:(2 * g + d + 1) * H] = blk
        return out

    lstm = np.zeros((8 + 2 * H, 8 * H), np.float32)
    lstm[0] = scatter_gates(params["wih_f"][0], 0)
    lstm[1] = scatter_gates(params["b_f"][0], 0)
    lstm[2] = scatter_gates(params["wih_b"][0], 1)
    lstm[3] = scatter_gates(params["b_b"][0], 1)
    lstm[8:8 + H] = scatter_gates(params["whh_f"], 0)
    lstm[8 + H:8 + 2 * H] = scatter_gates(params["whh_b"], 1)

    layout = {}
    row = 0
    for n in _MLP_NAMES:
        a = npf(params[n])
        layout[n] = (row, a.shape[0], a.shape[1])
        row += a.shape[0]
        row = -(-row // 8) * 8                   # keep every component sublane-aligned
    mlp = np.zeros((row, 128), np.float32)
    for n in _MLP_NAMES:
        r, nr, nc = layout[n]
        mlp[r:r + nr, :nc] = npf(params[n])
    return jnp.asarray(lstm), jnp.asarray(mlp), layout


def _full_spec(shape):
    nd = len(shape)
    return pl.BlockSpec(shape, lambda i, _nd=nd: (0,) * _nd)


# ------------------------------- wrapper --------------------------------

def neural_stat_forward(dataset, eps_c, eps_z_L, eps_z_i, packed_params):
    """Fused Neural_Stat forward (z_layers=2). Distributions are {mu, log_sigma} dicts."""
    lstm_slab, mlp_slab, layout = packed_params
    B, T, F = dataset.shape
    assert F == 1
    H = (lstm_slab.shape[0] - 8) // 2
    C = eps_c.shape[1]
    Z = eps_z_L.shape[1]

    # TODO(synk): h_all uses h_n semantics (last fwd state + last bwd state after the full
    # reverse pass); if the torch Encoder returns output[:, -1, :] of nn.LSTM instead, the
    # backward half would differ.
    xT = jnp.transpose(dataset.reshape(B, T))               # (T, B), time-major
    ones = jnp.ones_like(xT)
    zcol = jnp.zeros_like(xT)
    x_aug = jnp.stack([xT, ones, xT[::-1], ones, zcol, zcol, zcol, zcol],
                      axis=-1).reshape(T * B, 8)            # layout plumbing only
    eps = jnp.concatenate([eps_c, eps_z_L, eps_z_i], axis=-1)   # (B, C + 2Z)

    W_OUT = 128                      # 120 useful lanes + 8 pad -> full-tile store
    kernel = functools.partial(_neural_stat_kernel, T=T, H=H, C=C, Z=Z, layout=layout)
    inputs = (x_aug, eps, lstm_slab, mlp_slab)

    packed = pl.pallas_call(
        kernel,
        grid=(1,),                   # single TC: far too small to split across cores
        in_specs=[_full_spec(a.shape) for a in inputs],
        out_specs=_full_spec((B, W_OUT)),
        out_shape=jax.ShapeDtypeStruct((B, W_OUT), jnp.float32),
        scratch_shapes=[pltpu.VMEM((T * B, 8 * H), jnp.float32)],
        compiler_params=pltpu.CompilerParams(dimension_semantics=("arbitrary",)),
    )(*inputs)

    off = [0]

    def take(n):
        s = off[0]
        off[0] = s + n
        return packed[:, s:s + n]

    px_params = take(2 * T)
    c_params = take(2 * C)
    qz = take(2 * Z)
    zpar = take(2 * Z)
    pzp = take(2 * Z)
    z_L = take(Z)
    z_i = take(Z)
    c = take(C)

    zeros_c = jnp.zeros((B, C), jnp.float32)    # prior p(c) = N(0, I): trivial, wrapper-side
    prior_zL = {"mu": pzp[:, :Z], "log_sigma": pzp[:, Z:]}
    return {
        "px": {"mu": px_params[:, :T], "log_sigma": px_params[:, T:]},
        "posterior_z_L": {"mu": qz[:, :Z], "log_sigma": qz[:, Z:]},
        "posterior_z_i": {"mu": zpar[:, :Z], "log_sigma": zpar[:, Z:]},
        "prior_z_L": prior_zL,
        "prior_z_i": prior_zL,       # spec reuses p_z_params for the z_i prior (upstream bug)
        "z_L": z_L,
        "z_i": z_i,
        "posterior_c": {"mu": c_params[:, :C], "log_sigma": c_params[:, C:]},
        "prior_c": {"mu": zeros_c, "log_sigma": zeros_c},
        "c": c,
        "z": jnp.concatenate([z_L, z_i], axis=-1),
    }


# ------------------------- pure-JAX reference -------------------------

def _ref_forward(dataset, eps_c, eps_z_L, eps_z_i, params):
    B, T, _ = dataset.shape
    x = dataset.reshape(B, T)
    H = params["whh_f"].shape[0]
    C = eps_c.shape[1]
    Z = eps_z_L.shape[1]

    def cell(x_t, h, c, wih, whh, b):
        g = x_t @ wih + h @ whh + b
        i = jax.nn.sigmoid(g[:, :H]); f = jax.nn.sigmoid(g[:, H:2 * H])
        gg = jnp.tanh(g[:, 2 * H:3 * H]); o = jax.nn.sigmoid(g[:, 3 * H:])
        c = f * c + i * gg
        return o * jnp.tanh(c), c

    hf = jnp.zeros((B, H)); cf = jnp.zeros((B, H))
    hb = jnp.zeros((B, H)); cb = jnp.zeros((B, H))
    for t in range(T):
        hf, cf = cell(x[:, t:t + 1], hf, cf, params["wih_f"], params["whh_f"], params["b_f"])
        hb, cb = cell(x[:, T - 1 - t:T - t], hb, cb, params["wih_b"], params["whh_b"], params["b_b"])
    h_all = jnp.concatenate([hf, hb], -1)

    def mlp3(v, w1, b1, w2, b2, w3):
        h1 = jnp.maximum(v @ w1 + b1, 0.0)
        h2 = jnp.maximum(h1 @ w2 + b2, 0.0)
        return h2 @ w3

    c_params = mlp3(h_all, params["wc1"], params["bc1"], params["wc2"], params["bc2"], params["wc3"])
    c = c_params[:, :C] + jnp.exp(c_params[:, C:]) * eps_c

    conc = jnp.concatenate([c, h_all], -1)
    qz = mlp3(conc, params["wz1"], params["bz1"], params["wz2"], params["bz2"], params["wz3"])
    z_L = qz[:, :Z] + jnp.exp(qz[:, Z:]) * eps_z_L

    tmp_conc = jnp.concatenate([conc, z_L], -1)
    zpar = mlp3(tmp_conc, params["wp1"], params["bp1"], params["wp2"], params["bp2"], params["wp3"])
    z_i = zpar[:, :Z] + jnp.exp(zpar[:, Z:]) * eps_z_i

    pzp = mlp3(c, params["wd1"], params["bd1"], params["wd2"], params["bd2"], params["wd3"])

    z = jnp.concatenate([z_L, z_i], -1)
    conc_x = jnp.concatenate([c, z], -1)
    hx = jnp.maximum(conc_x @ params["wx1"] + params["bx1"], 0.0)
    px_params = hx @ params["wx2"] + params["bx2"]
    return c_params, c, qz, z_L, zpar, z_i, pzp, px_params


# ------------------------------- main ---------------------------------

if __name__ == "__main__":
    # batch, seq_len, lstm hidden (8H = 256 fused gate lanes), latent_c, latent_z,
    # z_layers = 2, bidirectional = True
    B, T, H, C, Z = 8, 16, 32, 8, 8
    E = 2 * H              # encode_c_shape (bidirectional)
    D1 = E + C             # encode_z_from_h_c width
    D2 = E + C + Z         # posterior_z_from_z width

    shapes = {
        "wih_f": (1, 4 * H), "whh_f": (H, 4 * H), "b_f": (1, 4 * H),
        "wih_b": (1, 4 * H), "whh_b": (H, 4 * H), "b_b": (1, 4 * H),
        "wc1": (E, E), "bc1": (1, E), "wc2": (E, E), "bc2": (1, E), "wc3": (E, 2 * C),
        "wz1": (D1, D1), "bz1": (1, D1), "wz2": (D1, D1), "bz2": (1, D1), "wz3": (D1, 2 * Z),
        "wp1": (D2, D2), "bp1": (1, D2), "wp2": (D2, D2), "bp2": (1, D2), "wp3": (D2, 2 * Z),
        "wd1": (C, 50), "bd1": (1, 50), "wd2": (50, 50), "bd2": (1, 50), "wd3": (50, 2 * Z),
        "wx1": (C + 2 * Z, 64), "bx1": (1, 64), "wx2": (64, 2 * T), "bx2": (1, 2 * T),
    }

    key = jax.random.PRNGKey(0)
    ks = jax.random.split(key, len(shapes) + 4)
    params = {k: 0.1 * jax.random.normal(ks[i], shp, jnp.float32)
              for i, (k, shp) in enumerate(shapes.items())}

    dataset = jax.random.normal(ks[-4], (B, T, 1), jnp.float32)
    eps_c = jax.random.normal(ks[-3], (B, C), jnp.float32)
    eps_z_L = jax.random.normal(ks[-2], (B, Z), jnp.float32)
    eps_z_i = jax.random.normal(ks[-1], (B, Z), jnp.float32)

    packed_params = pack_neural_stat_params(params, H)      # one-time host-side packing

    out = neural_stat_forward(dataset, eps_c, eps_z_L, eps_z_i, packed_params)
    out = jax.block_until_ready(out)

    # numerical check against the pure-JAX reference (uses the raw, unpacked weights)
    r_cp, r_c, r_qz, r_zL, r_zpar, r_zi, r_pzp, r_px = _ref_forward(
        dataset, eps_c, eps_z_L, eps_z_i, params)
    tol = dict(atol=2e-4, rtol=2e-4)
    assert np.allclose(out["posterior_c"]["mu"], r_cp[:, :C], **tol)
    assert np.allclose(out["posterior_c"]["log_sigma"], r_cp[:, C:], **tol)
    assert np.allclose(out["c"], r_c, **tol)
    assert np.allclose(out["posterior_z_L"]["mu"], r_qz[:, :Z], **tol)
    assert np.allclose(out["posterior_z_L"]["log_sigma"], r_qz[:, Z:], **tol)
    assert np.allclose(out["z_L"], r_zL, **tol)
    assert np.allclose(out["posterior_z_i"]["mu"], r_zpar[:, :Z], **tol)
    assert np.allclose(out["posterior_z_i"]["log_sigma"], r_zpar[:, Z:], **tol)
    assert np.allclose(out["z_i"], r_zi, **tol)
    assert np.allclose(out["prior_z_L"]["mu"], r_pzp[:, :Z], **tol)
    assert np.allclose(out["prior_z_L"]["log_sigma"], r_pzp[:, Z:], **tol)
    assert np.allclose(out["px"]["mu"], r_px[:, :T], **tol)
    assert np.allclose(out["px"]["log_sigma"], r_px[:, T:], **tol)
    assert np.allclose(out["z"], np.concatenate([r_zL, r_zi], -1), **tol)

    print("KERNEL_OK")
</pallas_src>

<mosaic_0001>
module attributes {stable_mosaic.version = 11 : i64} {
  func.func @_neural_stat_kernel(%arg0: i32, %arg1: memref<128x8xf32, #tpu.memory_space<vmem>>, %arg2: memref<8x24xf32, #tpu.memory_space<vmem>>, %arg3: memref<72x256xf32, #tpu.memory_space<vmem>>, %arg4: memref<936x128xf32, #tpu.memory_space<vmem>>, %arg5: memref<8x128xf32, #tpu.memory_space<vmem>>, %arg6: memref<128x256xf32, #tpu.memory_space<vmem>>) attributes {dimension_semantics = [#tpu.dimension_semantics<arbitrary>], iteration_bounds = array<i64: 1>, scalar_prefetch = 0 : i64, scratch_operands = 1 : i64, tpu.core_type = #tpu.core_type<tc>, window_params = [{pipeline_mode = #tpu.pipeline_mode<synchronous>, transform_indices = @transform_0, window_bounds = array<i64: 128, 8>}, {pipeline_mode = #tpu.pipeline_mode<synchronous>, transform_indices = @transform_1, window_bounds = array<i64: 8, 24>}, {pipeline_mode = #tpu.pipeline_mode<synchronous>, transform_indices = @transform_2, window_bounds = array<i64: 72, 256>}, {pipeline_mode = #tpu.pipeline_mode<synchronous>, transform_indices = @transform_3, window_bounds = array<i64: 936, 128>}, {pipeline_mode = #tpu.pipeline_mode<synchronous>, transform_indices = @transform_4, window_bounds = array<i64: 8, 128>}]} {
    %c0 = arith.constant 0 : index
    %c0_0 = arith.constant 0 : index
    %0 = vector.load %arg1[%c0, %c0_0] : memref<128x8xf32, #tpu.memory_space<vmem>>, vector<128x8xf32>
    %c0_1 = arith.constant 0 : index
    %c0_2 = arith.constant 0 : index
    %1 = vector.load %arg3[%c0_1, %c0_2] : memref<72x256xf32, #tpu.memory_space<vmem>>, vector<8x256xf32>
    %cst = arith.constant dense<0.000000e+00> : vector<128x256xf32>
    %2 = tpu.matmul %0, %1, %cst {dimension_numbers = #tpu.dot_dimension_numbers<[1], [0], [0], [1], [0, 0, 1, 1], [], []>} : vector<128x8xf32>, vector<8x256xf32>, vector<128x256xf32> -> vector<128x256xf32>
    %c0_3 = arith.constant 0 : index
    %c0_4 = arith.constant 0 : index
    %3 = vector.load %arg6[%c0_3, %c0_4] : memref<128x256xf32, #tpu.memory_space<vmem>>, vector<128x256xf32>
    tpu.vector_store %arg6[%c0_3, %c0_4], %2 {strides = array<i32>} : memref<128x256xf32, #tpu.memory_space<vmem>>, vector<128x256xf32>,
    %c8 = arith.constant 8 : index
    %c0_5 = arith.constant 0 : index
    %4 = vector.load %arg3[%c8, %c0_5] : memref<72x256xf32, #tpu.memory_space<vmem>>, vector<64x256xf32>
    %cst_6 = arith.constant 0.000000e+00 : f32
    %5 = vector.broadcast %cst_6 : f32 to vector<8x64xf32>
    %cst_7 = arith.constant 0.000000e+00 : f32
    %6 = vector.broadcast %cst_7 : f32 to vector<8x64xf32>
    %c0_8 = arith.constant 0 : index
    %c0_9 = arith.constant 0 : index
    %7 = vector.load %arg6[%c0_8, %c0_9] : memref<128x256xf32, #tpu.memory_space<vmem>>, vector<8x256xf32>
    %cst_10 = arith.constant dense<0.000000e+00> : vector<8x256xf32>
    %8 = tpu.matmul %5, %4, %cst_10 {dimension_numbers = #tpu.dot_dimension_numbers<[1], [0], [0], [1], [0, 0, 1, 1], [], []>} : vector<8x64xf32>, vector<64x256xf32>, vector<8x256xf32> -> vector<8x256xf32>
    %9 = arith.addf %7, %8 : vector<8x256xf32>
    %10 = arith.negf %9 : vector<8x256xf32>
    %11 = math.exp %10 : vector<8x256xf32>
    %cst_11 = arith.constant 1.000000e+00 : f32
    %12 = vector.broadcast %cst_11 : f32 to vector<8x256xf32>
    %13 = arith.addf %12, %11 : vector<8x256xf32>
    %14 = arith.divf %12, %13 : vector<8x256xf32>
    %15 = vector.extract_strided_slice %14 {offsets = [0, 0], sizes = [8, 64], strides = [1, 1]} : vector<8x256xf32> to vector<8x64xf32>
    %16 = vector.extract_strided_slice %14 {offsets = [0, 64], sizes = [8, 64], strides = [1, 1]} : vector<8x256xf32> to vector<8x64xf32>
    %17 = vector.extract_strided_slice %14 {offsets = [0, 128], sizes = [8, 64], strides = [1, 1]} : vector<8x256xf32> to vector<8x64xf32>
    %cst_12 = arith.constant 2.000000e+00 : f32
    %18 = vector.broadcast %cst_12 : f32 to vector<8x64xf32>
    %19 = arith.mulf %18, %17 : vector<8x64xf32>
    %cst_13 = arith.constant 1.000000e+00 : f32
    %20 = vector.broadcast %cst_13 : f32 to vector<8x64xf32>
    %21 = arith.subf %19, %20 : vector<8x64xf32>
    %22 = vector.extract_strided_slice %14 {offsets = [0, 192], sizes = [8, 64], strides = [1, 1]} : vector<8x256xf32> to vector<8x64xf32>
    %23 = arith.mulf %16, %6 : vector<8x64xf32>
    %24 = arith.mulf %15, %21 : vector<8x64xf32>
    %25 = arith.addf %23, %24 : vector<8x64xf32>
    %cst_14 = arith.constant 2.000000e+00 : f32
    %26 = vector.broadcast %cst_14 : f32 to vector<8x64xf32>
    %27 = arith.mulf %26, %25 : vector<8x64xf32>
    %28 = arith.negf %27 : vector<8x64xf32>
    %29 = math.exp %28 : vector<8x64xf32>
    %cst_15 = arith.constant 1.000000e+00 : f32
    %30 = vector.broadcast %cst_15 : f32 to vector<8x64xf32>
    %31 = arith.addf %30, %29 : vector<8x64xf32>
    %32 = arith.divf %30, %31 : vector<8x64xf32>
    %cst_16 = arith.constant 2.000000e+00 : f32
    %33 = vector.broadcast %cst_16 : f32 to vector<8x64xf32>
    %34 = arith.mulf %33, %32 : vector<8x64xf32>
    %cst_17 = arith.constant 1.000000e+00 : f32
    %35 = vector.broadcast %cst_17 : f32 to vector<8x64xf32>
    %36 = arith.subf %34, %35 : vector<8x64xf32>
    %37 = arith.mulf %22, %36 : vector<8x64xf32>
    %c8_18 = arith.constant 8 : index
    %c0_19 = arith.constant 0 : index
    %38 = vector.load %arg6[%c8_18, %c0_19] : memref<128x256xf32, #tpu.memory_space<vmem>>, vector<8x256xf32>
    %cst_20 = arith.constant dense<0.000000e+00> : vector<8x256xf32>
    %39 = tpu.matmul %37, %4, %cst_20 {dimension_numbers = #tpu.dot_dimension_numbers<[1], [0], [0], [1], [0, 0, 1, 1], [], []>} : vector<8x64xf32>, vector<64x256xf32>, vector<8x256xf32> -> vector<8x256xf32>
    %40 = arith.addf %38, %39 : vector<8x256xf32>
    %41 = arith.negf %40 : vector<8x256xf32>
    %42 = math.exp %41 : vector<8x256xf32>
    %cst_21 = arith.constant 1.000000e+00 : f32
    %43 = vector.broadcast %cst_21 : f32 to vector<8x256xf32>
    %44 = arith.addf %43, %42 : vector<8x256xf32>
    %45 = arith.divf %43, %44 : vector<8x256xf32>
    %46 = vector.extract_strided_slice %45 {offsets = [0, 0], sizes = [8, 64], strides = [1, 1]} : vector<8x256xf32> to vector<8x64xf32>
    %47 = vector.extract_strided_slice %45 {offsets = [0, 64], sizes = [8, 64], strides = [1, 1]} : vector<8x256xf32> to vector<8x64xf32>
    %48 = vector.extract_strided_slice %45 {offsets = [0, 128], sizes = [8, 64], strides = [1, 1]} : vector<8x256xf32> to vector<8x64xf32>
    %cst_22 = arith.constant 2.000000e+00 : f32
    %49 = vector.broadcast %cst_22 : f32 to vector<8x64xf32>
    %50 = arith.mulf %49, %48 : vector<8x64xf32>
    %cst_23 = arith.constant 1.000000e+00 : f32
    %51 = vector.broadcast %cst_23 : f32 to vector<8x64xf32>
    %52 = arith.subf %50, %51 : vector<8x64xf32>
    %53 = vector.extract_strided_slice %45 {offsets = [0, 192], sizes = [8, 64], strides = [1, 1]} : vector<8x256xf32> to vector<8x64xf32>
    %54 = arith.mulf %47, %25 : vector<8x64xf32>
    %55 = arith.mulf %46, %52 : vector<8x64xf32>
    %56 = arith.addf %54, %55 : vector<8x64xf32>
    %cst_24 = arith.constant 2.000000e+00 : f32
    %57 = vector.broadcast %cst_24 : f32 to vector<8x64xf32>
    %58 = arith.mulf %57, %56 : vector<8x64xf32>
    %59 = arith.negf %58 : vector<8x64xf32>
    %60 = math.exp %59 : vector<8x64xf32>
    %cst_25 = arith.constant 1.000000e+00 : f32
    %61 = vector.broadcast %cst_25 : f32 to vector<8x64xf32>
    %62 = arith.addf %61, %60 : vector<8x64xf32>
    %63 = arith.divf %61, %62 : vector<8x64xf32>
    %cst_26 = arith.constant 2.000000e+00 : f32
    %64 = vector.broadcast %cst_26 : f32 to vector<8x64xf32>
    %65 = arith.mulf %64, %63 : vector<8x64xf32>
    %cst_27 = arith.constant 1.000000e+00 : f32
    %66 = vector.broadcast %cst_27 : f32 to vector<8x64xf32>
    %67 = arith.subf %65, %66 : vector<8x64xf32>
    %68 = arith.mulf %53, %67 : vector<8x64xf32>
    %c16 = arith.constant 16 : index
    %c0_28 = arith.constant 0 : index
    %69 = vector.load %arg6[%c16, %c0_28] : memref<128x256xf32, #tpu.memory_space<vmem>>, vector<8x256xf32>
    %cst_29 = arith.constant dense<0.000000e+00> : vector<8x256xf32>
    %70 = tpu.matmul %68, %4, %cst_29 {dimension_numbers = #tpu.dot_dimension_numbers<[1], [0], [0], [1], [0, 0, 1, 1], [], []>} : vector<8x64xf32>, vector<64x256xf32>, vector<8x256xf32> -> vector<8x256xf32>
    %71 = arith.addf %69, %70 : vector<8x256xf32>
    %72 = arith.negf %71 : vector<8x256xf32>
    %73 = math.exp %72 : vector<8x256xf32>
    %cst_30 = arith.constant 1.000000e+00 : f32
    %74 = vector.broadcast %cst_30 : f32 to vector<8x256xf32>
    %75 = arith.addf %74, %73 : vector<8x256xf32>
    %76 = arith.divf %74, %75 : vector<8x256xf32>
    %77 = vector.extract_strided_slice %76 {offsets = [0, 0], sizes = [8, 64], strides = [1, 1]} : vector<8x256xf32> to vector<8x64xf32>
    %78 = vector.extract_strided_slice %76 {offsets = [0, 64], sizes = [8, 64], strides = [1, 1]} : vector<8x256xf32> to vector<8x64xf32>
    %79 = vector.extract_strided_slice %76 {offsets = [0, 128], sizes = [8, 64], strides = [1, 1]} : vector<8x256xf32> to vector<8x64xf32>
    %cst_31 = arith.constant 2.000000e+00 : f32
    %80 = vector.broadcast %cst_31 : f32 to vector<8x64xf32>
    %81 = arith.mulf %80, %79 : vector<8x64xf32>
    %cst_32 = arith.constant 1.000000e+00 : f32
    %82 = vector.broadcast %cst_32 : f32 to vector<8x64xf32>
    %83 = arith.subf %81, %82 : vector<8x64xf32>
    %84 = vector.extract_strided_slice %76 {offsets = [0, 192], sizes = [8, 64], strides = [1, 1]} : vector<8x256xf32> to vector<8x64xf32>
    %85 = arith.mulf %78, %56 : vector<8x64xf32>
    %86 = arith.mulf %77, %83 : vector<8x64xf32>
    %87 = arith.addf %85, %86 : vector<8x64xf32>
    %cst_33 = arith.constant 2.000000e+00 : f32
    %88 = vector.broadcast %cst_33 : f32 to vector<8x64xf32>
    %89 = arith.mulf %88, %87 : vector<8x64xf32>
    %90 = arith.negf %89 : vector<8x64xf32>
    %91 = math.exp %90 : vector<8x64xf32>
    %cst_34 = arith.constant 1.000000e+00 : f32
    %92 = vector.broadcast %cst_34 : f32 to vector<8x64xf32>
    %93 = arith.addf %92, %91 : vector<8x64xf32>
    %94 = arith.divf %92, %93 : vector<8x64xf32>
    %cst_35 = arith.constant 2.000000e+00 : f32
    %95 = vector.broadcast %cst_35 : f32 to vector<8x64xf32>
    %96 = arith.mulf %95, %94 : vector<8x64xf32>
    %cst_36 = arith.constant 1.000000e+00 : f32
    %97 = vector.broadcast %cst_36 : f32 to vector<8x64xf32>
    %98 = arith.subf %96, %97 : vector<8x64xf32>
    %99 = arith.mulf %84, %98 : vector<8x64xf32>
    %c24 = arith.constant 24 : index
    %c0_37 = arith.constant 0 : index
    %100 = vector.load %arg6[%c24, %c0_37] : memref<128x256xf32, #tpu.memory_space<vmem>>, vector<8x256xf32>
    %cst_38 = arith.constant dense<0.000000e+00> : vector<8x256xf32>
    %101 = tpu.matmul %99, %4, %cst_38 {dimension_numbers = #tpu.dot_dimension_numbers<[1], [0], [0], [1], [0, 0, 1, 1], [], []>} : vector<8x64xf32>, vector<64x256xf32>, vector<8x256xf32> -> vector<8x256xf32>
    %102 = arith.addf %100, %101 : vector<8x256xf32>
    %103 = arith.negf %102 : vector<8x256xf32>
    %104 = math.exp %103 : vector<8x256xf32>
    %cst_39 = arith.constant 1.000000e+00 : f32
    %105 = vector.broadcast %cst_39 : f32 to vector<8x256xf32>
    %106 = arith.addf %105, %104 : vector<8x256xf32>
    %107 = arith.divf %105, %106 : vector<8x256xf32>
    %108 = vector.extract_strided_slice %107 {offsets = [0, 0], sizes = [8, 64], strides = [1, 1]} : vector<8x256xf32> to vector<8x64xf32>
    %109 = vector.extract_strided_slice %107 {offsets = [0, 64], sizes = [8, 64], strides = [1, 1]} : vector<8x256xf32> to vector<8x64xf32>
    %110 = vector.extract_strided_slice %107 {offsets = [0, 128], sizes = [8, 64], strides = [1, 1]} : vector<8x256xf32> to vector<8x64xf32>
    %cst_40 = arith.constant 2.000000e+00 : f32
    %111 = vector.broadcast %cst_40 : f32 to vector<8x64xf32>
    %112 = arith.mulf %111, %110 : vector<8x64xf32>
    %cst_41 = arith.constant 1.000000e+00 : f32
    %113 = vector.broadcast %cst_41 : f32 to vector<8x64xf32>
    %114 = arith.subf %112, %113 : vector<8x64xf32>
    %115 = vector.extract_strided_slice %107 {offsets = [0, 192], sizes = [8, 64], strides = [1, 1]} : vector<8x256xf32> to vector<8x64xf32>
    %116 = arith.mulf %109, %87 : vector<8x64xf32>
    %117 = arith.mulf %108, %114 : vector<8x64xf32>
    %118 = arith.addf %116, %117 : vector<8x64xf32>
    %cst_42 = arith.constant 2.000000e+00 : f32
    %119 = vector.broadcast %cst_42 : f32 to vector<8x64xf32>
    %120 = arith.mulf %119, %118 : vector<8x64xf32>
    %121 = arith.negf %120 : vector<8x64xf32>
    %122 = math.exp %121 : vector<8x64xf32>
    %cst_43 = arith.constant 1.000000e+00 : f32
    %123 = vector.broadcast %cst_43 : f32 to vector<8x64xf32>
    %124 = arith.addf %123, %122 : vector<8x64xf32>
    %125 = arith.divf %123, %124 : vector<8x64xf32>
    %cst_44 = arith.constant 2.000000e+00 : f32
    %126 = vector.broadcast %cst_44 : f32 to vector<8x64xf32>
    %127 = arith.mulf %126, %125 : vector<8x64xf32>
    %cst_45 = arith.constant 1.000000e+00 : f32
    %128 = vector.broadcast %cst_45 : f32 to vector<8x64xf32>
    %129 = arith.subf %127, %128 : vector<8x64xf32>
    %130 = arith.mulf %115, %129 : vector<8x64xf32>
    %c32 = arith.constant 32 : index
    %c0_46 = arith.constant 0 : index
    %131 = vector.load %arg6[%c32, %c0_46] : memref<128x256xf32, #tpu.memory_space<vmem>>, vector<8x256xf32>
    %cst_47 = arith.constant dense<0.000000e+00> : vector<8x256xf32>
    %132 = tpu.matmul %130, %4, %cst_47 {dimension_numbers = #tpu.dot_dimension_numbers<[1], [0], [0], [1], [0, 0, 1, 1], [], []>} : vector<8x64xf32>, vector<64x256xf32>, vector<8x256xf32> -> vector<8x256xf32>
    %133 = arith.addf %131, %132 : vector<8x256xf32>
    %134 = arith.negf %133 : vector<8x256xf32>
    %135 = math.exp %134 : vector<8x256xf32>
    %cst_48 = arith.constant 1.000000e+00 : f32
    %136 = vector.broadcast %cst_48 : f32 to vector<8x256xf32>
    %137 = arith.addf %136, %135 : vector<8x256xf32>
    %138 = arith.divf %136, %137 : vector<8x256xf32>
    %139 = vector.extract_strided_slice %138 {offsets = [0, 0], sizes = [8, 64], strides = [1, 1]} : vector<8x256xf32> to vector<8x64xf32>
    %140 = vector.extract_strided_slice %138 {offsets = [0, 64], sizes = [8, 64], strides = [1, 1]} : vector<8x256xf32> to vector<8x64xf32>
    %141 = vector.extract_strided_slice %138 {offsets = [0, 128], sizes = [8, 64], strides = [1, 1]} : vector<8x256xf32> to vector<8x64xf32>
    %cst_49 = arith.constant 2.000000e+00 : f32
    %142 = vector.broadcast %cst_49 : f32 to vector<8x64xf32>
    %143 = arith.mulf %142, %141 : vector<8x64xf32>
    %cst_50 = arith.constant 1.000000e+00 : f32
    %144 = vector.broadcast %cst_50 : f32 to vector<8x64xf32>
    %145 = arith.subf %143, %144 : vector<8x64xf32>
    %146 = vector.extract_strided_slice %138 {offsets = [0, 192], sizes = [8, 64], strides = [1, 1]} : vector<8x256xf32> to vector<8x64xf32>
    %147 = arith.mulf %140, %118 : vector<8x64xf32>
    %148 = arith.mulf %139, %145 : vector<8x64xf32>
    %149 = arith.addf %147, %148 : vector<8x64xf32>
    %cst_51 = arith.constant 2.000000e+00 : f32
    %150 = vector.broadcast %cst_51 : f32 to vector<8x64xf32>
    %151 = arith.mulf %150, %149 : vector<8x64xf32>
    %152 = arith.negf %151 : vector<8x64xf32>
    %153 = math.exp %152 : vector<8x64xf32>
    %cst_52 = arith.constant 1.000000e+00 : f32
    %154 = vector.broadcast %cst_52 : f32 to vector<8x64xf32>
    %155 = arith.addf %154, %153 : vector<8x64xf32>
    %156 = arith.divf %154, %155 : vector<8x64xf32>
    %cst_53 = arith.constant 2.000000e+00 : f32
    %157 = vector.broadcast %cst_53 : f32 to vector<8x64xf32>
    %158 = arith.mulf %157, %156 : vector<8x64xf32>
    %cst_54 = arith.constant 1.000000e+00 : f32
    %159 = vector.broadcast %cst_54 : f32 to vector<8x64xf32>
    %160 = arith.subf %158, %159 : vector<8x64xf32>
    %161 = arith.mulf %146, %160 : vector<8x64xf32>
    %c40 = arith.constant 40 : index
    %c0_55 = arith.constant 0 : index
    %162 = vector.load %arg6[%c40, %c0_55] : memref<128x256xf32, #tpu.memory_space<vmem>>, vector<8x256xf32>
    %cst_56 = arith.constant dense<0.000000e+00> : vector<8x256xf32>
    %163 = tpu.matmul %161, %4, %cst_56 {dimension_numbers = #tpu.dot_dimension_numbers<[1], [0], [0], [1], [0, 0, 1, 1], [], []>} : vector<8x64xf32>, vector<64x256xf32>, vector<8x256xf32> -> vector<8x256xf32>
    %164 = arith.addf %162, %163 : vector<8x256xf32>
    %165 = arith.negf %164 : vector<8x256xf32>
    %166 = math.exp %165 : vector<8x256xf32>
    %cst_57 = arith.constant 1.000000e+00 : f32
    %167 = vector.broadcast %cst_57 : f32 to vector<8x256xf32>
    %168 = arith.addf %167, %166 : vector<8x256xf32>
    %169 = arith.divf %167, %168 : vector<8x256xf32>
    %170 = vector.extract_strided_slice %169 {offsets = [0, 0], sizes = [8, 64], strides = [1, 1]} : vector<8x256xf32> to vector<8x64xf32>
    %171 = vector.extract_strided_slice %169 {offsets = [0, 64], sizes = [8, 64], strides = [1, 1]} : vector<8x256xf32> to vector<8x64xf32>
    %172 = vector.extract_strided_slice %169 {offsets = [0, 128], sizes = [8, 64], strides = [1, 1]} : vector<8x256xf32> to vector<8x64xf32>
    %cst_58 = arith.constant 2.000000e+00 : f32
    %173 = vector.broadcast %cst_58 : f32 to vector<8x64xf32>
    %174 = arith.mulf %173, %172 : vector<8x64xf32>
    %cst_59 = arith.constant 1.000000e+00 : f32
    %175 = vector.broadcast %cst_59 : f32 to vector<8x64xf32>
    %176 = arith.subf %174, %175 : vector<8x64xf32>
    %177 = vector.extract_strided_slice %169 {offsets = [0, 192], sizes = [8, 64], strides = [1, 1]} : vector<8x256xf32> to vector<8x64xf32>
    %178 = arith.mulf %171, %149 : vector<8x64xf32>
    %179 = arith.mulf %170, %176 : vector<8x64xf32>
    %180 = arith.addf %178, %179 : vector<8x64xf32>
    %cst_60 = arith.constant 2.000000e+00 : f32
    %181 = vector.broadcast %cst_60 : f32 to vector<8x64xf32>
    %182 = arith.mulf %181, %180 : vector<8x64xf32>
    %183 = arith.negf %182 : vector<8x64xf32>
    %184 = math.exp %183 : vector<8x64xf32>
    %cst_61 = arith.constant 1.000000e+00 : f32
    %185 = vector.broadcast %cst_61 : f32 to vector<8x64xf32>
    %186 = arith.addf %185, %184 : vector<8x64xf32>
    %187 = arith.divf %185, %186 : vector<8x64xf32>
    %cst_62 = arith.constant 2.000000e+00 : f32
    %188 = vector.broadcast %cst_62 : f32 to vector<8x64xf32>
    %189 = arith.mulf %188, %187 : vector<8x64xf32>
    %cst_63 = arith.constant 1.000000e+00 : f32
    %190 = vector.broadcast %cst_63 : f32 to vector<8x64xf32>
    %191 = arith.subf %189, %190 : vector<8x64xf32>
    %192 = arith.mulf %177, %191 : vector<8x64xf32>
    %c48 = arith.constant 48 : index
    %c0_64 = arith.constant 0 : index
    %193 = vector.load %arg6[%c48, %c0_64] : memref<128x256xf32, #tpu.memory_space<vmem>>, vector<8x256xf32>
    %cst_65 = arith.constant dense<0.000000e+00> : vector<8x256xf32>
    %194 = tpu.matmul %192, %4, %cst_65 {dimension_numbers = #tpu.dot_dimension_numbers<[1], [0], [0], [1], [0, 0, 1, 1], [], []>} : vector<8x64xf32>, vector<64x256xf32>, vector<8x256xf32> -> vector<8x256xf32>
    %195 = arith.addf %193, %194 : vector<8x256xf32>
    %196 = arith.negf %195 : vector<8x256xf32>
    %197 = math.exp %196 : vector<8x256xf32>
    %cst_66 = arith.constant 1.000000e+00 : f32
    %198 = vector.broadcast %cst_66 : f32 to vector<8x256xf32>
    %199 = arith.addf %198, %197 : vector<8x256xf32>
    %200 = arith.divf %198, %199 : vector<8x256xf32>
    %201 = vector.extract_strided_slice %200 {offsets = [0, 0], sizes = [8, 64], strides = [1, 1]} : vector<8x256xf32> to vector<8x64xf32>
    %202 = vector.extract_strided_slice %200 {offsets = [0, 64], sizes = [8, 64], strides = [1, 1]} : vector<8x256xf32> to vector<8x64xf32>
    %203 = vector.extract_strided_slice %200 {offsets = [0, 128], sizes = [8, 64], strides = [1, 1]} : vector<8x256xf32> to vector<8x64xf32>
    %cst_67 = arith.constant 2.000000e+00 : f32
    %204 = vector.broadcast %cst_67 : f32 to vector<8x64xf32>
    %205 = arith.mulf %204, %203 : vector<8x64xf32>
    %cst_68 = arith.constant 1.000000e+00 : f32
    %206 = vector.broadcast %cst_68 : f32 to vector<8x64xf32>
    %207 = arith.subf %205, %206 : vector<8x64xf32>
    %208 = vector.extract_strided_slice %200 {offsets = [0, 192], sizes = [8, 64], strides = [1, 1]} : vector<8x256xf32> to vector<8x64xf32>
    %209 = arith.mulf %202, %180 : vector<8x64xf32>
    %210 = arith.mulf %201, %207 : vector<8x64xf32>
    %211 = arith.addf %209, %210 : vector<8x64xf32>
    %cst_69 = arith.constant 2.000000e+00 : f32
    %212 = vector.broadcast %cst_69 : f32 to vector<8x64xf32>
    %213 = arith.mulf %212, %211 : vector<8x64xf32>
    %214 = arith.negf %213 : vector<8x64xf32>
    %215 = math.exp %214 : vector<8x64xf32>
    %cst_70 = arith.constant 1.000000e+00 : f32
    %216 = vector.broadcast %cst_70 : f32 to vector<8x64xf32>
    %217 = arith.addf %216, %215 : vector<8x64xf32>
    %218 = arith.divf %216, %217 : vector<8x64xf32>
    %cst_71 = arith.constant 2.000000e+00 : f32
    %219 = vector.broadcast %cst_71 : f32 to vector<8x64xf32>
    %220 = arith.mulf %219, %218 : vector<8x64xf32>
    %cst_72 = arith.constant 1.000000e+00 : f32
    %221 = vector.broadcast %cst_72 : f32 to vector<8x64xf32>
    %222 = arith.subf %220, %221 : vector<8x64xf32>
    %223 = arith.mulf %208, %222 : vector<8x64xf32>
    %c56 = arith.constant 56 : index
    %c0_73 = arith.constant 0 : index
    %224 = vector.load %arg6[%c56, %c0_73] : memref<128x256xf32, #tpu.memory_space<vmem>>, vector<8x256xf32>
    %cst_74 = arith.constant dense<0.000000e+00> : vector<8x256xf32>
    %225 = tpu.matmul %223, %4, %cst_74 {dimension_numbers = #tpu.dot_dimension_numbers<[1], [0], [0], [1], [0, 0, 1, 1], [], []>} : vector<8x64xf32>, vector<64x256xf32>, vector<8x256xf32> -> vector<8x256xf32>
    %226 = arith.addf %224, %225 : vector<8x256xf32>
    %227 = arith.negf %226 : vector<8x256xf32>
    %228 = math.exp %227 : vector<8x256xf32>
    %cst_75 = arith.constant 1.000000e+00 : f32
    %229 = vector.broadcast %cst_75 : f32 to vector<8x256xf32>
    %230 = arith.addf %229, %228 : vector<8x256xf32>
    %231 = arith.divf %229, %230 : vector<8x256xf32>
    %232 = vector.extract_strided_slice %231 {offsets = [0, 0], sizes = [8, 64], strides = [1, 1]} : vector<8x256xf32> to vector<8x64xf32>
    %233 = vector.extract_strided_slice %231 {offsets = [0, 64], sizes = [8, 64], strides = [1, 1]} : vector<8x256xf32> to vector<8x64xf32>
    %234 = vector.extract_strided_slice %231 {offsets = [0, 128], sizes = [8, 64], strides = [1, 1]} : vector<8x256xf32> to vector<8x64xf32>
    %cst_76 = arith.constant 2.000000e+00 : f32
    %235 = vector.broadcast %cst_76 : f32 to vector<8x64xf32>
    %236 = arith.mulf %235, %234 : vector<8x64xf32>
    %cst_77 = arith.constant 1.000000e+00 : f32
    %237 = vector.broadcast %cst_77 : f32 to vector<8x64xf32>
    %238 = arith.subf %236, %237 : vector<8x64xf32>
    %239 = vector.extract_strided_slice %231 {offsets = [0, 192], sizes = [8, 64], strides = [1, 1]} : vector<8x256xf32> to vector<8x64xf32>
    %240 = arith.mulf %233, %211 : vector<8x64xf32>
    %241 = arith.mulf %232, %238 : vector<8x64xf32>
    %242 = arith.addf %240, %241 : vector<8x64xf32>
    %cst_78 = arith.constant 2.000000e+00 : f32
    %243 = vector.broadcast %cst_78 : f32 to vector<8x64xf32>
    %244 = arith.mulf %243, %242 : vector<8x64xf32>
    %245 = arith.negf %244 : vector<8x64xf32>
    %246 = math.exp %245 : vector<8x64xf32>
    %cst_79 = arith.constant 1.000000e+00 : f32
    %247 = vector.broadcast %cst_79 : f32 to vector<8x64xf32>
    %248 = arith.addf %247, %246 : vector<8x64xf32>
    %249 = arith.divf %247, %248 : vector<8x64xf32>
    %cst_80 = arith.constant 2.000000e+00 : f32
    %250 = vector.broadcast %cst_80 : f32 to vector<8x64xf32>
    %251 = arith.mulf %250, %249 : vector<8x64xf32>
    %cst_81 = arith.constant 1.000000e+00 : f32
    %252 = vector.broadcast %cst_81 : f32 to vector<8x64xf32>
    %253 = arith.subf %251, %252 : vector<8x64xf32>
    %254 = arith.mulf %239, %253 : vector<8x64xf32>
    %c64 = arith.constant 64 : index
    %c0_82 = arith.constant 0 : index
    %255 = vector.load %arg6[%c64, %c0_82] : memref<128x256xf32, #tpu.memory_space<vmem>>, vector<8x256xf32>
    %cst_83 = arith.constant dense<0.000000e+00> : vector<8x256xf32>
    %256 = tpu.matmul %254, %4, %cst_83 {dimension_numbers = #tpu.dot_dimension_numbers<[1], [0], [0], [1], [0, 0, 1, 1], [], []>} : vector<8x64xf32>, vector<64x256xf32>, vector<8x256xf32> -> vector<8x256xf32>
    %257 = arith.addf %255, %256 : vector<8x256xf32>
    %258 = arith.negf %257 : vector<8x256xf32>
    %259 = math.exp %258 : vector<8x256xf32>
    %cst_84 = arith.constant 1.000000e+00 : f32
    %260 = vector.broadcast %cst_84 : f32 to vector<8x256xf32>
    %261 = arith.addf %260, %259 : vector<8x256xf32>
    %262 = arith.divf %260, %261 : vector<8x256xf32>
    %263 = vector.extract_strided_slice %262 {offsets = [0, 0], sizes = [8, 64], strides = [1, 1]} : vector<8x256xf32> to vector<8x64xf32>
    %264 = vector.extract_strided_slice %262 {offsets = [0, 64], sizes = [8, 64], strides = [1, 1]} : vector<8x256xf32> to vector<8x64xf32>
    %265 = vector.extract_strided_slice %262 {offsets = [0, 128], sizes = [8, 64], strides = [1, 1]} : vector<8x256xf32> to vector<8x64xf32>
    %cst_85 = arith.constant 2.000000e+00 : f32
    %266 = vector.broadcast %cst_85 : f32 to vector<8x64xf32>
    %267 = arith.mulf %266, %265 : vector<8x64xf32>
    %cst_86 = arith.constant 1.000000e+00 : f32
    %268 = vector.broadcast %cst_86 : f32 to vector<8x64xf32>
    %269 = arith.subf %267, %268 : vector<8x64xf32>
    %270 = vector.extract_strided_slice %262 {offsets = [0, 192], sizes = [8, 64], strides = [1, 1]} : vector<8x256xf32> to vector<8x64xf32>
    %271 = arith.mulf %264, %242 : vector<8x64xf32>
    %272 = arith.mulf %263, %269 : vector<8x64xf32>
    %273 = arith.addf %271, %272 : vector<8x64xf32>
    %cst_87 = arith.constant 2.000000e+00 : f32
    %274 = vector.broadcast %cst_87 : f32 to vector<8x64xf32>
    %275 = arith.mulf %274, %273 : vector<8x64xf32>
    %276 = arith.negf %275 : vector<8x64xf32>
    %277 = math.exp %276 : vector<8x64xf32>
    %cst_88 = arith.constant 1.000000e+00 : f32
    %278 = vector.broadcast %cst_88 : f32 to vector<8x64xf32>
    %279 = arith.addf %278, %277 : vector<8x64xf32>
    %280 = arith.divf %278, %279 : vector<8x64xf32>
    %cst_89 = arith.constant 2.000000e+00 : f32
    %281 = vector.broadcast %cst_89 : f32 to vector<8x64xf32>
    %282 = arith.mulf %281, %280 : vector<8x64xf32>
    %cst_90 = arith.constant 1.000000e+00 : f32
    %283 = vector.broadcast %cst_90 : f32 to vector<8x64xf32>
    %284 = arith.subf %282, %283 : vector<8x64xf32>
    %285 = arith.mulf %270, %284 : vector<8x64xf32>
    %c72 = arith.constant 72 : index
    %c0_91 = arith.constant 0 : index
    %286 = vector.load %arg6[%c72, %c0_91] : memref<128x256xf32, #tpu.memory_space<vmem>>, vector<8x256xf32>
    %cst_92 = arith.constant dense<0.000000e+00> : vector<8x256xf32>
    %287 = tpu.matmul %285, %4, %cst_92 {dimension_numbers = #tpu.dot_dimension_numbers<[1], [0], [0], [1], [0, 0, 1, 1], [], []>} : vector<8x64xf32>, vector<64x256xf32>, vector<8x256xf32> -> vector<8x256xf32>
    %288 = arith.addf %286, %287 : vector<8x256xf32>
    %289 = arith.negf %288 : vector<8x256xf32>
    %290 = math.exp %289 : vector<8x256xf32>
    %cst_93 = arith.constant 1.000000e+00 : f32
    %291 = vector.broadcast %cst_93 : f32 to vector<8x256xf32>
    %292 = arith.addf %291, %290 : vector<8x256xf32>
    %293 = arith.divf %291, %292 : vector<8x256xf32>
    %294 = vector.extract_strided_slice %293 {offsets = [0, 0], sizes = [8, 64], strides = [1, 1]} : vector<8x256xf32> to vector<8x64xf32>
    %295 = vector.extract_strided_slice %293 {offsets = [0, 64], sizes = [8, 64], strides = [1, 1]} : vector<8x256xf32> to vector<8x64xf32>
    %296 = vector.extract_strided_slice %293 {offsets = [0, 128], sizes = [8, 64], strides = [1, 1]} : vector<8x256xf32> to vector<8x64xf32>
    %cst_94 = arith.constant 2.000000e+00 : f32
    %297 = vector.broadcast %cst_94 : f32 to vector<8x64xf32>
    %298 = arith.mulf %297, %296 : vector<8x64xf32>
    %cst_95 = arith.constant 1.000000e+00 : f32
    %299 = vector.broadcast %cst_95 : f32 to vector<8x64xf32>
    %300 = arith.subf %298, %299 : vector<8x64xf32>
    %301 = vector.extract_strided_slice %293 {offsets = [0, 192], sizes = [8, 64], strides = [1, 1]} : vector<8x256xf32> to vector<8x64xf32>
    %302 = arith.mulf %295, %273 : vector<8x64xf32>
    %303 = arith.mulf %294, %300 : vector<8x64xf32>
    %304 = arith.addf %302, %303 : vector<8x64xf32>
    %cst_96 = arith.constant 2.000000e+00 : f32
    %305 = vector.broadcast %cst_96 : f32 to vector<8x64xf32>
    %306 = arith.mulf %305, %304 : vector<8x64xf32>
    %307 = arith.negf %306 : vector<8x64xf32>
    %308 = math.exp %307 : vector<8x64xf32>
    %cst_97 = arith.constant 1.000000e+00 : f32
    %309 = vector.broadcast %cst_97 : f32 to vector<8x64xf32>
    %310 = arith.addf %309, %308 : vector<8x64xf32>
    %311 = arith.divf %309, %310 : vector<8x64xf32>
    %cst_98 = arith.constant 2.000000e+00 : f32
    %312 = vector.broadcast %cst_98 : f32 to vector<8x64xf32>
    %313 = arith.mulf %312, %311 : vector<8x64xf32>
    %cst_99 = arith.constant 1.000000e+00 : f32
    %314 = vector.broadcast %cst_99 : f32 to vector<8x64xf32>
    %315 = arith.subf %313, %314 : vector<8x64xf32>
    %316 = arith.mulf %301, %315 : vector<8x64xf32>
    %c80 = arith.constant 80 : index
    %c0_100 = arith.constant 0 : index
    %317 = vector.load %arg6[%c80, %c0_100] : memref<128x256xf32, #tpu.memory_space<vmem>>, vector<8x256xf32>
    %cst_101 = arith.constant dense<0.000000e+00> : vector<8x256xf32>
    %318 = tpu.matmul %316, %4, %cst_101 {dimension_numbers = #tpu.dot_dimension_numbers<[1], [0], [0], [1], [0, 0, 1, 1], [], []>} : vector<8x64xf32>, vector<64x256xf32>, vector<8x256xf32> -> vector<8x256xf32>
    %319 = arith.addf %317, %318 : vector<8x256xf32>
    %320 = arith.negf %319 : vector<8x256xf32>
    %321 = math.exp %320 : vector<8x256xf32>
    %cst_102 = arith.constant 1.000000e+00 : f32
    %322 = vector.broadcast %cst_102 : f32 to vector<8x256xf32>
    %323 = arith.addf %322, %321 : vector<8x256xf32>
    %324 = arith.divf %322, %323 : vector<8x256xf32>
    %325 = vector.extract_strided_slice %324 {offsets = [0, 0], sizes = [8, 64], strides = [1, 1]} : vector<8x256xf32> to vector<8x64xf32>
    %326 = vector.extract_strided_slice %324 {offsets = [0, 64], sizes = [8, 64], strides = [1, 1]} : vector<8x256xf32> to vector<8x64xf32>
    %327 = vector.extract_strided_slice %324 {offsets = [0, 128], sizes = [8, 64], strides = [1, 1]} : vector<8x256xf32> to vector<8x64xf32>
    %cst_103 = arith.constant 2.000000e+00 : f32
    %328 = vector.broadcast %cst_103 : f32 to vector<8x64xf32>
    %329 = arith.mulf %328, %327 : vector<8x64xf32>
    %cst_104 = arith.constant 1.000000e+00 : f32
    %330 = vector.broadcast %cst_104 : f32 to vector<8x64xf32>
    %331 = arith.subf %329, %330 : vector<8x64xf32>
    %332 = vector.extract_strided_slice %324 {offsets = [0, 192], sizes = [8, 64], strides = [1, 1]} : vector<8x256xf32> to vector<8x64xf32>
    %333 = arith.mulf %326, %304 : vector<8x64xf32>
    %334 = arith.mulf %325, %331 : vector<8x64xf32>
    %335 = arith.addf %333, %334 : vector<8x64xf32>
    %cst_105 = arith.constant 2.000000e+00 : f32
    %336 = vector.broadcast %cst_105 : f32 to vector<8x64xf32>
    %337 = arith.mulf %336, %335 : vector<8x64xf32>
    %338 = arith.negf %337 : vector<8x64xf32>
    %339 = math.exp %338 : vector<8x64xf32>
    %cst_106 = arith.constant 1.000000e+00 : f32
    %340 = vector.broadcast %cst_106 : f32 to vector<8x64xf32>
    %341 = arith.addf %340, %339 : vector<8x64xf32>
    %342 = arith.divf %340, %341 : vector<8x64xf32>
    %cst_107 = arith.constant 2.000000e+00 : f32
    %343 = vector.broadcast %cst_107 : f32 to vector<8x64xf32>
    %344 = arith.mulf %343, %342 : vector<8x64xf32>
    %cst_108 = arith.constant 1.000000e+00 : f32
    %345 = vector.broadcast %cst_108 : f32 to vector<8x64xf32>
    %346 = arith.subf %344, %345 : vector<8x64xf32>
    %347 = arith.mulf %332, %346 : vector<8x64xf32>
    %c88 = arith.constant 88 : index
    %c0_109 = arith.constant 0 : index
    %348 = vector.load %arg6[%c88, %c0_109] : memref<128x256xf32, #tpu.memory_space<vmem>>, vector<8x256xf32>
    %cst_110 = arith.constant dense<0.000000e+00> : vector<8x256xf32>
    %349 = tpu.matmul %347, %4, %cst_110 {dimension_numbers = #tpu.dot_dimension_numbers<[1], [0], [0], [1], [0, 0, 1, 1], [], []>} : vector<8x64xf32>, vector<64x256xf32>, vector<8x256xf32> -> vector<8x256xf32>
    %350 = arith.addf %348, %349 : vector<8x256xf32>
    %351 = arith.negf %350 : vector<8x256xf32>
    %352 = math.exp %351 : vector<8x256xf32>
    %cst_111 = arith.constant 1.000000e+00 : f32
    %353 = vector.broadcast %cst_111 : f32 to vector<8x256xf32>
    %354 = arith.addf %353, %352 : vector<8x256xf32>
    %355 = arith.divf %353, %354 : vector<8x256xf32>
    %356 = vector.extract_strided_slice %355 {offsets = [0, 0], sizes = [8, 64], strides = [1, 1]} : vector<8x256xf32> to vector<8x64xf32>
    %357 = vector.extract_strided_slice %355 {offsets = [0, 64], sizes = [8, 64], strides = [1, 1]} : vector<8x256xf32> to vector<8x64xf32>
    %358 = vector.extract_strided_slice %355 {offsets = [0, 128], sizes = [8, 64], strides = [1, 1]} : vector<8x256xf32> to vector<8x64xf32>
    %cst_112 = arith.constant 2.000000e+00 : f32
    %359 = vector.broadcast %cst_112 : f32 to vector<8x64xf32>
    %360 = arith.mulf %359, %358 : vector<8x64xf32>
    %cst_113 = arith.constant 1.000000e+00 : f32
    %361 = vector.broadcast %cst_113 : f32 to vector<8x64xf32>
    %362 = arith.subf %360, %361 : vector<8x64xf32>
    %363 = vector.extract_strided_slice %355 {offsets = [0, 192], sizes = [8, 64], strides = [1, 1]} : vector<8x256xf32> to vector<8x64xf32>
    %364 = arith.mulf %357, %335 : vector<8x64xf32>
    %365 = arith.mulf %356, %362 : vector<8x64xf32>
    %366 = arith.addf %364, %365 : vector<8x64xf32>
    %cst_114 = arith.constant 2.000000e+00 : f32
    %367 = vector.broadcast %cst_114 : f32 to vector<8x64xf32>
    %368 = arith.mulf %367, %366 : vector<8x64xf32>
    %369 = arith.negf %368 : vector<8x64xf32>
    %370 = math.exp %369 : vector<8x64xf32>
    %cst_115 = arith.constant 1.000000e+00 : f32
    %371 = vector.broadcast %cst_115 : f32 to vector<8x64xf32>
    %372 = arith.addf %371, %370 : vector<8x64xf32>
    %373 = arith.divf %371, %372 : vector<8x64xf32>
    %cst_116 = arith.constant 2.000000e+00 : f32
    %374 = vector.broadcast %cst_116 : f32 to vector<8x64xf32>
    %375 = arith.mulf %374, %373 : vector<8x64xf32>
    %cst_117 = arith.constant 1.000000e+00 : f32
    %376 = vector.broadcast %cst_117 : f32 to vector<8x64xf32>
    %377 = arith.subf %375, %376 : vector<8x64xf32>
    %378 = arith.mulf %363, %377 : vector<8x64xf32>
    %c96 = arith.constant 96 : index
    %c0_118 = arith.constant 0 : index
    %379 = vector.load %arg6[%c96, %c0_118] : memref<128x256xf32, #tpu.memory_space<vmem>>, vector<8x256xf32>
    %cst_119 = arith.constant dense<0.000000e+00> : vector<8x256xf32>
    %380 = tpu.matmul %378, %4, %cst_119 {dimension_numbers = #tpu.dot_dimension_numbers<[1], [0], [0], [1], [0, 0, 1, 1], [], []>} : vector<8x64xf32>, vector<64x256xf32>, vector<8x256xf32> -> vector<8x256xf32>
    %381 = arith.addf %379, %380 : vector<8x256xf32>
    %382 = arith.negf %381 : vector<8x256xf32>
    %383 = math.exp %382 : vector<8x256xf32>
    %cst_120 = arith.constant 1.000000e+00 : f32
    %384 = vector.broadcast %cst_120 : f32 to vector<8x256xf32>
    %385 = arith.addf %384, %383 : vector<8x256xf32>
    %386 = arith.divf %384, %385 : vector<8x256xf32>
    %387 = vector.extract_strided_slice %386 {offsets = [0, 0], sizes = [8, 64], strides = [1, 1]} : vector<8x256xf32> to vector<8x64xf32>
    %388 = vector.extract_strided_slice %386 {offsets = [0, 64], sizes = [8, 64], strides = [1, 1]} : vector<8x256xf32> to vector<8x64xf32>
    %389 = vector.extract_strided_slice %386 {offsets = [0, 128], sizes = [8, 64], strides = [1, 1]} : vector<8x256xf32> to vector<8x64xf32>
    %cst_121 = arith.constant 2.000000e+00 : f32
    %390 = vector.broadcast %cst_121 : f32 to vector<8x64xf32>
    %391 = arith.mulf %390, %389 : vector<8x64xf32>
    %cst_122 = arith.constant 1.000000e+00 : f32
    %392 = vector.broadcast %cst_122 : f32 to vector<8x64xf32>
    %393 = arith.subf %391, %392 : vector<8x64xf32>
    %394 = vector.extract_strided_slice %386 {offsets = [0, 192], sizes = [8, 64], strides = [1, 1]} : vector<8x256xf32> to vector<8x64xf32>
    %395 = arith.mulf %388, %366 : vector<8x64xf32>
    %396 = arith.mulf %387, %393 : vector<8x64xf32>
    %397 = arith.addf %395, %396 : vector<8x64xf32>
    %cst_123 = arith.constant 2.000000e+00 : f32
    %398 = vector.broadcast %cst_123 : f32 to vector<8x64xf32>
    %399 = arith.mulf %398, %397 : vector<8x64xf32>
    %400 = arith.negf %399 : vector<8x64xf32>
    %401 = math.exp %400 : vector<8x64xf32>
    %cst_124 = arith.constant 1.000000e+00 : f32
    %402 = vector.broadcast %cst_124 : f32 to vector<8x64xf32>
    %403 = arith.addf %402, %401 : vector<8x64xf32>
    %404 = arith.divf %402, %403 : vector<8x64xf32>
    %cst_125 = arith.constant 2.000000e+00 : f32
    %405 = vector.broadcast %cst_125 : f32 to vector<8x64xf32>
    %406 = arith.mulf %405, %404 : vector<8x64xf32>
    %cst_126 = arith.constant 1.000000e+00 : f32
    %407 = vector.broadcast %cst_126 : f32 to vector<8x64xf32>
    %408 = arith.subf %406, %407 : vector<8x64xf32>
    %409 = arith.mulf %394, %408 : vector<8x64xf32>
    %c104 = arith.constant 104 : index
    %c0_127 = arith.constant 0 : index
    %410 = vector.load %arg6[%c104, %c0_127] : memref<128x256xf32, #tpu.memory_space<vmem>>, vector<8x256xf32>
    %cst_128 = arith.constant dense<0.000000e+00> : vector<8x256xf32>
    %411 = tpu.matmul %409, %4, %cst_128 {dimension_numbers = #tpu.dot_dimension_numbers<[1], [0], [0], [1], [0, 0, 1, 1], [], []>} : vector<8x64xf32>, vector<64x256xf32>, vector<8x256xf32> -> vector<8x256xf32>
    %412 = arith.addf %410, %411 : vector<8x256xf32>
    %413 = arith.negf %412 : vector<8x256xf32>
    %414 = math.exp %413 : vector<8x256xf32>
    %cst_129 = arith.constant 1.000000e+00 : f32
    %415 = vector.broadcast %cst_129 : f32 to vector<8x256xf32>
    %416 = arith.addf %415, %414 : vector<8x256xf32>
    %417 = arith.divf %415, %416 : vector<8x256xf32>
    %418 = vector.extract_strided_slice %417 {offsets = [0, 0], sizes = [8, 64], strides = [1, 1]} : vector<8x256xf32> to vector<8x64xf32>
    %419 = vector.extract_strided_slice %417 {offsets = [0, 64], sizes = [8, 64], strides = [1, 1]} : vector<8x256xf32> to vector<8x64xf32>
    %420 = vector.extract_strided_slice %417 {offsets = [0, 128], sizes = [8, 64], strides = [1, 1]} : vector<8x256xf32> to vector<8x64xf32>
    %cst_130 = arith.constant 2.000000e+00 : f32
    %421 = vector.broadcast %cst_130 : f32 to vector<8x64xf32>
    %422 = arith.mulf %421, %420 : vector<8x64xf32>
    %cst_131 = arith.constant 1.000000e+00 : f32
    %423 = vector.broadcast %cst_131 : f32 to vector<8x64xf32>
    %424 = arith.subf %422, %423 : vector<8x64xf32>
    %425 = vector.extract_strided_slice %417 {offsets = [0, 192], sizes = [8, 64], strides = [1, 1]} : vector<8x256xf32> to vector<8x64xf32>
    %426 = arith.mulf %419, %397 : vector<8x64xf32>
    %427 = arith.mulf %418, %424 : vector<8x64xf32>
    %428 = arith.addf %426, %427 : vector<8x64xf32>
    %cst_132 = arith.constant 2.000000e+00 : f32
    %429 = vector.broadcast %cst_132 : f32 to vector<8x64xf32>
    %430 = arith.mulf %429, %428 : vector<8x64xf32>
    %431 = arith.negf %430 : vector<8x64xf32>
    %432 = math.exp %431 : vector<8x64xf32>
    %cst_133 = arith.constant 1.000000e+00 : f32
    %433 = vector.broadcast %cst_133 : f32 to vector<8x64xf32>
    %434 = arith.addf %433, %432 : vector<8x64xf32>
    %435 = arith.divf %433, %434 : vector<8x64xf32>
    %cst_134 = arith.constant 2.000000e+00 : f32
    %436 = vector.broadcast %cst_134 : f32 to vector<8x64xf32>
    %437 = arith.mulf %436, %435 : vector<8x64xf32>
    %cst_135 = arith.constant 1.000000e+00 : f32
    %438 = vector.broadcast %cst_135 : f32 to vector<8x64xf32>
    %439 = arith.subf %437, %438 : vector<8x64xf32>
    %440 = arith.mulf %425, %439 : vector<8x64xf32>
    %c112 = arith.constant 112 : index
    %c0_136 = arith.constant 0 : index
    %441 = vector.load %arg6[%c112, %c0_136] : memref<128x256xf32, #tpu.memory_space<vmem>>, vector<8x256xf32>
    %cst_137 = arith.constant dense<0.000000e+00> : vector<8x256xf32>
    %442 = tpu.matmul %440, %4, %cst_137 {dimension_numbers = #tpu.dot_dimension_numbers<[1], [0], [0], [1], [0, 0, 1, 1], [], []>} : vector<8x64xf32>, vector<64x256xf32>, vector<8x256xf32> -> vector<8x256xf32>
    %443 = arith.addf %441, %442 : vector<8x256xf32>
    %444 = arith.negf %443 : vector<8x256xf32>
    %445 = math.exp %444 : vector<8x256xf32>
    %cst_138 = arith.constant 1.000000e+00 : f32
    %446 = vector.broadcast %cst_138 : f32 to vector<8x256xf32>
    %447 = arith.addf %446, %445 : vector<8x256xf32>
    %448 = arith.divf %446, %447 : vector<8x256xf32>
    %449 = vector.extract_strided_slice %448 {offsets = [0, 0], sizes = [8, 64], strides = [1, 1]} : vector<8x256xf32> to vector<8x64xf32>
    %450 = vector.extract_strided_slice %448 {offsets = [0, 64], sizes = [8, 64], strides = [1, 1]} : vector<8x256xf32> to vector<8x64xf32>
    %451 = vector.extract_strided_slice %448 {offsets = [0, 128], sizes = [8, 64], strides = [1, 1]} : vector<8x256xf32> to vector<8x64xf32>
    %cst_139 = arith.constant 2.000000e+00 : f32
    %452 = vector.broadcast %cst_139 : f32 to vector<8x64xf32>
    %453 = arith.mulf %452, %451 : vector<8x64xf32>
    %cst_140 = arith.constant 1.000000e+00 : f32
    %454 = vector.broadcast %cst_140 : f32 to vector<8x64xf32>
    %455 = arith.subf %453, %454 : vector<8x64xf32>
    %456 = vector.extract_strided_slice %448 {offsets = [0, 192], sizes = [8, 64], strides = [1, 1]} : vector<8x256xf32> to vector<8x64xf32>
    %457 = arith.mulf %450, %428 : vector<8x64xf32>
    %458 = arith.mulf %449, %455 : vector<8x64xf32>
    %459 = arith.addf %457, %458 : vector<8x64xf32>
    %cst_141 = arith.constant 2.000000e+00 : f32
    %460 = vector.broadcast %cst_141 : f32 to vector<8x64xf32>
    %461 = arith.mulf %460, %459 : vector<8x64xf32>
    %462 = arith.negf %461 : vector<8x64xf32>
    %463 = math.exp %462 : vector<8x64xf32>
    %cst_142 = arith.constant 1.000000e+00 : f32
    %464 = vector.broadcast %cst_142 : f32 to vector<8x64xf32>
    %465 = arith.addf %464, %463 : vector<8x64xf32>
    %466 = arith.divf %464, %465 : vector<8x64xf32>
    %cst_143 = arith.constant 2.000000e+00 : f32
    %467 = vector.broadcast %cst_143 : f32 to vector<8x64xf32>
    %468 = arith.mulf %467, %466 : vector<8x64xf32>
    %cst_144 = arith.constant 1.000000e+00 : f32
    %469 = vector.broadcast %cst_144 : f32 to vector<8x64xf32>
    %470 = arith.subf %468, %469 : vector<8x64xf32>
    %471 = arith.mulf %456, %470 : vector<8x64xf32>
    %c120 = arith.constant 120 : index
    %c0_145 = arith.constant 0 : index
    %472 = vector.load %arg6[%c120, %c0_145] : memref<128x256xf32, #tpu.memory_space<vmem>>, vector<8x256xf32>
    %cst_146 = arith.constant dense<0.000000e+00> : vector<8x256xf32>
    %473 = tpu.matmul %471, %4, %cst_146 {dimension_numbers = #tpu.dot_dimension_numbers<[1], [0], [0], [1], [0, 0, 1, 1], [], []>} : vector<8x64xf32>, vector<64x256xf32>, vector<8x256xf32> -> vector<8x256xf32>
    %474 = arith.addf %472, %473 : vector<8x256xf32>
    %475 = arith.negf %474 : vector<8x256xf32>
    %476 = math.exp %475 : vector<8x256xf32>
    %cst_147 = arith.constant 1.000000e+00 : f32
    %477 = vector.broadcast %cst_147 : f32 to vector<8x256xf32>
    %478 = arith.addf %477, %476 : vector<8x256xf32>
    %479 = arith.divf %477, %478 : vector<8x256xf32>
    %480 = vector.extract_strided_slice %479 {offsets = [0, 0], sizes = [8, 64], strides = [1, 1]} : vector<8x256xf32> to vector<8x64xf32>
    %481 = vector.extract_strided_slice %479 {offsets = [0, 64], sizes = [8, 64], strides = [1, 1]} : vector<8x256xf32> to vector<8x64xf32>
    %482 = vector.extract_strided_slice %479 {offsets = [0, 128], sizes = [8, 64], strides = [1, 1]} : vector<8x256xf32> to vector<8x64xf32>
    %cst_148 = arith.constant 2.000000e+00 : f32
    %483 = vector.broadcast %cst_148 : f32 to vector<8x64xf32>
    %484 = arith.mulf %483, %482 : vector<8x64xf32>
    %cst_149 = arith.constant 1.000000e+00 : f32
    %485 = vector.broadcast %cst_149 : f32 to vector<8x64xf32>
    %486 = arith.subf %484, %485 : vector<8x64xf32>
    %487 = vector.extract_strided_slice %479 {offsets = [0, 192], sizes = [8, 64], strides = [1, 1]} : vector<8x256xf32> to vector<8x64xf32>
    %488 = arith.mulf %481, %459 : vector<8x64xf32>
    %489 = arith.mulf %480, %486 : vector<8x64xf32>
    %490 = arith.addf %488, %489 : vector<8x64xf32>
    %cst_150 = arith.constant 2.000000e+00 : f32
    %491 = vector.broadcast %cst_150 : f32 to vector<8x64xf32>
    %492 = arith.mulf %491, %490 : vector<8x64xf32>
    %493 = arith.negf %492 : vector<8x64xf32>
    %494 = math.exp %493 : vector<8x64xf32>
    %cst_151 = arith.constant 1.000000e+00 : f32
    %495 = vector.broadcast %cst_151 : f32 to vector<8x64xf32>
    %496 = arith.addf %495, %494 : vector<8x64xf32>
    %497 = arith.divf %495, %496 : vector<8x64xf32>
    %cst_152 = arith.constant 2.000000e+00 : f32
    %498 = vector.broadcast %cst_152 : f32 to vector<8x64xf32>
    %499 = arith.mulf %498, %497 : vector<8x64xf32>
    %cst_153 = arith.constant 1.000000e+00 : f32
    %500 = vector.broadcast %cst_153 : f32 to vector<8x64xf32>
    %501 = arith.subf %499, %500 : vector<8x64xf32>
    %502 = arith.mulf %487, %501 : vector<8x64xf32>
    %c0_154 = arith.constant 0 : index
    %c0_155 = arith.constant 0 : index
    %503 = vector.load %arg2[%c0_154, %c0_155] : memref<8x24xf32, #tpu.memory_space<vmem>>, vector<8x24xf32>
    %504 = vector.extract_strided_slice %503 {offsets = [0, 0], sizes = [8, 8], strides = [1, 1]} : vector<8x24xf32> to vector<8x8xf32>
    %505 = vector.extract_strided_slice %503 {offsets = [0, 8], sizes = [8, 8], strides = [1, 1]} : vector<8x24xf32> to vector<8x8xf32>
    %506 = vector.extract_strided_slice %503 {offsets = [0, 16], sizes = [8, 8], strides = [1, 1]} : vector<8x24xf32> to vector<8x8xf32>
    %c0_156 = arith.constant 0 : index
    %c0_157 = arith.constant 0 : index
    %507 = vector.load %arg4[%c0_156, %c0_157] : memref<936x128xf32, #tpu.memory_space<vmem>>, vector<64x64xf32>
    %cst_158 = arith.constant dense<0.000000e+00> : vector<8x64xf32>
    %508 = tpu.matmul %502, %507, %cst_158 {dimension_numbers = #tpu.dot_dimension_numbers<[1], [0], [0], [1], [0, 0, 1, 1], [], []>} : vector<8x64xf32>, vector<64x64xf32>, vector<8x64xf32> -> vector<8x64xf32>
    %c64_159 = arith.constant 64 : index
    %c0_160 = arith.constant 0 : index
    %509 = vector.load %arg4[%c64_159, %c0_160] : memref<936x128xf32, #tpu.memory_space<vmem>>, vector<1x64xf32>
    %510 = vector.broadcast %509 : vector<1x64xf32> to vector<8x64xf32>
    %511 = arith.addf %508, %510 : vector<8x64xf32>
    %cst_161 = arith.constant 0.000000e+00 : f32
    %512 = vector.broadcast %cst_161 : f32 to vector<8x64xf32>
    %513 = arith.maximumf %511, %512 : vector<8x64xf32>
    %c72_162 = arith.constant 72 : index
    %c0_163 = arith.constant 0 : index
    %514 = vector.load %arg4[%c72_162, %c0_163] : memref<936x128xf32, #tpu.memory_space<vmem>>, vector<64x64xf32>
    %cst_164 = arith.constant dense<0.000000e+00> : vector<8x64xf32>
    %515 = tpu.matmul %513, %514, %cst_164 {dimension_numbers = #tpu.dot_dimension_numbers<[1], [0], [0], [1], [0, 0, 1, 1], [], []>} : vector<8x64xf32>, vector<64x64xf32>, vector<8x64xf32> -> vector<8x64xf32>
    %c136 = arith.constant 136 : index
    %c0_165 = arith.constant 0 : index
    %516 = vector.load %arg4[%c136, %c0_165] : memref<936x128xf32, #tpu.memory_space<vmem>>, vector<1x64xf32>
    %517 = vector.broadcast %516 : vector<1x64xf32> to vector<8x64xf32>
    %518 = arith.addf %515, %517 : vector<8x64xf32>
    %cst_166 = arith.constant 0.000000e+00 : f32
    %519 = vector.broadcast %cst_166 : f32 to vector<8x64xf32>
    %520 = arith.maximumf %518, %519 : vector<8x64xf32>
    %c144 = arith.constant 144 : index
    %c0_167 = arith.constant 0 : index
    %521 = vector.load %arg4[%c144, %c0_167] : memref<936x128xf32, #tpu.memory_space<vmem>>, vector<64x16xf32>
    %cst_168 = arith.constant dense<0.000000e+00> : vector<8x16xf32>
    %522 = tpu.matmul %520, %521, %cst_168 {dimension_numbers = #tpu.dot_dimension_numbers<[1], [0], [0], [1], [0, 0, 1, 1], [], []>} : vector<8x64xf32>, vector<64x16xf32>, vector<8x16xf32> -> vector<8x16xf32>
    %523 = vector.extract_strided_slice %522 {offsets = [0, 0], sizes = [8, 8], strides = [1, 1]} : vector<8x16xf32> to vector<8x8xf32>
    %524 = vector.extract_strided_slice %522 {offsets = [0, 8], sizes = [8, 8], strides = [1, 1]} : vector<8x16xf32> to vector<8x8xf32>
    %525 = math.exp %524 : vector<8x8xf32>
    %526 = arith.mulf %525, %504 : vector<8x8xf32>
    %527 = arith.addf %523, %526 : vector<8x8xf32>
    %528 = tpu.concatenate %527, %502 in 1 : vector<8x8xf32>, vector<8x64xf32> -> vector<8x72xf32>
    %c208 = arith.constant 208 : index
    %c0_169 = arith.constant 0 : index
    %529 = vector.load %arg4[%c208, %c0_169] : memref<936x128xf32, #tpu.memory_space<vmem>>, vector<72x72xf32>
    %cst_170 = arith.constant dense<0.000000e+00> : vector<8x72xf32>
    %530 = tpu.matmul %528, %529, %cst_170 {dimension_numbers = #tpu.dot_dimension_numbers<[1], [0], [0], [1], [0, 0, 1, 1], [], []>} : vector<8x72xf32>, vector<72x72xf32>, vector<8x72xf32> -> vector<8x72xf32>
    %c280 = arith.constant 280 : index
    %c0_171 = arith.constant 0 : index
    %531 = vector.load %arg4[%c280, %c0_171] : memref<936x128xf32, #tpu.memory_space<vmem>>, vector<1x72xf32>
    %532 = vector.broadcast %531 : vector<1x72xf32> to vector<8x72xf32>
    %533 = arith.addf %530, %532 : vector<8x72xf32>
    %cst_172 = arith.constant 0.000000e+00 : f32
    %534 = vector.broadcast %cst_172 : f32 to vector<8x72xf32>
    %535 = arith.maximumf %533, %534 : vector<8x72xf32>
    %c288 = arith.constant 288 : index
    %c0_173 = arith.constant 0 : index
    %536 = vector.load %arg4[%c288, %c0_173] : memref<936x128xf32, #tpu.memory_space<vmem>>, vector<72x72xf32>
    %cst_174 = arith.constant dense<0.000000e+00> : vector<8x72xf32>
    %537 = tpu.matmul %535, %536, %cst_174 {dimension_numbers = #tpu.dot_dimension_numbers<[1], [0], [0], [1], [0, 0, 1, 1], [], []>} : vector<8x72xf32>, vector<72x72xf32>, vector<8x72xf32> -> vector<8x72xf32>
    %c360 = arith.constant 360 : index
    %c0_175 = arith.constant 0 : index
    %538 = vector.load %arg4[%c360, %c0_175] : memref<936x128xf32, #tpu.memory_space<vmem>>, vector<1x72xf32>
    %539 = vector.broadcast %538 : vector<1x72xf32> to vector<8x72xf32>
    %540 = arith.addf %537, %539 : vector<8x72xf32>
    %cst_176 = arith.constant 0.000000e+00 : f32
    %541 = vector.broadcast %cst_176 : f32 to vector<8x72xf32>
    %542 = arith.maximumf %540, %541 : vector<8x72xf32>
    %c368 = arith.constant 368 : index
    %c0_177 = arith.constant 0 : index
    %543 = vector.load %arg4[%c368, %c0_177] : memref<936x128xf32, #tpu.memory_space<vmem>>, vector<72x16xf32>
    %cst_178 = arith.constant dense<0.000000e+00> : vector<8x16xf32>
    %544 = tpu.matmul %542, %543, %cst_178 {dimension_numbers = #tpu.dot_dimension_numbers<[1], [0], [0], [1], [0, 0, 1, 1], [], []>} : vector<8x72xf32>, vector<72x16xf32>, vector<8x16xf32> -> vector<8x16xf32>
    %545 = vector.extract_strided_slice %544 {offsets = [0, 0], sizes = [8, 8], strides = [1, 1]} : vector<8x16xf32> to vector<8x8xf32>
    %546 = vector.extract_strided_slice %544 {offsets = [0, 8], sizes = [8, 8], strides = [1, 1]} : vector<8x16xf32> to vector<8x8xf32>
    %547 = math.exp %546 : vector<8x8xf32>
    %548 = arith.mulf %547, %505 : vector<8x8xf32>
    %549 = arith.addf %545, %548 : vector<8x8xf32>
    %550 = tpu.concatenate %528, %549 in 1 : vector<8x72xf32>, vector<8x8xf32> -> vector<8x80xf32>
    %c440 = arith.constant 440 : index
    %c0_179 = arith.constant 0 : index
    %551 = vector.load %arg4[%c440, %c0_179] : memref<936x128xf32, #tpu.memory_space<vmem>>, vector<80x80xf32>
    %cst_180 = arith.constant dense<0.000000e+00> : vector<8x80xf32>
    %552 = tpu.matmul %550, %551, %cst_180 {dimension_numbers = #tpu.dot_dimension_numbers<[1], [0], [0], [1], [0, 0, 1, 1], [], []>} : vector<8x80xf32>, vector<80x80xf32>, vector<8x80xf32> -> vector<8x80xf32>
    %c520 = arith.constant 520 : index
    %c0_181 = arith.constant 0 : index
    %553 = vector.load %arg4[%c520, %c0_181] : memref<936x128xf32, #tpu.memory_space<vmem>>, vector<1x80xf32>
    %554 = vector.broadcast %553 : vector<1x80xf32> to vector<8x80xf32>
    %555 = arith.addf %552, %554 : vector<8x80xf32>
    %cst_182 = arith.constant 0.000000e+00 : f32
    %556 = vector.broadcast %cst_182 : f32 to vector<8x80xf32>
    %557 = arith.maximumf %555, %556 : vector<8x80xf32>
    %c528 = arith.constant 528 : index
    %c0_183 = arith.constant 0 : index
    %558 = vector.load %arg4[%c528, %c0_183] : memref<936x128xf32, #tpu.memory_space<vmem>>, vector<80x80xf32>
    %cst_184 = arith.constant dense<0.000000e+00> : vector<8x80xf32>
    %559 = tpu.matmul %557, %558, %cst_184 {dimension_numbers = #tpu.dot_dimension_numbers<[1], [0], [0], [1], [0, 0, 1, 1], [], []>} : vector<8x80xf32>, vector<80x80xf32>, vector<8x80xf32> -> vector<8x80xf32>
    %c608 = arith.constant 608 : index
    %c0_185 = arith.constant 0 : index
    %560 = vector.load %arg4[%c608, %c0_185] : memref<936x128xf32, #tpu.memory_space<vmem>>, vector<1x80xf32>
    %561 = vector.broadcast %560 : vector<1x80xf32> to vector<8x80xf32>
    %562 = arith.addf %559, %561 : vector<8x80xf32>
    %cst_186 = arith.constant 0.000000e+00 : f32
    %563 = vector.broadcast %cst_186 : f32 to vector<8x80xf32>
    %564 = arith.maximumf %562, %563 : vector<8x80xf32>
    %c616 = arith.constant 616 : index
    %c0_187 = arith.constant 0 : index
    %565 = vector.load %arg4[%c616, %c0_187] : memref<936x128xf32, #tpu.memory_space<vmem>>, vector<80x16xf32>
    %cst_188 = arith.constant dense<0.000000e+00> : vector<8x16xf32>
    %566 = tpu.matmul %564, %565, %cst_188 {dimension_numbers = #tpu.dot_dimension_numbers<[1], [0], [0], [1], [0, 0, 1, 1], [], []>} : vector<8x80xf32>, vector<80x16xf32>, vector<8x16xf32> -> vector<8x16xf32>
    %567 = vector.extract_strided_slice %566 {offsets = [0, 0], sizes = [8, 8], strides = [1, 1]} : vector<8x16xf32> to vector<8x8xf32>
    %568 = vector.extract_strided_slice %566 {offsets = [0, 8], sizes = [8, 8], strides = [1, 1]} : vector<8x16xf32> to vector<8x8xf32>
    %569 = math.exp %568 : vector<8x8xf32>
    %570 = arith.mulf %569, %506 : vector<8x8xf32>
    %571 = arith.addf %567, %570 : vector<8x8xf32>
    %c696 = arith.constant 696 : index
    %c0_189 = arith.constant 0 : index
    %572 = vector.load %arg4[%c696, %c0_189] : memref<936x128xf32, #tpu.memory_space<vmem>>, vector<8x50xf32>
    %cst_190 = arith.constant dense<0.000000e+00> : vector<8x50xf32>
    %573 = tpu.matmul %527, %572, %cst_190 {dimension_numbers = #tpu.dot_dimension_numbers<[1], [0], [0], [1], [0, 0, 1, 1], [], []>} : vector<8x8xf32>, vector<8x50xf32>, vector<8x50xf32> -> vector<8x50xf32>
    %c704 = arith.constant 704 : index
    %c0_191 = arith.constant 0 : index
    %574 = vector.load %arg4[%c704, %c0_191] : memref<936x128xf32, #tpu.memory_space<vmem>>, vector<1x50xf32>
    %575 = vector.broadcast %574 : vector<1x50xf32> to vector<8x50xf32>
    %576 = arith.addf %573, %575 : vector<8x50xf32>
    %cst_192 = arith.constant 0.000000e+00 : f32
    %577 = vector.broadcast %cst_192 : f32 to vector<8x50xf32>
    %578 = arith.maximumf %576, %577 : vector<8x50xf32>
    %c712 = arith.constant 712 : index
    %c0_193 = arith.constant 0 : index
    %579 = vector.load %arg4[%c712, %c0_193] : memref<936x128xf32, #tpu.memory_space<vmem>>, vector<50x50xf32>
    %cst_194 = arith.constant dense<0.000000e+00> : vector<8x50xf32>
    %580 = tpu.matmul %578, %579, %cst_194 {dimension_numbers = #tpu.dot_dimension_numbers<[1], [0], [0], [1], [0, 0, 1, 1], [], []>} : vector<8x50xf32>, vector<50x50xf32>, vector<8x50xf32> -> vector<8x50xf32>
    %c768 = arith.constant 768 : index
    %c0_195 = arith.constant 0 : index
    %581 = vector.load %arg4[%c768, %c0_195] : memref<936x128xf32, #tpu.memory_space<vmem>>, vector<1x50xf32>
    %582 = vector.broadcast %581 : vector<1x50xf32> to vector<8x50xf32>
    %583 = arith.addf %580, %582 : vector<8x50xf32>
    %cst_196 = arith.constant 0.000000e+00 : f32
    %584 = vector.broadcast %cst_196 : f32 to vector<8x50xf32>
    %585 = arith.maximumf %583, %584 : vector<8x50xf32>
    %c776 = arith.constant 776 : index
    %c0_197 = arith.constant 0 : index
    %586 = vector.load %arg4[%c776, %c0_197] : memref<936x128xf32, #tpu.memory_space<vmem>>, vector<50x16xf32>
    %cst_198 = arith.constant dense<0.000000e+00> : vector<8x16xf32>
    %587 = tpu.matmul %585, %586, %cst_198 {dimension_numbers = #tpu.dot_dimension_numbers<[1], [0], [0], [1], [0, 0, 1, 1], [], []>} : vector<8x50xf32>, vector<50x16xf32>, vector<8x16xf32> -> vector<8x16xf32>
    %588 = tpu.concatenate %527, %549, %571 in 1 : vector<8x8xf32>, vector<8x8xf32>, vector<8x8xf32> -> vector<8x24xf32>
    %c832 = arith.constant 832 : index
    %c0_199 = arith.constant 0 : index
    %589 = vector.load %arg4[%c832, %c0_199] : memref<936x128xf32, #tpu.memory_space<vmem>>, vector<24x64xf32>
    %cst_200 = arith.constant dense<0.000000e+00> : vector<8x64xf32>
    %590 = tpu.matmul %588, %589, %cst_200 {dimension_numbers = #tpu.dot_dimension_numbers<[1], [0], [0], [1], [0, 0, 1, 1], [], []>} : vector<8x24xf32>, vector<24x64xf32>, vector<8x64xf32> -> vector<8x64xf32>
    %c856 = arith.constant 856 : index
    %c0_201 = arith.constant 0 : index
    %591 = vector.load %arg4[%c856, %c0_201] : memref<936x128xf32, #tpu.memory_space<vmem>>, vector<1x64xf32>
    %592 = vector.broadcast %591 : vector<1x64xf32> to vector<8x64xf32>
    %593 = arith.addf %590, %592 : vector<8x64xf32>
    %cst_202 = arith.constant 0.000000e+00 : f32
    %594 = vector.broadcast %cst_202 : f32 to vector<8x64xf32>
    %595 = arith.maximumf %593, %594 : vector<8x64xf32>
    %c864 = arith.constant 864 : index
    %c0_203 = arith.constant 0 : index
    %596 = vector.load %arg4[%c864, %c0_203] : memref<936x128xf32, #tpu.memory_space<vmem>>, vector<64x32xf32>
    %cst_204 = arith.constant dense<0.000000e+00> : vector<8x32xf32>
    %597 = tpu.matmul %595, %596, %cst_204 {dimension_numbers = #tpu.dot_dimension_numbers<[1], [0], [0], [1], [0, 0, 1, 1], [], []>} : vector<8x64xf32>, vector<64x32xf32>, vector<8x32xf32> -> vector<8x32xf32>
    %c928 = arith.constant 928 : index
    %c0_205 = arith.constant 0 : index
    %598 = vector.load %arg4[%c928, %c0_205] : memref<936x128xf32, #tpu.memory_space<vmem>>, vector<1x32xf32>
    %599 = vector.broadcast %598 : vector<1x32xf32> to vector<8x32xf32>
    %600 = arith.addf %597, %599 : vector<8x32xf32>
    %cst_206 = arith.constant 0.000000e+00 : f32
    %601 = vector.broadcast %cst_206 : f32 to vector<8x8xf32>
    %602 = tpu.concatenate %600, %522, %544, %566, %587, %549, %571, %527, %601 in 1 : vector<8x32xf32>, vector<8x16xf32>, vector<8x16xf32>, vector<8x16xf32>, vector<8x16xf32>, vector<8x8xf32>, vector<8x8xf32>, vector<8x8xf32>, vector<8x8xf32> -> vector<8x128xf32>
    %c0_207 = arith.constant 0 : index
    %c0_208 = arith.constant 0 : index
    %603 = vector.load %arg5[%c0_207, %c0_208] : memref<8x128xf32, #tpu.memory_space<vmem>>, vector<8x128xf32>
    tpu.vector_store %arg5[%c0_207, %c0_208], %602 {strides = array<i32>} : memref<8x128xf32, #tpu.memory_space<vmem>>, vector<8x128xf32>,
    return
  }
  func.func @transform_0(%arg0: i32) -> (i32, i32) {
    %c0_i32 = arith.constant 0 : i32
    %c0_i32_0 = arith.constant 0 : i32
    %c0_i32_1 = arith.constant 0 : i32
    return %c0_i32, %c0_i32_0 : i32, i32
  }
  func.func @transform_1(%arg0: i32) -> (i32, i32) {
    %c0_i32 = arith.constant 0 : i32
    %c0_i32_0 = arith.constant 0 : i32
    %c0_i32_1 = arith.constant 0 : i32
    return %c0_i32, %c0_i32_0 : i32, i32
  }
  func.func @transform_2(%arg0: i32) -> (i32, i32) {
    %c0_i32 = arith.constant 0 : i32
    %c0_i32_0 = arith.constant 0 : i32
    %c0_i32_1 = arith.constant 0 : i32
    return %c0_i32, %c0_i32_0 : i32, i32
  }
  func.func @transform_3(%arg0: i32) -> (i32, i32) {
    %c0_i32 = arith.constant 0 : i32
    %c0_i32_0 = arith.constant 0 : i32
    %c0_i32_1 = arith.constant 0 : i32
    return %c0_i32, %c0_i32_0 : i32, i32
  }
  func.func @transform_4(%arg0: i32) -> (i32, i32) {
    %c0_i32 = arith.constant 0 : i32
    %c0_i32_0 = arith.constant 0 : i32
    %c0_i32_1 = arith.constant 0 : i32
    return %c0_i32, %c0_i32_0 : i32, i32
  }
}

</mosaic_0001>

<bundles_post_ra>
// kernel: tpu_custom_call.1
= control target key start
LH: loop header
LB: loop body
LE: loop exit
PB: predicated region body
PF: predicated region fallthrough
CT: control target
= control target key end

     0   :  { %9 = vsyncpa [#allocation4], 0  ;;  %s5170_s0 = inlined_call_operand.vmem [shape: f32[128,8], index: 0, kind: input, shape index: {}]   ;;  %s5171_s1 = inlined_call_operand.vmem [shape: f32[8,24], index: 1, kind: input, shape index: {}]   ;;  %s5172_s2 = inlined_call_operand.hbm [shape: f32[72,256], index: 2, kind: input, shape index: {}]   ;;  %s5173_s3 = inlined_call_operand.hbm [shape: f32[936,128], index: 3, kind: input, shape index: {}]   ;;  %s5174_s4 = inlined_call_operand.hbm [shape: f32[8,128], index: 4, kind: output, shape index: {}]  }
   0x1   :  { %10 = vsyncpa [#allocation7], 0 }
   0x2   :  { %11 = vsyncpa [#allocation5], 0  ;;  %s4648_s15 = smov [#allocation3]   ;;  %s4576_s19 = scalar_lea.hbm %s5172_s2, 2304 }
   0x3   :  { %s21_s16 = sshll.u32 %s4648_s15, 4  ;;  %p4577_p0 = scmp.ne.s32.totalorder %s5172_s2, %s4576_s19  ;;  %s22_s16 = int_to_ptr.vmem [resolvable:$true] %s21_s16 }
   0x4   :  { %p4580_p1 = scmp.lt.u32.totalorder %s4576_s19, %s5172_s2 }
   0x6   :  { %p4582_p2 = pnand %p4580_p1, %p4577_p0 }
   0x8   :  { %4585 = shalt.err (!%p4582_p2)
}
   0x9   :  { %s4586_s24 = scalar_lea.vmem %s22_s16, 2304  ;;  %p4591_p4 = scmp.lt.s32.totalorder %s22_s16, %s22_s16 }
   0xa   :  { %p4587_p3 = scmp.ne.s32.totalorder %s22_s16, %s4586_s24  ;;  %p4592_p5 = scmp.lt.s32.totalorder %s4586_s24, %s4586_s24 }
   0xc   :  { %p4593_p6 = por %p4592_p5, %p4591_p4 }
   0xe   :  { %p4594_p7 = pnand %p4593_p6, %p4587_p3 }
  0x10   :  { %4597 = shalt.err (!%p4594_p7)
}
  0x11   :  { %s4649_s25 = smov 256   ;;  %s4650_s26 = smov 16  }
  0x12   :  { %27 = dma.hbm_to_vmem [thread:$0]  %s5172_s2, 2304, %s22_s16, [#allocation4], %s4649_s25, %s4649_s25, %s4650_s26  }
  0x13   :  { %s4651_s29 = smov [#allocation6]   ;;  %s4598_s7 = scalar_lea.hbm %s5173_s3, 14976 }
  0x14   :  { %s33_s30 = sshll.u32 %s4651_s29, 4  ;;  %p4599_p8 = scmp.ne.s32.totalorder %s5173_s3, %s4598_s7  ;;  %s34_s30 = int_to_ptr.vmem [resolvable:$true] %s33_s30 }
  0x15   :  { %p4602_p9 = scmp.lt.u32.totalorder %s4598_s7, %s5173_s3 }
  0x17   :  { %p4604_p10 = pnand %p4602_p9, %p4599_p8 }
  0x19   :  { %4607 = shalt.err (!%p4604_p10)
}
  0x1a   :  { %s4608_s12 = scalar_lea.vmem %s34_s30, 14976  ;;  %p4613_p12 = scmp.lt.s32.totalorder %s34_s30, %s34_s30 }
  0x1b   :  { %p4609_p11 = scmp.ne.s32.totalorder %s34_s30, %s4608_s12  ;;  %p4614_p13 = scmp.lt.s32.totalorder %s4608_s12, %s4608_s12 }
  0x1d   :  { %p4615_p0 = por %p4614_p13, %p4613_p12 }
  0x1f   :  { %p4616_p1 = pnand %p4615_p0, %p4609_p11 }
  0x21   :  { %4619 = shalt.err (!%p4616_p1)
}
  0x22   :  { %s4652_s2 = smov 128   ;;  %s4653_s13 = smov 8  }
  0x23   :  { %39 = dma.hbm_to_vmem [thread:$0]  %s5173_s3, 14976, %s34_s30, [#allocation7], %s4652_s2, %s4652_s2, %s4653_s13  }
  0x24   :  { %4642 = dma.done.wait [#allocation4], 2304  }
  0x25   :  { %4643 = vsyncadd [#allocation4], 4294964992 }
  0x26   :  { %4644 = dma.done.wait [#allocation7], 14976  }
  0x27   :  { %4645 = vsyncadd [#allocation7], 4294952320  ;;  %v4654_v0 = vmov 0.0   ;;  %v63_v1 = vld [vmem:[#allocation3 + $0x8] sm:$0xff]  ;;  %v62_v2 = vld [vmem:[#allocation3] sm:$0xff]  ;;  %vm64_vm0 = vcmask 64512  }
  0x28   :  { %177 = vmatprep.mubr.f32.mxu0 %v4654_v0  ;;  %201 = vmatprep.mubr.f32.mxu1 %v4654_v0  ;;  %v46_v3 = vld [vmem:[%s5170_s0] sm:$0xff]  ;;  %v309_v5 = vld [vmem:[#allocation3 + $0x28] sm:$0xff]  ;;  %v306_v6 = vld [vmem:[#allocation3 + $0x10] sm:$0xff]  ;;  %s4655_s23 = smov 64   ;;  %vm324_vm1 = vcmask 523264   ;;  %vm4657_vm2 = vmmov 0  }
  0x29   :  { %113 = vmatprep.subr.mxu0 %v63_v1  ;;  %v307_v4 = vld [vmem:[#allocation3 + $0x18] sm:$0xff]  ;;  %4325 = vmatprep.subr.mxu1 %v63_v1  ;;  %v308_v8 = vld [vmem:[#allocation3 + $0x20] sm:$0xff]  ;;  %v313_v11 = vld [vmem:[#allocation3 + $0x48] sm:$0xff]  ;;  %s4659_s24 = smov 120   ;;  %vm2385_vm3 = vcmask 588800   ;;  %s4660_s25 = smov 32  }
  0x2a   :  { %114 = vmatpush1.msra.mxu0 %v62_v2  ;;  %v4723_v7 = vpack.c.bf16 %v309_v5, %v307_v4  ;;  %v311_v9 = vld [vmem:[#allocation3 + $0x38] sm:$0xff]  ;;  %4326 = vmatpush1.msra.mxu1 %v62_v2  ;;  %v4726_v10 = vpack.c.bf16 %v308_v8, %v306_v6  ;;  %v310_v12 = vld [vmem:[#allocation3 + $0x30] sm:$0xff]  ;;  %v312_v13 = vld [vmem:[#allocation3 + $0x40] sm:$0xff]  ;;  %vm2658_vm4 = vcmask 654336   ;;  %vm3012_vm5 = vcmask 1041408   ;;  %s4662_s27 = smov 112  }
  0x2b   :  { %3405 = vmatmul.mubr.msk.f32.vlgmr.msra.gmra.mrb[0].mxu0 %vm64_vm0, %v46_v3  ;;  %v47_v14 = vld [vmem:[%s5170_s0 + $0x8] sm:$0xff]  ;;  %v4733_v15 = vpack.c.bf16 %v313_v11, %v311_v9  ;;  %v315_v16 = vld [vmem:[#allocation3 + $0x58] sm:$0xff]  ;;  %v317_v17 = vld [vmem:[#allocation3 + $0x68] sm:$0xff]  ;;  %v4736_v18 = vpack.c.bf16 %v312_v13, %v310_v12  ;;  %vm3008_vm6 = vcmask 408576   ;;  %vm3178_vm7 = vcmask 130048   ;;  %s4665_s28 = smov 104  }
  0x2c   :  { %3920 = vmatprep.subr.bf16.mxu0 %v4723_v7  ;;  %183 = vmatprep.mubr.f32.mxu0 %v4654_v0  ;;  %v4739_v19 = vpack.c.bf16 %v317_v17, %v315_v16  ;;  %v314_v20 = vld [vmem:[#allocation3 + $0x50] sm:$0xff]  ;;  %v316_v21 = vld [vmem:[#allocation3 + $0x60] sm:$0xff]  ;;  %v319_v22 = vld [vmem:[#allocation3 + $0x78] sm:$0xff]  ;;  %vm3188_vm8 = vcmask 195584   ;;  %vm3374_vm9 = vcmask 261120   ;;  %vm3376_vm10 = vcmask 392192  }
  0x2d   :  { %3922 = vmatpush1.bf16.msra.mxu0 %v4726_v10  ;;  %v321_v23 = vld [vmem:[#allocation3 + $0x88] sm:$0xff]  ;;  %v4747_v25 = vpack.c.bf16 %v316_v21, %v314_v20  ;;  %v318_v27 = vld [vmem:[#allocation3 + $0x70] sm:$0xff]  ;;  %v320_v28 = vld [vmem:[#allocation3 + $0x80] sm:$0xff]  ;;  %vm3380_vm11 = vcmask 785408   ;;  %vm3382_vm12 = vcmask 850944   ;;  %vm3384_vm13 = vcmask 916480  }
  0x2e   :  { %3924 = vmatprep.subr.bf16.mxu0 %v4733_v15  ;;  %v48_v24 = vld [vmem:[%s5170_s0 + $0x10] sm:$0xff]  ;;  %v4750_v26 = vpack.c.bf16 %v321_v23, %v319_v22  ;;  %v49_v29 = vld [vmem:[%s5170_s0 + $0x18] sm:$0xff]  ;;  %v4758_v30 = vpack.c.bf16 %v320_v28, %v318_v27  ;;  %s4666_s29 = smov [#allocation8]   ;;  %vm3386_vm14 = vcmask 982016  }
  0x2f   :  { %3406 = vmatmul.mubr.msk.f32.gmra.mrb[2].mxu0 %vm64_vm0, %v47_v14  ;;  %s3395_s30 = sshll.u32 %s4666_s29, 4  ;;  %s3396_s30 = int_to_ptr.vmem [resolvable:$true] %s3395_s30 }
  0x30   :  { %189 = vmatprep.mubr.f32.mxu0 %v4654_v0  ;;  %s4620_s5 = scalar_lea.vmem %s3396_s30, 128  ;;  %p4625_p3 = scmp.lt.s32.totalorder %s3396_s30, %s3396_s30 }
  0x31   :  { %3926 = vmatpush1.bf16.msra.mxu0 %v4736_v18  ;;  %p4621_p2 = scmp.ne.s32.totalorder %s3396_s30, %s4620_s5  ;;  %p4626_p4 = scmp.lt.s32.totalorder %s4620_s5, %s4620_s5 }
  0x32   :  { %3928 = vmatprep.subr.bf16.mxu0 %v4739_v19 }
  0x33   :  { %3407 = vmatmul.mubr.msk.f32.gmra.mrb[4].mxu0 %vm64_vm0, %v48_v24  ;;  %p4627_p5 = por %p4626_p4, %p4625_p3 }
  0x34   :  { %195 = vmatprep.mubr.f32.mxu0 %v4654_v0 }
  0x35   :  { %3930 = vmatpush1.bf16.msra.mxu0 %v4747_v25  ;;  %p4628_p6 = pnand %p4627_p5, %p4621_p2 }
  0x36   :  { %3932 = vmatprep.subr.bf16.mxu0 %v4750_v26 }
  0x37   :  { %3408 = vmatmul.mubr.msk.f32.gmra.mrb[6].mxu0 %vm64_vm0, %v49_v29 }
  0x38   :  { %392 = vmatprep.mubr.f32.mxu0 %v4654_v0 }
  0x39   :  { %3934 = vmatpush1.bf16.msra.mxu0 %v4758_v30 }
  0x3a   :  { %3936 = vmatprep.subr.bf16.mxu0 %v4723_v7 }
  0x3c   :  { %393 = vmatmul.mubr.f32.vlgmr.msra.gmra.mrb[0].mxu0 %v4654_v0 }
  0x3d   :  { %3938 = vmatpush1.bf16.msra.mxu0 %v4726_v10  ;;  %503 = vmatprep.mubr.f32.mxu0 %v4654_v0 }
  0x3e   :  { %3940 = vmatprep.subr.bf16.mxu0 %v4733_v15 }
  0x41   :  { %3942 = vmatpush1.bf16.msra.mxu0 %v4736_v18 }
  0x42   :  { %3944 = vmatprep.subr.bf16.mxu0 %v4739_v19 }
  0x45   :  { %3946 = vmatpush1.bf16.msra.mxu0 %v4747_v25 }
  0x46   :  { %3948 = vmatprep.subr.bf16.mxu0 %v4750_v26 }
  0x49   :  { %3950 = vmatpush1.bf16.msra.mxu0 %v4758_v30 }
  0x4a   :  { %3952 = vmatprep.subr.bf16.mxu0 %v4723_v7 }
 0x10f   :  { %v394_v31 = vpop.f32.mrb[0].mxu0 }
 0x110   :  { %v3421_v32 = vmul.f32 -1.442695, %v394_v31  ;;  %v396_v33 = vpop.f32.mrb[1].mxu0 }
 0x111   :  { %v3422_v34 = vmul.f32 -1.442695, %v396_v33 }
 0x112   :  { %4378 = vpow2.f32 %v3421_v32 }
 0x113   :  { %4380 = vpow2.f32 %v3422_v34 }
 0x11c   :  { %v4379_v35 = vpop.eup %4378 }
 0x11d   :  { %v4381_v36 = vpop.eup %4380  ;;  %v407_v38 = vadd.f32 1.0, %v4379_v35 }
 0x11e   :  { %v408_v37 = vadd.f32 1.0, %v4381_v36 }
 0x120   :  { %4382 = vrcp.f32 %v408_v37 }
 0x121   :  { %4384 = vrcp.f32 %v407_v38 }
 0x12a   :  { %v4383_v39 = vpop.eup %4382 }
 0x12b   :  { %v413_v40 = vmul.f32 2.0, %v4383_v39  ;;  %v4385_v42 = vpop.eup %4384 }
 0x12c   :  { %v415_v44 = vmul.f32 0.0, %v4385_v42 }
 0x12d   :  { %v3423_v41 = vadd.f32 -1.0, %v413_v40 }
 0x12f   :  { %v416_v43 = vmul.f32 %v4385_v42, %v3423_v41 }
 0x131   :  { %418 = vrot.lane.b32.xlu0 %v416_v43, %s4655_s23 }
 0x1a3   :  { %v419_v45 = vpop.permute.xlu0 %418 }
 0x1a4   :  { %v421_v46 = vadd.f32 %v419_v45, %v415_v44 }
 0x1a6   :  { %v3424_v47 = vmul.f32 -2.0, %v421_v46 }
 0x1a8   :  { %v424_v48 = vmul.f32 1.442695, %v3424_v47 }
 0x1aa   :  { %4386 = vpow2.f32 %v424_v48 }
 0x1b4   :  { %v4387_v49 = vpop.eup %4386 }
 0x1b5   :  { %v426_v50 = vadd.f32 1.0, %v4387_v49 }
 0x1b7   :  { %4388 = vrcp.f32 %v426_v50 }
 0x1c1   :  { %v4389_v51 = vpop.eup %4388 }
 0x1c2   :  { %v429_v52 = vmul.f32 2.0, %v4389_v51 }
 0x1c4   :  { %v3425_v53 = vadd.f32 -1.0, %v429_v52 }
 0x1c6   :  { %v431_v54 = vmul.f32 %v4383_v39, %v3425_v53 }
 0x1c8   :  { %435 = vrot.lane.b32.xlu0 %v431_v54, %s4655_s23 }
 0x23a   :  { %v436_v55 = vpop.permute.xlu0 %435 }
 0x23b   :  { %3426 = vmatmul.mubr.msk.f32.vlgmr.msra.gmra.mrb[2].mxu0 %vm324_vm1, %v436_v55 }
 0x23c   :  { %3954 = vmatpush1.bf16.msra.mxu0 %v4726_v10  ;;  %614 = vmatprep.mubr.f32.mxu0 %v4654_v0 }
 0x23d   :  { %3956 = vmatprep.subr.bf16.mxu0 %v4733_v15 }
 0x240   :  { %3958 = vmatpush1.bf16.msra.mxu0 %v4736_v18 }
 0x241   :  { %3960 = vmatprep.subr.bf16.mxu0 %v4739_v19 }
 0x244   :  { %3962 = vmatpush1.bf16.msra.mxu0 %v4747_v25 }
 0x245   :  { %3964 = vmatprep.subr.bf16.mxu0 %v4750_v26 }
 0x248   :  { %3966 = vmatpush1.bf16.msra.mxu0 %v4758_v30 }
 0x249   :  { %3968 = vmatprep.subr.bf16.mxu0 %v4723_v7 }
 0x30e   :  { %v505_v56 = vpop.f32.mrb[2].mxu0 }
 0x30f   :  { %v3427_v57 = vmul.f32 -1.442695, %v505_v56  ;;  %v507_v58 = vpop.f32.mrb[3].mxu0 }
 0x310   :  { %v3428_v59 = vmul.f32 -1.442695, %v507_v58 }
 0x311   :  { %4390 = vpow2.f32 %v3427_v57 }
 0x312   :  { %4392 = vpow2.f32 %v3428_v59 }
 0x31b   :  { %v4391_v60 = vpop.eup %4390 }
 0x31c   :  { %v4393_v61 = vpop.eup %4392  ;;  %v518_v63 = vadd.f32 1.0, %v4391_v60 }
 0x31d   :  { %v519_v62 = vadd.f32 1.0, %v4393_v61 }
 0x31f   :  { %4394 = vrcp.f32 %v519_v62 }
 0x320   :  { %4396 = vrcp.f32 %v518_v63 }
 0x329   :  { %v4395_v1 = vpop.eup %4394 }
 0x32a   :  { %v524_v2 = vmul.f32 2.0, %v4395_v1  ;;  %v4397_v4 = vpop.eup %4396 }
 0x32b   :  { %v526_v6 = vmul.f32 %v4397_v4, %v421_v46 }
 0x32c   :  { %v3429_v3 = vadd.f32 -1.0, %v524_v2 }
 0x32e   :  { %v527_v5 = vmul.f32 %v4397_v4, %v3429_v3 }
 0x330   :  { %529 = vrot.lane.b32.xlu1 %v527_v5, %s4655_s23 }
 0x3a2   :  { %v530_v8 = vpop.permute.xlu1 %529 }
 0x3a3   :  { %v532_v9 = vadd.f32 %v530_v8, %v526_v6 }
 0x3a5   :  { %v3430_v11 = vmul.f32 -2.0, %v532_v9 }
 0x3a7   :  { %v535_v12 = vmul.f32 1.442695, %v3430_v11 }
 0x3a9   :  { %4398 = vpow2.f32 %v535_v12 }
 0x3b3   :  { %v4399_v13 = vpop.eup %4398 }
 0x3b4   :  { %v537_v14 = vadd.f32 1.0, %v4399_v13 }
 0x3b6   :  { %4400 = vrcp.f32 %v537_v14 }
 0x3c0   :  { %v4401_v16 = vpop.eup %4400 }
 0x3c1   :  { %v540_v17 = vmul.f32 2.0, %v4401_v16 }
 0x3c3   :  { %v3431_v20 = vadd.f32 -1.0, %v540_v17 }
 0x3c5   :  { %v542_v21 = vmul.f32 %v4395_v1, %v3431_v20 }
 0x3c7   :  { %546 = vrot.lane.b32.xlu1 %v542_v21, %s4655_s23 }
 0x439   :  { %v547_v22 = vpop.permute.xlu1 %546 }
 0x43a   :  { %3432 = vmatmul.mubr.msk.f32.vlgmr.msra.gmra.mrb[4].mxu0 %vm324_vm1, %v547_v22 }
 0x43b   :  { %3970 = vmatpush1.bf16.msra.mxu0 %v4726_v10  ;;  %725 = vmatprep.mubr.f32.mxu0 %v4654_v0 }
 0x43c   :  { %3972 = vmatprep.subr.bf16.mxu0 %v4733_v15 }
 0x43f   :  { %3974 = vmatpush1.bf16.msra.mxu0 %v4736_v18 }
 0x440   :  { %3976 = vmatprep.subr.bf16.mxu0 %v4739_v19 }
 0x443   :  { %3978 = vmatpush1.bf16.msra.mxu0 %v4747_v25 }
 0x444   :  { %3980 = vmatprep.subr.bf16.mxu0 %v4750_v26 }
 0x447   :  { %3982 = vmatpush1.bf16.msra.mxu0 %v4758_v30 }
 0x448   :  { %3984 = vmatprep.subr.bf16.mxu0 %v4723_v7 }
 0x50d   :  { %v616_v23 = vpop.f32.mrb[4].mxu0 }
 0x50e   :  { %v3433_v24 = vmul.f32 -1.442695, %v616_v23  ;;  %v618_v27 = vpop.f32.mrb[5].mxu0 }
 0x50f   :  { %v3434_v28 = vmul.f32 -1.442695, %v618_v27 }
 0x510   :  { %4402 = vpow2.f32 %v3433_v24 }
 0x511   :  { %4404 = vpow2.f32 %v3434_v28 }
 0x51a   :  { %v4403_v29 = vpop.eup %4402 }
 0x51b   :  { %v4405_v31 = vpop.eup %4404  ;;  %v629_v33 = vadd.f32 1.0, %v4403_v29 }
 0x51c   :  { %v630_v32 = vadd.f32 1.0, %v4405_v31 }
 0x51e   :  { %4406 = vrcp.f32 %v630_v32 }
 0x51f   :  { %4408 = vrcp.f32 %v629_v33 }
 0x528   :  { %v4407_v34 = vpop.eup %4406 }
 0x529   :  { %v635_v35 = vmul.f32 2.0, %v4407_v34  ;;  %v4409_v37 = vpop.eup %4408 }
 0x52a   :  { %v637_v39 = vmul.f32 %v4409_v37, %v532_v9  ;;  %v50_v9 = vld [vmem:[%s5170_s0 + $0x20] sm:$0xff] }
 0x52b   :  { %v3435_v36 = vadd.f32 -1.0, %v635_v35  ;;  %3409 = vmatmul.mubr.msk.f32.vlgmr.msra.gmra.mrb[0].mxu1 %vm64_vm0, %v50_v9 }
 0x52c   :  { %207 = vmatprep.mubr.f32.mxu1 %v4654_v0 }
 0x52d   :  { %v638_v38 = vmul.f32 %v4409_v37, %v3435_v36 }
 0x52f   :  { %640 = vrot.lane.b32.xlu0 %v638_v38, %s4655_s23 }
 0x5a1   :  { %v641_v40 = vpop.permute.xlu0 %640 }
 0x5a2   :  { %v643_v41 = vadd.f32 %v641_v40, %v637_v39 }
 0x5a4   :  { %v3436_v42 = vmul.f32 -2.0, %v643_v41 }
 0x5a6   :  { %v646_v43 = vmul.f32 1.442695, %v3436_v42 }
 0x5a8   :  { %4410 = vpow2.f32 %v646_v43 }
 0x5b2   :  { %v4411_v44 = vpop.eup %4410 }
 0x5b3   :  { %v648_v45 = vadd.f32 1.0, %v4411_v44 }
 0x5b5   :  { %4412 = vrcp.f32 %v648_v45 }
 0x5bf   :  { %v4413_v46 = vpop.eup %4412 }
 0x5c0   :  { %v651_v47 = vmul.f32 2.0, %v4413_v46  ;;  %v51_v46 = vld [vmem:[%s5170_s0 + $0x28] sm:$0xff] }
 0x5c1   :  { %3410 = vmatmul.mubr.msk.f32.gmra.mrb[2].mxu1 %vm64_vm0, %v51_v46 }
 0x5c2   :  { %v3437_v48 = vadd.f32 -1.0, %v651_v47  ;;  %213 = vmatprep.mubr.f32.mxu1 %v4654_v0 }
 0x5c4   :  { %v653_v49 = vmul.f32 %v4407_v34, %v3437_v48 }
 0x5c6   :  { %657 = vrot.lane.b32.xlu1 %v653_v49, %s4655_s23 }
 0x5fe   :  { %v203_v17 = vpop.f32.mrb[0].mxu1 }
 0x5ff   :  { %v205_v20 = vpop.f32.mrb[1].mxu1 }
 0x638   :  { %v658_v50 = vpop.permute.xlu1 %657 }
 0x639   :  { %3438 = vmatmul.mubr.msk.f32.vlgmr.msra.gmra.mrb[6].mxu0 %vm324_vm1, %v658_v50 }
 0x63a   :  { %3986 = vmatpush1.bf16.msra.mxu0 %v4726_v10  ;;  %836 = vmatprep.mubr.f32.mxu0 %v4654_v0 }
 0x63b   :  { %3988 = vmatprep.subr.bf16.mxu0 %v4733_v15 }
 0x63e   :  { %3990 = vmatpush1.bf16.msra.mxu0 %v4736_v18 }
 0x63f   :  { %3992 = vmatprep.subr.bf16.mxu0 %v4739_v19 }
 0x642   :  { %3994 = vmatpush1.bf16.msra.mxu0 %v4747_v25 }
 0x643   :  { %3996 = vmatprep.subr.bf16.mxu0 %v4750_v26 }
 0x646   :  { %3998 = vmatpush1.bf16.msra.mxu0 %v4758_v30 }
 0x647   :  { %4000 = vmatprep.subr.bf16.mxu0 %v4723_v7 }
 0x70c   :  { %v727_v51 = vpop.f32.mrb[6].mxu0 }
 0x70d   :  { %v3439_v52 = vmul.f32 -1.442695, %v727_v51  ;;  %v729_v53 = vpop.f32.mrb[7].mxu0 }
 0x70e   :  { %v3440_v54 = vmul.f32 -1.442695, %v729_v53 }
 0x70f   :  { %4414 = vpow2.f32 %v3439_v52  ;;  %v209_v52 = vpop.f32.mrb[2].mxu1 }
 0x710   :  { %4416 = vpow2.f32 %v3440_v54  ;;  %v211_v53 = vpop.f32.mrb[3].mxu1 }
 0x719   :  { %v4415_v55 = vpop.eup %4414 }
 0x71a   :  { %v4417_v56 = vpop.eup %4416  ;;  %v740_v58 = vadd.f32 1.0, %v4415_v55 }
 0x71b   :  { %v741_v57 = vadd.f32 1.0, %v4417_v56 }
 0x71d   :  { %4418 = vrcp.f32 %v741_v57 }
 0x71e   :  { %4420 = vrcp.f32 %v740_v58 }
 0x727   :  { %v4419_v59 = vpop.eup %4418 }
 0x728   :  { %v746_v60 = vmul.f32 2.0, %v4419_v59  ;;  %v4421_v62 = vpop.eup %4420 }
 0x729   :  { %v748_v1 = vmul.f32 %v4421_v62, %v643_v41 }
 0x72a   :  { %v3441_v61 = vadd.f32 -1.0, %v746_v60 }
 0x72c   :  { %v749_v63 = vmul.f32 %v4421_v62, %v3441_v61 }
 0x72e   :  { %751 = vrot.lane.b32.xlu0 %v749_v63, %s4655_s23 }
 0x7a0   :  { %v752_v2 = vpop.permute.xlu0 %751 }
 0x7a1   :  { %v754_v3 = vadd.f32 %v752_v2, %v748_v1 }
 0x7a3   :  { %v3442_v4 = vmul.f32 -2.0, %v754_v3 }
 0x7a5   :  { %v757_v5 = vmul.f32 1.442695, %v3442_v4 }
 0x7a7   :  { %4422 = vpow2.f32 %v757_v5 }
 0x7b1   :  { %v4423_v6 = vpop.eup %4422 }
 0x7b2   :  { %v759_v8 = vadd.f32 1.0, %v4423_v6 }
 0x7b4   :  { %4424 = vrcp.f32 %v759_v8 }
 0x7be   :  { %v4425_v11 = vpop.eup %4424 }
 0x7bf   :  { %v762_v12 = vmul.f32 2.0, %v4425_v11 }
 0x7c1   :  { %v3443_v13 = vadd.f32 -1.0, %v762_v12 }
 0x7c3   :  { %v764_v14 = vmul.f32 %v4419_v59, %v3443_v13 }
 0x7c5   :  { %768 = vrot.lane.b32.xlu1 %v764_v14, %s4655_s23 }
 0x837   :  { %v769_v16 = vpop.permute.xlu1 %768 }
 0x838   :  { %3444 = vmatmul.mubr.msk.f32.vlgmr.msra.gmra.mrb[8].mxu0 %vm324_vm1, %v769_v16  ;;  %v52_v16 = vld [vmem:[%s5170_s0 + $0x30] sm:$0xff] }
 0x839   :  { %4002 = vmatpush1.bf16.msra.mxu0 %v4726_v10  ;;  %947 = vmatprep.mubr.f32.mxu0 %v4654_v0 }
 0x83a   :  { %4004 = vmatprep.subr.bf16.mxu0 %v4733_v15  ;;  %3411 = vmatmul.mubr.msk.f32.gmra.mrb[4].mxu1 %vm64_vm0, %v52_v16 }
 0x83b   :  { %219 = vmatprep.mubr.f32.mxu1 %v4654_v0 }
 0x83d   :  { %4006 = vmatpush1.bf16.msra.mxu0 %v4736_v18 }
 0x83e   :  { %4008 = vmatprep.subr.bf16.mxu0 %v4739_v19 }
 0x841   :  { %4010 = vmatpush1.bf16.msra.mxu0 %v4747_v25 }
 0x842   :  { %4012 = vmatprep.subr.bf16.mxu0 %v4750_v26 }
 0x845   :  { %4014 = vmatpush1.bf16.msra.mxu0 %v4758_v30 }
 0x846   :  { %4016 = vmatprep.subr.bf16.mxu0 %v4723_v7 }
 0x90b   :  { %v838_v21 = vpop.f32.mrb[8].mxu0 }
 0x90c   :  { %v843_v22 = vadd.f32 %v838_v21, %v203_v17  ;;  %v840_v23 = vpop.f32.mrb[9].mxu0 }
 0x90d   :  { %v844_v24 = vadd.f32 %v840_v23, %v205_v20 }
 0x90e   :  { %v3445_v27 = vmul.f32 -1.442695, %v843_v22 }
 0x90f   :  { %v3446_v28 = vmul.f32 -1.442695, %v844_v24  ;;  %v215_v24 = vpop.f32.mrb[4].mxu1 }
 0x910   :  { %4426 = vpow2.f32 %v3445_v27  ;;  %v217_v27 = vpop.f32.mrb[5].mxu1 }
 0x911   :  { %4428 = vpow2.f32 %v3446_v28 }
 0x91a   :  { %v4427_v29 = vpop.eup %4426 }
 0x91b   :  { %v4429_v31 = vpop.eup %4428  ;;  %v851_v33 = vadd.f32 1.0, %v4427_v29 }
 0x91c   :  { %v852_v32 = vadd.f32 1.0, %v4429_v31 }
 0x91e   :  { %4430 = vrcp.f32 %v852_v32 }
 0x91f   :  { %4432 = vrcp.f32 %v851_v33 }
 0x928   :  { %v4431_v34 = vpop.eup %4430 }
 0x929   :  { %v857_v35 = vmul.f32 2.0, %v4431_v34  ;;  %v4433_v37 = vpop.eup %4432 }
 0x92a   :  { %v859_v39 = vmul.f32 %v4433_v37, %v754_v3 }
 0x92b   :  { %v3447_v36 = vadd.f32 -1.0, %v857_v35 }
 0x92d   :  { %v860_v38 = vmul.f32 %v4433_v37, %v3447_v36 }
 0x92f   :  { %862 = vrot.lane.b32.xlu0 %v860_v38, %s4655_s23 }
 0x9a1   :  { %v863_v40 = vpop.permute.xlu0 %862 }
 0x9a2   :  { %v865_v41 = vadd.f32 %v863_v40, %v859_v39 }
 0x9a4   :  { %v3448_v42 = vmul.f32 -2.0, %v865_v41 }
 0x9a6   :  { %v868_v43 = vmul.f32 1.442695, %v3448_v42 }
 0x9a8   :  { %4434 = vpow2.f32 %v868_v43 }
 0x9b2   :  { %v4435_v44 = vpop.eup %4434 }
 0x9b3   :  { %v870_v45 = vadd.f32 1.0, %v4435_v44 }
 0x9b5   :  { %4436 = vrcp.f32 %v870_v45 }
 0x9bf   :  { %v4437_v47 = vpop.eup %4436 }
 0x9c0   :  { %v873_v48 = vmul.f32 2.0, %v4437_v47 }
 0x9c2   :  { %v3449_v49 = vadd.f32 -1.0, %v873_v48 }
 0x9c4   :  { %v875_v50 = vmul.f32 %v4431_v34, %v3449_v49 }
 0x9c6   :  { %879 = vrot.lane.b32.xlu1 %v875_v50, %s4655_s23 }
 0xa38   :  { %v880_v51 = vpop.permute.xlu1 %879 }
 0xa39   :  { %3450 = vmatmul.mubr.msk.f32.vlgmr.msra.gmra.mrb[10].mxu0 %vm324_vm1, %v880_v51  ;;  %v53_v51 = vld [vmem:[%s5170_s0 + $0x38] sm:$0xff] }
 0xa3a   :  { %4018 = vmatpush1.bf16.msra.mxu0 %v4726_v10  ;;  %1058 = vmatprep.mubr.f32.mxu0 %v4654_v0 }
 0xa3b   :  { %4020 = vmatprep.subr.bf16.mxu0 %v4733_v15  ;;  %3412 = vmatmul.mubr.msk.f32.gmra.mrb[6].mxu1 %vm64_vm0, %v53_v51 }
 0xa3c   :  { %225 = vmatprep.mubr.f32.mxu1 %v4654_v0 }
 0xa3e   :  { %4022 = vmatpush1.bf16.msra.mxu0 %v4736_v18 }
 0xa3f   :  { %4024 = vmatprep.subr.bf16.mxu0 %v4739_v19 }
 0xa42   :  { %4026 = vmatpush1.bf16.msra.mxu0 %v4747_v25 }
 0xa43   :  { %4028 = vmatprep.subr.bf16.mxu0 %v4750_v26 }
 0xa46   :  { %4030 = vmatpush1.bf16.msra.mxu0 %v4758_v30 }
 0xa47   :  { %4032 = vmatprep.subr.bf16.mxu0 %v4723_v7 }
 0xb0c   :  { %v949_v54 = vpop.f32.mrb[10].mxu0 }
 0xb0d   :  { %v954_v55 = vadd.f32 %v949_v54, %v209_v52  ;;  %v951_v56 = vpop.f32.mrb[11].mxu0 }
 0xb0e   :  { %v955_v57 = vadd.f32 %v951_v56, %v211_v53 }
 0xb0f   :  { %v3451_v58 = vmul.f32 -1.442695, %v954_v55 }
 0xb10   :  { %v3452_v59 = vmul.f32 -1.442695, %v955_v57  ;;  %v221_v57 = vpop.f32.mrb[6].mxu1 }
 0xb11   :  { %4438 = vpow2.f32 %v3451_v58  ;;  %v223_v58 = vpop.f32.mrb[7].mxu1 }
 0xb12   :  { %4440 = vpow2.f32 %v3452_v59 }
 0xb1b   :  { %v4439_v60 = vpop.eup %4438 }
 0xb1c   :  { %v4441_v61 = vpop.eup %4440  ;;  %v962_v63 = vadd.f32 1.0, %v4439_v60 }
 0xb1d   :  { %v963_v62 = vadd.f32 1.0, %v4441_v61 }
 0xb1f   :  { %4442 = vrcp.f32 %v963_v62 }
 0xb20   :  { %4444 = vrcp.f32 %v962_v63 }
 0xb29   :  { %v4443_v1 = vpop.eup %4442 }
 0xb2a   :  { %v968_v2 = vmul.f32 2.0, %v4443_v1  ;;  %v4445_v4 = vpop.eup %4444 }
 0xb2b   :  { %v970_v6 = vmul.f32 %v4445_v4, %v865_v41 }
 0xb2c   :  { %v3453_v3 = vadd.f32 -1.0, %v968_v2 }
 0xb2e   :  { %v971_v5 = vmul.f32 %v4445_v4, %v3453_v3 }
 0xb30   :  { %973 = vrot.lane.b32.xlu0 %v971_v5, %s4655_s23 }
 0xba2   :  { %v974_v8 = vpop.permute.xlu0 %973 }
 0xba3   :  { %v976_v9 = vadd.f32 %v974_v8, %v970_v6 }
 0xba5   :  { %v3454_v11 = vmul.f32 -2.0, %v976_v9 }
 0xba7   :  { %v979_v12 = vmul.f32 1.442695, %v3454_v11 }
 0xba9   :  { %4446 = vpow2.f32 %v979_v12 }
 0xbb3   :  { %v4447_v13 = vpop.eup %4446 }
 0xbb4   :  { %v981_v14 = vadd.f32 1.0, %v4447_v13 }
 0xbb6   :  { %4448 = vrcp.f32 %v981_v14 }
 0xbc0   :  { %v4449_v17 = vpop.eup %4448 }
 0xbc1   :  { %v984_v20 = vmul.f32 2.0, %v4449_v17 }
 0xbc3   :  { %v3455_v21 = vadd.f32 -1.0, %v984_v20 }
 0xbc5   :  { %v986_v22 = vmul.f32 %v4443_v1, %v3455_v21 }
 0xbc7   :  { %990 = vrot.lane.b32.xlu1 %v986_v22, %s4655_s23 }
 0xc39   :  { %v991_v23 = vpop.permute.xlu1 %990 }
 0xc3a   :  { %3456 = vmatmul.mubr.msk.f32.vlgmr.msra.gmra.mrb[12].mxu0 %vm324_vm1, %v991_v23  ;;  %v54_v23 = vld [vmem:[%s5170_s0 + $0x40] sm:$0xff] }
 0xc3b   :  { %4034 = vmatpush1.bf16.msra.mxu0 %v4726_v10  ;;  %1169 = vmatprep.mubr.f32.mxu0 %v4654_v0 }
 0xc3c   :  { %4036 = vmatprep.subr.bf16.mxu0 %v4733_v15  ;;  %3413 = vmatmul.mubr.msk.f32.gmra.mrb[8].mxu1 %vm64_vm0, %v54_v23 }
 0xc3d   :  { %231 = vmatprep.mubr.f32.mxu1 %v4654_v0 }
 0xc3f   :  { %4038 = vmatpush1.bf16.msra.mxu0 %v4736_v18 }
 0xc40   :  { %4040 = vmatprep.subr.bf16.mxu0 %v4739_v19 }
 0xc43   :  { %4042 = vmatpush1.bf16.msra.mxu0 %v4747_v25 }
 0xc44   :  { %4044 = vmatprep.subr.bf16.mxu0 %v4750_v26 }
 0xc47   :  { %4046 = vmatpush1.bf16.msra.mxu0 %v4758_v30 }
 0xc48   :  { %4048 = vmatprep.subr.bf16.mxu0 %v4723_v7 }
 0xd0d   :  { %v1060_v28 = vpop.f32.mrb[12].mxu0 }
 0xd0e   :  { %v1065_v29 = vadd.f32 %v1060_v28, %v215_v24  ;;  %v1062_v31 = vpop.f32.mrb[13].mxu0 }
 0xd0f   :  { %v1066_v32 = vadd.f32 %v1062_v31, %v217_v27 }
 0xd10   :  { %v3457_v33 = vmul.f32 -1.442695, %v1065_v29 }
 0xd11   :  { %v3458_v34 = vmul.f32 -1.442695, %v1066_v32  ;;  %v227_v32 = vpop.f32.mrb[8].mxu1 }
 0xd12   :  { %4450 = vpow2.f32 %v3457_v33  ;;  %v229_v33 = vpop.f32.mrb[9].mxu1 }
 0xd13   :  { %4452 = vpow2.f32 %v3458_v34 }
 0xd1c   :  { %v4451_v35 = vpop.eup %4450 }
 0xd1d   :  { %v4453_v36 = vpop.eup %4452  ;;  %v1073_v38 = vadd.f32 1.0, %v4451_v35 }
 0xd1e   :  { %v1074_v37 = vadd.f32 1.0, %v4453_v36 }
 0xd20   :  { %4454 = vrcp.f32 %v1074_v37 }
 0xd21   :  { %4456 = vrcp.f32 %v1073_v38 }
 0xd2a   :  { %v4455_v39 = vpop.eup %4454 }
 0xd2b   :  { %v1079_v40 = vmul.f32 2.0, %v4455_v39  ;;  %v4457_v42 = vpop.eup %4456 }
 0xd2c   :  { %v1081_v44 = vmul.f32 %v4457_v42, %v976_v9 }
 0xd2d   :  { %v3459_v41 = vadd.f32 -1.0, %v1079_v40 }
 0xd2f   :  { %v1082_v43 = vmul.f32 %v4457_v42, %v3459_v41 }
 0xd31   :  { %1084 = vrot.lane.b32.xlu0 %v1082_v43, %s4655_s23 }
 0xda3   :  { %v1085_v45 = vpop.permute.xlu0 %1084 }
 0xda4   :  { %v1087_v46 = vadd.f32 %v1085_v45, %v1081_v44 }
 0xda6   :  { %v3460_v47 = vmul.f32 -2.0, %v1087_v46 }
 0xda8   :  { %v1090_v48 = vmul.f32 1.442695, %v3460_v47 }
 0xdaa   :  { %4458 = vpow2.f32 %v1090_v48 }
 0xdb4   :  { %v4459_v49 = vpop.eup %4458 }
 0xdb5   :  { %v1092_v50 = vadd.f32 1.0, %v4459_v49 }
 0xdb7   :  { %4460 = vrcp.f32 %v1092_v50 }
 0xdc1   :  { %v4461_v52 = vpop.eup %4460 }
 0xdc2   :  { %v1095_v53 = vmul.f32 2.0, %v4461_v52 }
 0xdc4   :  { %v3461_v54 = vadd.f32 -1.0, %v1095_v53 }
 0xdc6   :  { %v1097_v55 = vmul.f32 %v4455_v39, %v3461_v54 }
 0xdc8   :  { %1101 = vrot.lane.b32.xlu1 %v1097_v55, %s4655_s23 }
 0xe3a   :  { %v1102_v56 = vpop.permute.xlu1 %1101 }
 0xe3b   :  { %3462 = vmatmul.mubr.msk.f32.vlgmr.msra.gmra.mrb[14].mxu0 %vm324_vm1, %v1102_v56  ;;  %v55_v56 = vld [vmem:[%s5170_s0 + $0x48] sm:$0xff] }
 0xe3c   :  { %4050 = vmatpush1.bf16.msra.mxu0 %v4726_v10  ;;  %1280 = vmatprep.mubr.f32.mxu0 %v4654_v0 }
 0xe3d   :  { %4052 = vmatprep.subr.bf16.mxu0 %v4733_v15  ;;  %3414 = vmatmul.mubr.msk.f32.gmra.mrb[10].mxu1 %vm64_vm0, %v55_v56 }
 0xe3e   :  { %237 = vmatprep.mubr.f32.mxu1 %v4654_v0 }
 0xe40   :  { %4054 = vmatpush1.bf16.msra.mxu0 %v4736_v18 }
 0xe41   :  { %4056 = vmatprep.subr.bf16.mxu0 %v4739_v19 }
 0xe44   :  { %4058 = vmatpush1.bf16.msra.mxu0 %v4747_v25 }
 0xe45   :  { %4060 = vmatprep.subr.bf16.mxu0 %v4750_v26 }
 0xe48   :  { %4062 = vmatpush1.bf16.msra.mxu0 %v4758_v30 }
 0xe49   :  { %4064 = vmatprep.subr.bf16.mxu0 %v4723_v7 }
 0xf0e   :  { %v1171_v59 = vpop.f32.mrb[14].mxu0 }
 0xf0f   :  { %v1176_v60 = vadd.f32 %v1171_v59, %v221_v57  ;;  %v1173_v61 = vpop.f32.mrb[15].mxu0 }
 0xf10   :  { %v1177_v62 = vadd.f32 %v1173_v61, %v223_v58 }
 0xf11   :  { %v3463_v63 = vmul.f32 -1.442695, %v1176_v60 }
 0xf12   :  { %v3464_v1 = vmul.f32 -1.442695, %v1177_v62  ;;  %v233_v62 = vpop.f32.mrb[10].mxu1 }
 0xf13   :  { %4462 = vpow2.f32 %v3463_v63  ;;  %v235_v63 = vpop.f32.mrb[11].mxu1 }
 0xf14   :  { %4464 = vpow2.f32 %v3464_v1 }
 0xf1d   :  { %v4463_v2 = vpop.eup %4462 }
 0xf1e   :  { %v4465_v3 = vpop.eup %4464  ;;  %v1184_v5 = vadd.f32 1.0, %v4463_v2 }
 0xf1f   :  { %v1185_v4 = vadd.f32 1.0, %v4465_v3 }
 0xf21   :  { %4466 = vrcp.f32 %v1185_v4 }
 0xf22   :  { %4468 = vrcp.f32 %v1184_v5 }
 0xf2b   :  { %v4467_v6 = vpop.eup %4466 }
 0xf2c   :  { %v1190_v8 = vmul.f32 2.0, %v4467_v6  ;;  %v4469_v11 = vpop.eup %4468 }
 0xf2d   :  { %v1192_v13 = vmul.f32 %v4469_v11, %v1087_v46 }
 0xf2e   :  { %v3465_v9 = vadd.f32 -1.0, %v1190_v8 }
 0xf30   :  { %v1193_v12 = vmul.f32 %v4469_v11, %v3465_v9 }
 0xf32   :  { %1195 = vrot.lane.b32.xlu0 %v1193_v12, %s4655_s23 }
 0xfa4   :  { %v1196_v14 = vpop.permute.xlu0 %1195 }
 0xfa5   :  { %v1198_v16 = vadd.f32 %v1196_v14, %v1192_v13 }
 0xfa7   :  { %v3466_v17 = vmul.f32 -2.0, %v1198_v16 }
 0xfa9   :  { %v1201_v20 = vmul.f32 1.442695, %v3466_v17 }
 0xfab   :  { %4470 = vpow2.f32 %v1201_v20 }
 0xfb5   :  { %v4471_v21 = vpop.eup %4470 }
 0xfb6   :  { %v1203_v22 = vadd.f32 1.0, %v4471_v21 }
 0xfb8   :  { %4472 = vrcp.f32 %v1203_v22 }
 0xfc2   :  { %v4473_v24 = vpop.eup %4472 }
 0xfc3   :  { %v1206_v27 = vmul.f32 2.0, %v4473_v24 }
 0xfc5   :  { %v3467_v28 = vadd.f32 -1.0, %v1206_v27 }
 0xfc7   :  { %v1208_v29 = vmul.f32 %v4467_v6, %v3467_v28 }
 0xfc9   :  { %1212 = vrot.lane.b32.xlu1 %v1208_v29, %s4655_s23 }
0x103b   :  { %v1213_v31 = vpop.permute.xlu1 %1212 }
0x103c   :  { %3468 = vmatmul.mubr.msk.f32.vlgmr.msra.gmra.mrb[16].mxu0 %vm324_vm1, %v1213_v31  ;;  %v56_v31 = vld [vmem:[%s5170_s0 + $0x50] sm:$0xff] }
0x103d   :  { %4066 = vmatpush1.bf16.msra.mxu0 %v4726_v10  ;;  %1391 = vmatprep.mubr.f32.mxu0 %v4654_v0 }
0x103e   :  { %4068 = vmatprep.subr.bf16.mxu0 %v4733_v15  ;;  %3415 = vmatmul.mubr.msk.f32.gmra.mrb[12].mxu1 %vm64_vm0, %v56_v31 }
0x103f   :  { %243 = vmatprep.mubr.f32.mxu1 %v4654_v0 }
0x1041   :  { %4070 = vmatpush1.bf16.msra.mxu0 %v4736_v18 }
0x1042   :  { %4072 = vmatprep.subr.bf16.mxu0 %v4739_v19 }
0x1045   :  { %4074 = vmatpush1.bf16.msra.mxu0 %v4747_v25 }
0x1046   :  { %4076 = vmatprep.subr.bf16.mxu0 %v4750_v26 }
0x1049   :  { %4078 = vmatpush1.bf16.msra.mxu0 %v4758_v30 }
0x104a   :  { %4080 = vmatprep.subr.bf16.mxu0 %v4723_v7 }
0x110f   :  { %v1282_v34 = vpop.f32.mrb[16].mxu0 }
0x1110   :  { %v1287_v35 = vadd.f32 %v1282_v34, %v227_v32  ;;  %v1284_v36 = vpop.f32.mrb[17].mxu0 }
0x1111   :  { %v1288_v37 = vadd.f32 %v1284_v36, %v229_v33 }
0x1112   :  { %v3469_v38 = vmul.f32 -1.442695, %v1287_v35 }
0x1113   :  { %v3470_v39 = vmul.f32 -1.442695, %v1288_v37  ;;  %v239_v37 = vpop.f32.mrb[12].mxu1 }
0x1114   :  { %4474 = vpow2.f32 %v3469_v38  ;;  %v241_v38 = vpop.f32.mrb[13].mxu1 }
0x1115   :  { %4476 = vpow2.f32 %v3470_v39 }
0x111e   :  { %v4475_v40 = vpop.eup %4474 }
0x111f   :  { %v4477_v41 = vpop.eup %4476  ;;  %v1295_v43 = vadd.f32 1.0, %v4475_v40 }
0x1120   :  { %v1296_v42 = vadd.f32 1.0, %v4477_v41 }
0x1122   :  { %4478 = vrcp.f32 %v1296_v42 }
0x1123   :  { %4480 = vrcp.f32 %v1295_v43 }
0x112c   :  { %v4479_v44 = vpop.eup %4478 }
0x112d   :  { %v1301_v45 = vmul.f32 2.0, %v4479_v44  ;;  %v4481_v47 = vpop.eup %4480 }
0x112e   :  { %v1303_v49 = vmul.f32 %v4481_v47, %v1198_v16 }
0x112f   :  { %v3471_v46 = vadd.f32 -1.0, %v1301_v45 }
0x1131   :  { %v1304_v48 = vmul.f32 %v4481_v47, %v3471_v46 }
0x1133   :  { %1306 = vrot.lane.b32.xlu0 %v1304_v48, %s4655_s23 }
0x11a5   :  { %v1307_v50 = vpop.permute.xlu0 %1306 }
0x11a6   :  { %v1309_v51 = vadd.f32 %v1307_v50, %v1303_v49 }
0x11a8   :  { %v3472_v52 = vmul.f32 -2.0, %v1309_v51 }
0x11aa   :  { %v1312_v53 = vmul.f32 1.442695, %v3472_v52 }
0x11ac   :  { %4482 = vpow2.f32 %v1312_v53 }
0x11b6   :  { %v4483_v54 = vpop.eup %4482 }
0x11b7   :  { %v1314_v55 = vadd.f32 1.0, %v4483_v54 }
0x11b9   :  { %4484 = vrcp.f32 %v1314_v55 }
0x11c3   :  { %v4485_v57 = vpop.eup %4484 }
0x11c4   :  { %v1317_v58 = vmul.f32 2.0, %v4485_v57 }
0x11c6   :  { %v3473_v59 = vadd.f32 -1.0, %v1317_v58 }
0x11c8   :  { %v1319_v60 = vmul.f32 %v4479_v44, %v3473_v59 }
0x11ca   :  { %1323 = vrot.lane.b32.xlu1 %v1319_v60, %s4655_s23 }
0x123c   :  { %v1324_v61 = vpop.permute.xlu1 %1323 }
0x123d   :  { %3474 = vmatmul.mubr.msk.f32.vlgmr.msra.gmra.mrb[18].mxu0 %vm324_vm1, %v1324_v61  ;;  %v57_v61 = vld [vmem:[%s5170_s0 + $0x58] sm:$0xff] }
0x123e   :  { %4082 = vmatpush1.bf16.msra.mxu0 %v4726_v10  ;;  %1502 = vmatprep.mubr.f32.mxu0 %v4654_v0 }
0x123f   :  { %4084 = vmatprep.subr.bf16.mxu0 %v4733_v15  ;;  %3416 = vmatmul.mubr.msk.f32.gmra.mrb[14].mxu1 %vm64_vm0, %v57_v61 }
0x1240   :  { %249 = vmatprep.mubr.f32.mxu1 %v4654_v0 }
0x1242   :  { %4086 = vmatpush1.bf16.msra.mxu0 %v4736_v18 }
0x1243   :  { %4088 = vmatprep.subr.bf16.mxu0 %v4739_v19 }
0x1246   :  { %4090 = vmatpush1.bf16.msra.mxu0 %v4747_v25 }
0x1247   :  { %4092 = vmatprep.subr.bf16.mxu0 %v4750_v26 }
0x124a   :  { %4094 = vmatpush1.bf16.msra.mxu0 %v4758_v30 }
0x124b   :  { %4096 = vmatprep.subr.bf16.mxu0 %v4723_v7 }
0x1310   :  { %v1393_v1 = vpop.f32.mrb[18].mxu0 }
0x1311   :  { %v1398_v2 = vadd.f32 %v1393_v1, %v233_v62  ;;  %v1395_v3 = vpop.f32.mrb[19].mxu0 }
0x1312   :  { %v1399_v4 = vadd.f32 %v1395_v3, %v235_v63 }
0x1313   :  { %v3475_v5 = vmul.f32 -1.442695, %v1398_v2 }
0x1314   :  { %v3476_v6 = vmul.f32 -1.442695, %v1399_v4  ;;  %v245_v4 = vpop.f32.mrb[14].mxu1 }
0x1315   :  { %4486 = vpow2.f32 %v3475_v5  ;;  %v247_v5 = vpop.f32.mrb[15].mxu1 }
0x1316   :  { %4488 = vpow2.f32 %v3476_v6 }
0x131f   :  { %v4487_v8 = vpop.eup %4486 }
0x1320   :  { %v4489_v9 = vpop.eup %4488  ;;  %v1406_v12 = vadd.f32 1.0, %v4487_v8 }
0x1321   :  { %v1407_v11 = vadd.f32 1.0, %v4489_v9 }
0x1323   :  { %4490 = vrcp.f32 %v1407_v11 }
0x1324   :  { %4492 = vrcp.f32 %v1406_v12 }
0x132d   :  { %v4491_v13 = vpop.eup %4490 }
0x132e   :  { %v1412_v14 = vmul.f32 2.0, %v4491_v13  ;;  %v4493_v17 = vpop.eup %4492 }
0x132f   :  { %v1414_v21 = vmul.f32 %v4493_v17, %v1309_v51 }
0x1330   :  { %v3477_v16 = vadd.f32 -1.0, %v1412_v14 }
0x1332   :  { %v1415_v20 = vmul.f32 %v4493_v17, %v3477_v16 }
0x1334   :  { %1417 = vrot.lane.b32.xlu0 %v1415_v20, %s4655_s23 }
0x13a6   :  { %v1418_v22 = vpop.permute.xlu0 %1417 }
0x13a7   :  { %v1420_v23 = vadd.f32 %v1418_v22, %v1414_v21 }
0x13a9   :  { %v3478_v24 = vmul.f32 -2.0, %v1420_v23 }
0x13ab   :  { %v1423_v27 = vmul.f32 1.442695, %v3478_v24 }
0x13ad   :  { %4494 = vpow2.f32 %v1423_v27 }
0x13b7   :  { %v4495_v28 = vpop.eup %4494 }
0x13b8   :  { %v1425_v29 = vadd.f32 1.0, %v4495_v28 }
0x13ba   :  { %4496 = vrcp.f32 %v1425_v29 }
0x13c4   :  { %v4497_v32 = vpop.eup %4496 }
0x13c5   :  { %v1428_v33 = vmul.f32 2.0, %v4497_v32 }
0x13c7   :  { %v3479_v34 = vadd.f32 -1.0, %v1428_v33 }
0x13c9   :  { %v1430_v35 = vmul.f32 %v4491_v13, %v3479_v34 }
0x13cb   :  { %1434 = vrot.lane.b32.xlu1 %v1430_v35, %s4655_s23 }
0x143d   :  { %v1435_v36 = vpop.permute.xlu1 %1434 }
0x143e   :  { %3480 = vmatmul.mubr.msk.f32.vlgmr.msra.gmra.mrb[20].mxu0 %vm324_vm1, %v1435_v36  ;;  %v58_v36 = vld [vmem:[%s5170_s0 + $0x60] sm:$0xff] }
0x143f   :  { %4098 = vmatpush1.bf16.msra.mxu0 %v4726_v10  ;;  %1613 = vmatprep.mubr.f32.mxu0 %v4654_v0 }
0x1440   :  { %4100 = vmatprep.subr.bf16.mxu0 %v4733_v15  ;;  %3417 = vmatmul.mubr.msk.f32.gmra.mrb[16].mxu1 %vm64_vm0, %v58_v36 }
0x1441   :  { %255 = vmatprep.mubr.f32.mxu1 %v4654_v0 }
0x1443   :  { %4102 = vmatpush1.bf16.msra.mxu0 %v4736_v18 }
0x1444   :  { %4104 = vmatprep.subr.bf16.mxu0 %v4739_v19 }
0x1447   :  { %4106 = vmatpush1.bf16.msra.mxu0 %v4747_v25 }
0x1448   :  { %4108 = vmatprep.subr.bf16.mxu0 %v4750_v26 }
0x144b   :  { %4110 = vmatpush1.bf16.msra.mxu0 %v4758_v30 }
0x144c   :  { %4112 = vmatprep.subr.bf16.mxu0 %v4723_v7 }
0x1511   :  { %v1504_v39 = vpop.f32.mrb[20].mxu0 }
0x1512   :  { %v1509_v40 = vadd.f32 %v1504_v39, %v239_v37  ;;  %v1506_v41 = vpop.f32.mrb[21].mxu0 }
0x1513   :  { %v1510_v42 = vadd.f32 %v1506_v41, %v241_v38 }
0x1514   :  { %v3481_v43 = vmul.f32 -1.442695, %v1509_v40 }
0x1515   :  { %v3482_v44 = vmul.f32 -1.442695, %v1510_v42  ;;  %v251_v42 = vpop.f32.mrb[16].mxu1 }
0x1516   :  { %4498 = vpow2.f32 %v3481_v43  ;;  %v253_v43 = vpop.f32.mrb[17].mxu1 }
0x1517   :  { %4500 = vpow2.f32 %v3482_v44 }
0x1520   :  { %v4499_v45 = vpop.eup %4498 }
0x1521   :  { %v4501_v46 = vpop.eup %4500  ;;  %v1517_v48 = vadd.f32 1.0, %v4499_v45 }
0x1522   :  { %v1518_v47 = vadd.f32 1.0, %v4501_v46 }
0x1524   :  { %4502 = vrcp.f32 %v1518_v47 }
0x1525   :  { %4504 = vrcp.f32 %v1517_v48 }
0x152e   :  { %v4503_v49 = vpop.eup %4502 }
0x152f   :  { %v1523_v50 = vmul.f32 2.0, %v4503_v49  ;;  %v4505_v52 = vpop.eup %4504 }
0x1530   :  { %v1525_v54 = vmul.f32 %v4505_v52, %v1420_v23 }
0x1531   :  { %v3483_v51 = vadd.f32 -1.0, %v1523_v50 }
0x1533   :  { %v1526_v53 = vmul.f32 %v4505_v52, %v3483_v51 }
0x1535   :  { %1528 = vrot.lane.b32.xlu0 %v1526_v53, %s4655_s23 }
0x15a7   :  { %v1529_v55 = vpop.permute.xlu0 %1528 }
0x15a8   :  { %v1531_v56 = vadd.f32 %v1529_v55, %v1525_v54 }
0x15aa   :  { %v3484_v57 = vmul.f32 -2.0, %v1531_v56 }
0x15ac   :  { %v1534_v58 = vmul.f32 1.442695, %v3484_v57 }
0x15ae   :  { %4506 = vpow2.f32 %v1534_v58 }
0x15b8   :  { %v4507_v59 = vpop.eup %4506 }
0x15b9   :  { %v1536_v60 = vadd.f32 1.0, %v4507_v59 }
0x15bb   :  { %4508 = vrcp.f32 %v1536_v60 }
0x15c5   :  { %v4509_v62 = vpop.eup %4508 }
0x15c6   :  { %v1539_v63 = vmul.f32 2.0, %v4509_v62 }
0x15c8   :  { %v3485_v1 = vadd.f32 -1.0, %v1539_v63 }
0x15ca   :  { %v1541_v2 = vmul.f32 %v4503_v49, %v3485_v1 }
0x15cc   :  { %1545 = vrot.lane.b32.xlu1 %v1541_v2, %s4655_s23 }
0x163e   :  { %v1546_v3 = vpop.permute.xlu1 %1545 }
0x163f   :  { %3486 = vmatmul.mubr.msk.f32.vlgmr.msra.gmra.mrb[22].mxu0 %vm324_vm1, %v1546_v3  ;;  %v59_v3 = vld [vmem:[%s5170_s0 + $0x68] sm:$0xff] }
0x1640   :  { %4114 = vmatpush1.bf16.msra.mxu0 %v4726_v10  ;;  %1724 = vmatprep.mubr.f32.mxu0 %v4654_v0 }
0x1641   :  { %4116 = vmatprep.subr.bf16.mxu0 %v4733_v15  ;;  %3418 = vmatmul.mubr.msk.f32.gmra.mrb[18].mxu1 %vm64_vm0, %v59_v3 }
0x1642   :  { %261 = vmatprep.mubr.f32.mxu1 %v4654_v0 }
0x1644   :  { %4118 = vmatpush1.bf16.msra.mxu0 %v4736_v18 }
0x1645   :  { %4120 = vmatprep.subr.bf16.mxu0 %v4739_v19 }
0x1648   :  { %4122 = vmatpush1.bf16.msra.mxu0 %v4747_v25 }
0x1649   :  { %4124 = vmatprep.subr.bf16.mxu0 %v4750_v26 }
0x164c   :  { %4126 = vmatpush1.bf16.msra.mxu0 %v4758_v30 }
0x164d   :  { %4128 = vmatprep.subr.bf16.mxu0 %v4723_v7 }
0x1712   :  { %v1615_v6 = vpop.f32.mrb[22].mxu0 }
0x1713   :  { %v1620_v8 = vadd.f32 %v1615_v6, %v245_v4  ;;  %v1617_v9 = vpop.f32.mrb[23].mxu0 }
0x1714   :  { %v1621_v11 = vadd.f32 %v1617_v9, %v247_v5 }
0x1715   :  { %v3487_v12 = vmul.f32 -1.442695, %v1620_v8 }
0x1716   :  { %v3488_v13 = vmul.f32 -1.442695, %v1621_v11  ;;  %v257_v11 = vpop.f32.mrb[18].mxu1 }
0x1717   :  { %4510 = vpow2.f32 %v3487_v12  ;;  %v259_v12 = vpop.f32.mrb[19].mxu1 }
0x1718   :  { %4512 = vpow2.f32 %v3488_v13 }
0x1721   :  { %v4511_v14 = vpop.eup %4510 }
0x1722   :  { %v4513_v16 = vpop.eup %4512  ;;  %v1628_v20 = vadd.f32 1.0, %v4511_v14 }
0x1723   :  { %v1629_v17 = vadd.f32 1.0, %v4513_v16 }
0x1725   :  { %4514 = vrcp.f32 %v1629_v17 }
0x1726   :  { %4516 = vrcp.f32 %v1628_v20 }
0x172f   :  { %v4515_v21 = vpop.eup %4514 }
0x1730   :  { %v1634_v22 = vmul.f32 2.0, %v4515_v21  ;;  %v4517_v24 = vpop.eup %4516 }
0x1731   :  { %v1636_v28 = vmul.f32 %v4517_v24, %v1531_v56 }
0x1732   :  { %v3489_v23 = vadd.f32 -1.0, %v1634_v22 }
0x1734   :  { %v1637_v27 = vmul.f32 %v4517_v24, %v3489_v23 }
0x1736   :  { %1639 = vrot.lane.b32.xlu0 %v1637_v27, %s4655_s23 }
0x17a8   :  { %v1640_v29 = vpop.permute.xlu0 %1639 }
0x17a9   :  { %v1642_v31 = vadd.f32 %v1640_v29, %v1636_v28 }
0x17ab   :  { %v3490_v32 = vmul.f32 -2.0, %v1642_v31 }
0x17ad   :  { %v1645_v33 = vmul.f32 1.442695, %v3490_v32 }
0x17af   :  { %4518 = vpow2.f32 %v1645_v33 }
0x17b9   :  { %v4519_v34 = vpop.eup %4518 }
0x17ba   :  { %v1647_v35 = vadd.f32 1.0, %v4519_v34 }
0x17bc   :  { %4520 = vrcp.f32 %v1647_v35 }
0x17c6   :  { %v4521_v37 = vpop.eup %4520 }
0x17c7   :  { %v1650_v38 = vmul.f32 2.0, %v4521_v37 }
0x17c9   :  { %v3491_v39 = vadd.f32 -1.0, %v1650_v38 }
0x17cb   :  { %v1652_v40 = vmul.f32 %v4515_v21, %v3491_v39 }
0x17cd   :  { %1656 = vrot.lane.b32.xlu1 %v1652_v40, %s4655_s23  ;;  %v60_v40 = vld [vmem:[%s5170_s0 + $0x70] sm:$0xff] }
0x17ce   :  { %3419 = vmatmul.mubr.msk.f32.gmra.mrb[20].mxu1 %vm64_vm0, %v60_v40 }
0x17cf   :  { %267 = vmatprep.mubr.f32.mxu1 %v4654_v0 }
0x183f   :  { %v1657_v41 = vpop.permute.xlu1 %1656 }
0x1840   :  { %3492 = vmatmul.mubr.msk.f32.vlgmr.msra.gmra.mrb[24].mxu0 %vm324_vm1, %v1657_v41 }
0x1841   :  { %4130 = vmatpush1.bf16.msra.mxu0 %v4726_v10  ;;  %1835 = vmatprep.mubr.f32.mxu0 %v4654_v0 }
0x1842   :  { %4132 = vmatprep.subr.bf16.mxu0 %v4733_v15 }
0x1845   :  { %4134 = vmatpush1.bf16.msra.mxu0 %v4736_v18 }
0x1846   :  { %4136 = vmatprep.subr.bf16.mxu0 %v4739_v19 }
0x1849   :  { %4138 = vmatpush1.bf16.msra.mxu0 %v4747_v25 }
0x184a   :  { %4140 = vmatprep.subr.bf16.mxu0 %v4750_v26 }
0x184d   :  { %4142 = vmatpush1.bf16.msra.mxu0 %v4758_v30 }
0x184e   :  { %4144 = vmatprep.subr.bf16.mxu0 %v4723_v7 }
0x1913   :  { %v1726_v44 = vpop.f32.mrb[24].mxu0 }
0x1914   :  { %v1731_v45 = vadd.f32 %v1726_v44, %v251_v42  ;;  %v1728_v46 = vpop.f32.mrb[25].mxu0 }
0x1915   :  { %v1732_v47 = vadd.f32 %v1728_v46, %v253_v43  ;;  %v263_v46 = vpop.f32.mrb[20].mxu1 }
0x1916   :  { %v3493_v48 = vmul.f32 -1.442695, %v1731_v45 }
0x1917   :  { %v3494_v49 = vmul.f32 -1.442695, %v1732_v47  ;;  %v265_v47 = vpop.f32.mrb[21].mxu1 }
0x1918   :  { %4522 = vpow2.f32 %v3493_v48 }
0x1919   :  { %4524 = vpow2.f32 %v3494_v49 }
0x1922   :  { %v4523_v50 = vpop.eup %4522 }
0x1923   :  { %v4525_v51 = vpop.eup %4524  ;;  %v1739_v53 = vadd.f32 1.0, %v4523_v50 }
0x1924   :  { %v1740_v52 = vadd.f32 1.0, %v4525_v51 }
0x1926   :  { %4526 = vrcp.f32 %v1740_v52 }
0x1927   :  { %4528 = vrcp.f32 %v1739_v53 }
0x1930   :  { %v4527_v54 = vpop.eup %4526 }
0x1931   :  { %v1745_v55 = vmul.f32 2.0, %v4527_v54  ;;  %v4529_v57 = vpop.eup %4528 }
0x1932   :  { %v1747_v59 = vmul.f32 %v4529_v57, %v1642_v31 }
0x1933   :  { %v3495_v56 = vadd.f32 -1.0, %v1745_v55 }
0x1935   :  { %v1748_v58 = vmul.f32 %v4529_v57, %v3495_v56 }
0x1937   :  { %1750 = vrot.lane.b32.xlu0 %v1748_v58, %s4655_s23 }
0x19a9   :  { %v1751_v60 = vpop.permute.xlu0 %1750 }
0x19aa   :  { %v1753_v61 = vadd.f32 %v1751_v60, %v1747_v59 }
0x19ac   :  { %v3496_v62 = vmul.f32 -2.0, %v1753_v61 }
0x19ae   :  { %v1756_v63 = vmul.f32 1.442695, %v3496_v62 }
0x19b0   :  { %4530 = vpow2.f32 %v1756_v63  ;;  %v61_v63 = vld [vmem:[%s5170_s0 + $0x78] sm:$0xff] }
0x19b1   :  { %3420 = vmatmul.mubr.msk.f32.gmra.mrb[22].mxu1 %vm64_vm0, %v61_v63  ;;  %v2275_v63 = vld [vmem:[#allocation6 + $0x98] sm:$0xff] }
0x19b2   :  { %3679 = vmatprep.mubr.msk.f32.mxu1 %vm4657_vm2, %v4654_v0 }
0x19ba   :  { %v4531_v1 = vpop.eup %4530 }
0x19bb   :  { %v1758_v2 = vadd.f32 1.0, %v4531_v1 }
0x19bd   :  { %4532 = vrcp.f32 %v1758_v2 }
0x19c7   :  { %v4533_v4 = vpop.eup %4532 }
0x19c8   :  { %v1761_v5 = vmul.f32 2.0, %v4533_v4 }
0x19ca   :  { %v3497_v6 = vadd.f32 -1.0, %v1761_v5 }
0x19cc   :  { %v1763_v8 = vmul.f32 %v4527_v54, %v3497_v6 }
0x19ce   :  { %1767 = vrot.lane.b32.xlu1 %v1763_v8, %s4655_s23 }
0x1a40   :  { %v1768_v9 = vpop.permute.xlu1 %1767 }
0x1a41   :  { %3498 = vmatmul.mubr.msk.f32.vlgmr.msra.gmra.mrb[26].mxu0 %vm324_vm1, %v1768_v9 }
0x1a42   :  { %4146 = vmatpush1.bf16.msra.mxu0 %v4726_v10  ;;  %1946 = vmatprep.mubr.f32.mxu0 %v4654_v0 }
0x1a43   :  { %4148 = vmatprep.subr.bf16.mxu0 %v4733_v15 }
0x1a46   :  { %4150 = vmatpush1.bf16.msra.mxu0 %v4736_v18 }
0x1a47   :  { %4152 = vmatprep.subr.bf16.mxu0 %v4739_v19 }
0x1a4a   :  { %4154 = vmatpush1.bf16.msra.mxu0 %v4747_v25 }
0x1a4b   :  { %4156 = vmatprep.subr.bf16.mxu0 %v4750_v26 }
0x1a4e   :  { %4158 = vmatpush1.bf16.msra.mxu0 %v4758_v30 }
0x1a4f   :  { %4160 = vmatprep.subr.bf16.mxu0 %v4723_v7 }
0x1a84   :  { %v269_v6 = vpop.f32.mrb[22].mxu1 }
0x1a85   :  { %v271_v8 = vpop.f32.mrb[23].mxu1 }
0x1b14   :  { %v1837_v13 = vpop.f32.mrb[26].mxu0 }
0x1b15   :  { %v1842_v14 = vadd.f32 %v1837_v13, %v257_v11  ;;  %v1839_v16 = vpop.f32.mrb[27].mxu0 }
0x1b16   :  { %v1843_v17 = vadd.f32 %v1839_v16, %v259_v12 }
0x1b17   :  { %v3499_v20 = vmul.f32 -1.442695, %v1842_v14 }
0x1b18   :  { %v3500_v21 = vmul.f32 -1.442695, %v1843_v17 }
0x1b19   :  { %4534 = vpow2.f32 %v3499_v20 }
0x1b1a   :  { %4536 = vpow2.f32 %v3500_v21 }
0x1b23   :  { %v4535_v22 = vpop.eup %4534 }
0x1b24   :  { %v4537_v23 = vpop.eup %4536  ;;  %v1850_v27 = vadd.f32 1.0, %v4535_v22 }
0x1b25   :  { %v1851_v24 = vadd.f32 1.0, %v4537_v23 }
0x1b27   :  { %4538 = vrcp.f32 %v1851_v24 }
0x1b28   :  { %4540 = vrcp.f32 %v1850_v27 }
0x1b31   :  { %v4539_v28 = vpop.eup %4538 }
0x1b32   :  { %v1856_v29 = vmul.f32 2.0, %v4539_v28  ;;  %v4541_v7 = vpop.eup %4540 }
0x1b33   :  { %v1858_v33 = vmul.f32 %v4541_v7, %v1753_v61 }
0x1b34   :  { %v3501_v31 = vadd.f32 -1.0, %v1856_v29 }
0x1b36   :  { %v1859_v32 = vmul.f32 %v4541_v7, %v3501_v31  ;;  %v5011_v31 = vld [vmem:[%s5171_s1] sm:$0xff]  ;;  %v2098_v7 = vld [vmem:[#allocation6] sm:$0xff]  ;;  %s4658_s1 = smov 72  }
0x1b38   :  { %1861 = vrot.lane.b32.xlu0 %v1859_v32, %s4655_s23  ;;  %v2099_v32 = vld [vmem:[#allocation6 + $0x8] sm:$0xff] }
0x1baa   :  { %v1862_v34 = vpop.permute.xlu0 %1861 }
0x1bab   :  { %v1864_v35 = vadd.f32 %v1862_v34, %v1858_v33  ;;  %v2100_v33 = vld [vmem:[#allocation6 + $0x10] sm:$0xff]  ;;  %v4656_v34 = vmov 0.0|0.0  }
0x1bac   :  { %4175 = vmatprep.subr.bf16.mxu1 %v4656_v34 }
0x1bad   :  { %v3502_v36 = vmul.f32 -2.0, %v1864_v35 }
0x1baf   :  { %v1867_v37 = vmul.f32 1.442695, %v3502_v36  ;;  %v2101_v36 = vld [vmem:[#allocation6 + $0x18] sm:$0xff] }
0x1bb1   :  { %4542 = vpow2.f32 %v1867_v37  ;;  %v4179_v37 = vpack.c.bf16 %v2101_v36, %v2100_v33  ;;  %v2376_v36 = vld [vmem:[#allocation6 + $0xf8] sm:$0xff] }
0x1bbb   :  { %v4543_v38 = vpop.eup %4542 }
0x1bbc   :  { %v1869_v39 = vadd.f32 1.0, %v4543_v38  ;;  %v2102_v38 = vld [vmem:[#allocation6 + $0x20] sm:$0xff] }
0x1bbe   :  { %4544 = vrcp.f32 %v1869_v39  ;;  %v2103_v39 = vld [vmem:[#allocation6 + $0x28] sm:$0xff] }
0x1bbf   :  { %v4182_v40 = vpack.c.bf16 %v2103_v39, %v2102_v38  ;;  %v2377_v38 = vld [vmem:[#allocation6 + $0x100] sm:$0xff]  ;;  %v2378_v39 = vld [vmem:[#allocation6 + $0x108] sm:$0xff] }
0x1bc8   :  { %v4545_v41 = vpop.eup %4544 }
0x1bc9   :  { %v1872_v42 = vmul.f32 2.0, %v4545_v41  ;;  %v2104_v41 = vld [vmem:[#allocation6 + $0x30] sm:$0xff] }
0x1bcb   :  { %v3503_v43 = vadd.f32 -1.0, %v1872_v42  ;;  %v2105_v42 = vld [vmem:[#allocation6 + $0x38] sm:$0xff] }
0x1bcd   :  { %v1874_v44 = vmul.f32 %v4539_v28, %v3503_v43  ;;  %v4185_v43 = vpack.c.bf16 %v2105_v42, %v2104_v41 }
0x1bcf   :  { %1878 = vrot.lane.b32.xlu1 %v1874_v44, %s4655_s23 }
0x1c41   :  { %v1879_v45 = vpop.permute.xlu1 %1878 }
0x1c42   :  { %3504 = vmatmul.mubr.msk.f32.vlgmr.msra.gmra.mrb[28].mxu0 %vm324_vm1, %v1879_v45 }
0x1c43   :  { %4162 = vmatpush1.bf16.msra.mxu0 %v4726_v10  ;;  %2057 = vmatprep.mubr.f32.mxu0 %v4654_v0 }
0x1c44   :  { %4164 = vmatprep.subr.bf16.mxu0 %v4733_v15 }
0x1c47   :  { %4166 = vmatpush1.bf16.msra.mxu0 %v4736_v18 }
0x1c48   :  { %4168 = vmatprep.subr.bf16.mxu0 %v4739_v19 }
0x1c4b   :  { %4170 = vmatpush1.bf16.msra.mxu0 %v4747_v25 }
0x1c4c   :  { %4172 = vmatprep.subr.bf16.mxu0 %v4750_v26 }
0x1c4f   :  { %4174 = vmatpush1.bf16.msra.mxu0 %v4758_v30 }
0x1d15   :  { %v1948_v48 = vpop.f32.mrb[28].mxu0 }
0x1d16   :  { %v1953_v49 = vadd.f32 %v1948_v48, %v263_v46  ;;  %v1950_v50 = vpop.f32.mrb[29].mxu0 }
0x1d17   :  { %v1954_v10 = vadd.f32 %v1950_v50, %v265_v47 }
0x1d18   :  { %v3505_v51 = vmul.f32 -1.442695, %v1953_v49 }
0x1d19   :  { %v3506_v52 = vmul.f32 -1.442695, %v1954_v10 }
0x1d1a   :  { %4546 = vpow2.f32 %v3505_v51 }
0x1d1b   :  { %4548 = vpow2.f32 %v3506_v52 }
0x1d24   :  { %v4547_v15 = vpop.eup %4546 }
0x1d25   :  { %v4549_v18 = vpop.eup %4548  ;;  %v1961_v19 = vadd.f32 1.0, %v4547_v15 }
0x1d26   :  { %v1962_v53 = vadd.f32 1.0, %v4549_v18  ;;  %v2187_v18 = vld [vmem:[#allocation6 + $0x48] sm:$0xff] }
0x1d28   :  { %4550 = vrcp.f32 %v1962_v53  ;;  %v2188_v53 = vld [vmem:[#allocation6 + $0x50] sm:$0xff] }
0x1d29   :  { %4552 = vrcp.f32 %v1961_v19  ;;  %v4188_v19 = vpack.c.bf16 %v2188_v53, %v2187_v18  ;;  %v2463_v18 = vld [vmem:[#allocation6 + $0x138] sm:$0xff] }
0x1d32   :  { %v4551_v25 = vpop.eup %4550 }
0x1d33   :  { %v1967_v26 = vmul.f32 2.0, %v4551_v25  ;;  %v4553_v30 = vpop.eup %4552 }
0x1d34   :  { %v1969_v56 = vmul.f32 %v4553_v30, %v1864_v35  ;;  %v4176_v35 = vpack.c.bf16 %v2099_v32, %v2098_v7  ;;  %v2374_v32 = vld [vmem:[#allocation6 + $0xe8] sm:$0xff] }
0x1d35   :  { %v3507_v54 = vadd.f32 -1.0, %v1967_v26  ;;  %v2190_v26 = vld [vmem:[#allocation6 + $0x60] sm:$0xff] }
0x1d36   :  { %4177 = vmatpush3.bf16.msra.mxu1 %v4176_v35  ;;  %v2375_v35 = vld [vmem:[#allocation6 + $0xf0] sm:$0xff] }
0x1d37   :  { %v1970_v55 = vmul.f32 %v4553_v30, %v3507_v54  ;;  %4178 = vmatprep.subr.bf16.mxu1 %v4656_v34 }
0x1d39   :  { %1972 = vrot.lane.b32.xlu0 %v1970_v55, %s4655_s23  ;;  %v2191_v55 = vld [vmem:[#allocation6 + $0x68] sm:$0xff] }
0x1d3a   :  { %4180 = vmatpush3.bf16.msra.mxu1 %v4179_v37  ;;  %v4218_v37 = vpack.c.bf16 %v2376_v36, %v2375_v35 }
0x1d3b   :  { %4181 = vmatprep.subr.bf16.mxu1 %v4656_v34 }
0x1d3e   :  { %4183 = vmatpush3.bf16.msra.mxu1 %v4182_v40  ;;  %v4221_v40 = vpack.c.bf16 %v2378_v39, %v2377_v38  ;;  %v2648_v38 = vld [vmem:[#allocation6 + $0x1e0] sm:$0xff] }
0x1d3f   :  { %4184 = vmatprep.subr.bf16.mxu1 %v4656_v34 }
0x1d42   :  { %4186 = vmatpush3.bf16.msra.mxu1 %v4185_v43 }
0x1d43   :  { %4187 = vmatprep.subr.bf16.mxu1 %v4656_v34 }
0x1dab   :  { %v1973_v57 = vpop.permute.xlu0 %1972 }
0x1dac   :  { %v4998_v58 = vadd.f32 %v1973_v57, %v1969_v56  ;;  %v2192_v56 = vld [vmem:[#allocation6 + $0x70] sm:$0xff] }
0x1dad   :  { %v4194_v57 = vpack.c.bf16 %v2192_v56, %v2191_v55  ;;  %v2467_v55 = vld [vmem:[#allocation6 + $0x158] sm:$0xff] }
0x1dae   :  { %v3508_v59 = vmul.f32 -2.0, %v4998_v58 }
0x1db0   :  { %v1978_v60 = vmul.f32 1.442695, %v3508_v59  ;;  %v2194_v59 = vld [vmem:[#allocation6 + $0x80] sm:$0xff] }
0x1db2   :  { %4554 = vpow2.f32 %v1978_v60 }
0x1dbc   :  { %v4555_v61 = vpop.eup %4554 }
0x1dbd   :  { %v1980_v62 = vadd.f32 1.0, %v4555_v61  ;;  %v3516_v61 = vld [vmem:[#allocation6 + $0x40] ss:$0 sm:$0xff] }
0x1dbf   :  { %4556 = vrcp.f32 %v1980_v62  ;;  %v2274_v62 = vld [vmem:[#allocation6 + $0x90] sm:$0xff] }
0x1dc9   :  { %v4557_v1 = vpop.eup %4556 }
0x1dca   :  { %v1983_v2 = vmul.f32 2.0, %v4557_v1 }
0x1dcc   :  { %v3509_v3 = vadd.f32 -1.0, %v1983_v2 }
0x1dce   :  { %v1985_v4 = vmul.f32 %v4551_v25, %v3509_v3  ;;  %v2189_v25 = vld [vmem:[#allocation6 + $0x58] sm:$0xff] }
0x1dcf   :  { %v4191_v30 = vpack.c.bf16 %v2190_v26, %v2189_v25  ;;  %v2464_v25 = vld [vmem:[#allocation6 + $0x140] sm:$0xff]  ;;  %v2465_v26 = vld [vmem:[#allocation6 + $0x148] sm:$0xff] }
0x1dd0   :  { %1989 = vrot.lane.b32.xlu1 %v1985_v4, %s4655_s23  ;;  %v4200_v4 = vpack.c.bf16 %v2275_v63, %v2274_v62 }
0x1e42   :  { %v1990_v5 = vpop.permute.xlu1 %1989 }
0x1e43   :  { %3510 = vmatmul.mubr.msk.f32.vlgmr.msra.gmra.mrb[30].mxu0 %vm324_vm1, %v1990_v5 }
0x1f16   :  { %v2059_v9 = vpop.f32.mrb[30].mxu0 }
0x1f17   :  { %v2064_v11 = vadd.f32 %v2059_v9, %v269_v6  ;;  %v2061_v12 = vpop.f32.mrb[31].mxu0  ;;  %v2276_v6 = vld [vmem:[#allocation6 + $0xa0] sm:$0xff] }
0x1f18   :  { %v2065_v13 = vadd.f32 %v2061_v12, %v271_v8  ;;  %v2277_v8 = vld [vmem:[#allocation6 + $0xa8] sm:$0xff]  ;;  %v2279_v12 = vld [vmem:[#allocation6 + $0xb8] sm:$0xff] }
0x1f19   :  { %v3511_v14 = vmul.f32 -1.442695, %v2064_v11  ;;  %v4203_v9 = vpack.c.bf16 %v2277_v8, %v2276_v6  ;;  %v2278_v11 = vld [vmem:[#allocation6 + $0xb0] sm:$0xff]  ;;  %v2553_v8 = vld [vmem:[#allocation6 + $0x198] sm:$0xff] }
0x1f1a   :  { %v3512_v16 = vmul.f32 -1.442695, %v2065_v13  ;;  %v4206_v13 = vpack.c.bf16 %v2279_v12, %v2278_v11  ;;  %v2552_v6 = vld [vmem:[#allocation6 + $0x190] sm:$0xff]  ;;  %v2554_v11 = vld [vmem:[#allocation6 + $0x1a0] sm:$0xff]  ;;  %v2555_v12 = vld [vmem:[#allocation6 + $0x1a8] sm:$0xff] }
0x1f1b   :  { %4558 = vpow2.f32 %v3511_v14  ;;  %v2280_v14 = vld [vmem:[#allocation6 + $0xc0] sm:$0xff] }
0x1f1c   :  { %4560 = vpow2.f32 %v3512_v16  ;;  %v2281_v16 = vld [vmem:[#allocation6 + $0xc8] sm:$0xff] }
0x1f25   :  { %v4559_v17 = vpop.eup %4558 }
0x1f26   :  { %v4561_v20 = vpop.eup %4560  ;;  %v2072_v22 = vadd.f32 1.0, %v4559_v17  ;;  %v4209_v17 = vpack.c.bf16 %v2281_v16, %v2280_v14  ;;  %v2556_v14 = vld [vmem:[#allocation6 + $0x1b0] sm:$0xff]  ;;  %v3523_v16 = vld [vmem:[#allocation6 + $0x168] ss:$0 sm:$0xff] }
0x1f27   :  { %v2073_v21 = vadd.f32 1.0, %v4561_v20  ;;  %v3518_v20 = vld [vmem:[#allocation6 + $0x88] ss:$0 sm:$0xff] }
0x1f29   :  { %4562 = vrcp.f32 %v2073_v21 }
0x1f2a   :  { %4564 = vrcp.f32 %v2072_v22 }
0x1f33   :  { %v4563_v23 = vpop.eup %4562 }
0x1f34   :  { %v2078_v24 = vmul.f32 2.0, %v4563_v23  ;;  %v4565_v28 = vpop.eup %4564 }
0x1f35   :  { %v2080_v44 = vmul.f32 %v4565_v28, %v4998_v58  ;;  %v2193_v58 = vld [vmem:[#allocation6 + $0x78] sm:$0xff] }
0x1f36   :  { %v3513_v27 = vadd.f32 -1.0, %v2078_v24  ;;  %v4197_v60 = vpack.c.bf16 %v2194_v59, %v2193_v58  ;;  %v3521_v58 = vld [vmem:[#allocation6 + $0x118] ss:$0 sm:$0xff]  ;;  %v2548_v59 = vld [vmem:[#allocation6 + $0x170] sm:$0xff] }
0x1f38   :  { %v2081_v29 = vmul.f32 %v4565_v28, %v3513_v27  ;;  %v2371_v27 = vld [vmem:[#allocation6 + $0xd0] sm:$0xff]  ;;  %v2372_v28 = vld [vmem:[#allocation6 + $0xd8] sm:$0xff] }
0x1f39   :  { %v4212_v7 = vpack.c.bf16 %v2372_v28, %v2371_v27  ;;  %v2643_v28 = vld [vmem:[#allocation6 + $0x1b8] sm:$0xff] }
0x1f3a   :  { %2083 = vrot.lane.b32.xlu0 %v2081_v29, %s4655_s23  ;;  %v2373_v29 = vld [vmem:[#allocation6 + $0xe0] sm:$0xff] }
0x1f3b   :  { %v4215_v33 = vpack.c.bf16 %v2374_v32, %v2373_v29  ;;  %v2644_v29 = vld [vmem:[#allocation6 + $0x1c0] sm:$0xff] }
0x1f3c   :  { %v4248_v32 = vpack.c.bf16 %v2644_v29, %v2643_v28  ;;  %v2916_v29 = vld [vmem:[#allocation6 + $0x2b8] sm:$0xff] }
0x1f3e   :  { %2358 = vrot.lane.b32.xlu0 %v5011_v31, %s4653_s13 }
0x1fac   :  { %v2084_v45 = vpop.permute.xlu0 %2083 }
0x1fad   :  { %v2086_v46 = vadd.f32 %v2084_v45, %v2080_v44  ;;  %v2379_v44 = vld [vmem:[#allocation6 + $0x110] sm:$0xff] }
0x1faf   :  { %v3514_v47 = vmul.f32 -2.0, %v2086_v46 }
0x1fb0   :  { %v2359_v46 = vpop.permute.xlu0 %2358 }
0x1fb1   :  { %v2089_v48 = vmul.f32 1.442695, %v3514_v47 }
0x1fb3   :  { %4566 = vpow2.f32 %v2089_v48  ;;  %v2460_v48 = vld [vmem:[#allocation6 + $0x120] sm:$0xff] }
0x1fbd   :  { %v4567_v49 = vpop.eup %4566 }
0x1fbe   :  { %v2091_v50 = vadd.f32 1.0, %v4567_v49  ;;  %v2461_v49 = vld [vmem:[#allocation6 + $0x128] sm:$0xff] }
0x1fc0   :  { %4568 = vrcp.f32 %v2091_v50 }
0x1fca   :  { %v4569_v10 = vpop.eup %4568 }
0x1fcb   :  { %v2094_v51 = vmul.f32 2.0, %v4569_v10 }
0x1fcd   :  { %v3515_v52 = vadd.f32 -1.0, %v2094_v51  ;;  %v4224_v51 = vpack.c.bf16 %v2461_v49, %v2460_v48 }
0x1fcf   :  { %v2096_v15 = vmul.f32 %v4563_v23, %v3515_v52 }
0x1fd1   :  { %2367 = vrot.lane.b32.xlu0 %v2096_v15, %s4658_s1  ;;  %2112 = vrot.lane.b32.xlu1 %v2096_v15, %s4655_s23  ;;  %v2462_v15 = vld [vmem:[#allocation6 + $0x130] sm:$0xff] }
0x2043   :  { %v2113_v54 = vpop.permute.xlu1 %2112  ;;  %v2368_v52 = vpop.permute.xlu0 %2367 }
0x2044   :  { %3680 = vmatmul.mubr.msk.f32.vlgmr.msra.gmra.mrb[24].mxu1 %vm324_vm1, %v2113_v54  ;;  %v4230_v54 = vpack.c.bf16 %v2465_v26, %v2464_v25  ;;  %v2738_v26 = vld [vmem:[#allocation6 + $0x238] sm:$0xff] }
0x2045   :  { %4189 = vmatpush3.bf16.msra.mxu1 %v4188_v19  ;;  %3698 = vmatprep.mubr.msk.f32.mxu1 %vm4657_vm2, %v4654_v0  ;;  %v4227_v19 = vpack.c.bf16 %v2463_v18, %v2462_v15  ;;  %v2735_v15 = vld [vmem:[#allocation6 + $0x220] sm:$0xff]  ;;  %v2736_v18 = vld [vmem:[#allocation6 + $0x228] sm:$0xff] }
0x2046   :  { %4190 = vmatprep.subr.bf16.mxu1 %v4656_v34  ;;  %v4266_v25 = vpack.c.bf16 %v2736_v18, %v2735_v15  ;;  %v3089_v15 = vld [vmem:[#allocation6 + $0x318] sm:$0xff] }
0x2049   :  { %4192 = vmatpush3.bf16.msra.mxu1 %v4191_v30  ;;  %v2466_v30 = vld [vmem:[#allocation6 + $0x150] sm:$0xff] }
0x204a   :  { %4193 = vmatprep.subr.bf16.mxu1 %v4656_v34  ;;  %v4233_v56 = vpack.c.bf16 %v2467_v55, %v2466_v30  ;;  %v2739_v30 = vld [vmem:[#allocation6 + $0x240] sm:$0xff]  ;;  %v2740_v55 = vld [vmem:[#allocation6 + $0x248] sm:$0xff] }
0x204d   :  { %4195 = vmatpush3.bf16.msra.mxu1 %v4194_v57  ;;  %v2468_v57 = vld [vmem:[#allocation6 + $0x160] sm:$0xff] }
0x204e   :  { %4196 = vmatprep.subr.bf16.mxu1 %v4656_v34 }
0x2051   :  { %4198 = vmatpush3.bf16.msra.mxu1 %v4197_v60  ;;  %v2549_v60 = vld [vmem:[#allocation6 + $0x178] sm:$0xff] }
0x2052   :  { %4199 = vmatprep.subr.bf16.mxu1 %v4656_v34 }
0x2117   :  { %v2182_v1 = vpop.f32.mrb[24].mxu1 }
0x2118   :  { %v2183_v2 = vadd.f32 %v3516_v61, %v2182_v1  ;;  %v3681_v3 = vpop.f32.mrb[25].mxu1  ;;  %v4236_v1 = vpack.c.bf16 %v2549_v60, %v2548_v59  ;;  %v3526_v59 = vld [vmem:[#allocation6 + $0x208] ss:$0 sm:$0xff] }
0x2119   :  { %v2550_v3 = vld [vmem:[#allocation6 + $0x180] sm:$0xff]  ;;  %v2822_v60 = vld [vmem:[#allocation6 + $0x268] sm:$0xff] }
0x211a   :  { %v2186_v5 = vmax.f32 %v2183_v2, 0.0 }
0x211c   :  { %3699 = vmatmul.mubr.msk.f32.vlgmr.msra.gmra.mrb[26].mxu1 %vm324_vm1, %v2186_v5 }
0x211d   :  { %4201 = vmatpush3.bf16.msra.mxu1 %v4200_v4  ;;  %3717 = vmatprep.mubr.msk.f32.mxu1 %vm4657_vm2, %v4654_v0  ;;  %v2551_v4 = vld [vmem:[#allocation6 + $0x188] sm:$0xff] }
0x211e   :  { %4202 = vmatprep.subr.bf16.mxu1 %v4656_v34  ;;  %v4239_v5 = vpack.c.bf16 %v2551_v4, %v2550_v3  ;;  %v2824_v4 = vld [vmem:[#allocation6 + $0x278] sm:$0xff] }
0x2121   :  { %4204 = vmatpush3.bf16.msra.mxu1 %v4203_v9  ;;  %v4242_v9 = vpack.c.bf16 %v2553_v8, %v2552_v6  ;;  %v2826_v8 = vld [vmem:[#allocation6 + $0x288] sm:$0xff] }
0x2122   :  { %4205 = vmatprep.subr.bf16.mxu1 %v4656_v34 }
0x2125   :  { %4207 = vmatpush3.bf16.msra.mxu1 %v4206_v13  ;;  %v4245_v13 = vpack.c.bf16 %v2555_v12, %v2554_v11  ;;  %v2828_v12 = vld [vmem:[#allocation6 + $0x298] sm:$0xff] }
0x2126   :  { %4208 = vmatprep.subr.bf16.mxu1 %v4656_v34 }
0x2129   :  { %4210 = vmatpush3.bf16.msra.mxu1 %v4209_v17 }
0x212a   :  { %4211 = vmatprep.subr.bf16.mxu1 %v4656_v34 }
0x21ef   :  { %v2269_v21 = vpop.f32.mrb[26].mxu1 }
0x21f0   :  { %v2270_v22 = vadd.f32 %v3518_v20, %v2269_v21  ;;  %v3700_v23 = vpop.f32.mrb[27].mxu1 }
0x21f2   :  { %v2273_v24 = vmax.f32 %v2270_v22, 0.0 }
0x21f4   :  { %3718 = vmatmul.mubr.msk.f32.vlgmr.msra.gmra.mrb[28].mxu1 %vm324_vm1, %v2273_v24 }
0x21f5   :  { %3738 = vmatprep.mubr.msk.f32.mxu1 %vm4657_vm2, %v4654_v0  ;;  %4213 = vmatpush3.bf16.msra.mxu1 %v4212_v7  ;;  %v2645_v7 = vld [vmem:[#allocation6 + $0x1c8] sm:$0xff] }
0x21f6   :  { %4214 = vmatprep.subr.bf16.mxu1 %v4656_v34 }
0x21f9   :  { %4216 = vmatpush3.bf16.msra.mxu1 %v4215_v33  ;;  %v2646_v33 = vld [vmem:[#allocation6 + $0x1d0] sm:$0xff] }
0x21fa   :  { %4217 = vmatprep.subr.bf16.mxu1 %v4656_v34  ;;  %v4251_v35 = vpack.c.bf16 %v2646_v33, %v2645_v7  ;;  %v2996_v7 = vld [vmem:[#allocation6 + $0x2c8] sm:$0xff] }
0x21fd   :  { %4219 = vmatpush3.bf16.msra.mxu1 %v4218_v37  ;;  %v2647_v37 = vld [vmem:[#allocation6 + $0x1d8] sm:$0xff] }
0x21fe   :  { %4220 = vmatprep.subr.bf16.mxu1 %v4656_v34 }
0x2201   :  { %4222 = vmatpush3.bf16.msra.mxu1 %v4221_v40  ;;  %v4254_v40 = vpack.c.bf16 %v2648_v38, %v2647_v37  ;;  %v3000_v38 = vld [vmem:[#allocation6 + $0x2e8] sm:$0xff] }
0x2202   :  { %3736 = vmatprep.subr.mxu1 %v4654_v0 }
0x2205   :  { %3737 = vmatpush3.msra.mxu1 %v2379_v44 }
0x2206   :  { %4223 = vmatprep.subr.bf16.mxu1 %v4656_v34 }
0x22c7   :  { %v5046_v41 = vpop.f32.mrb[28].mxu1 }
0x22c8   :  { %v2355_v42 = vmul.f32 1.442695, %v5046_v41  ;;  %v3719_v43 = vpop.f32.mrb[29].mxu1 }
0x22c9   :  { %v2650_v43 = vld [vmem:[#allocation6 + $0x1f0] sm:$0xff] }
0x22ca   :  { %4570 = vpow2.f32 %v2355_v42  ;;  %v2649_v42 = vld [vmem:[#allocation6 + $0x1e8] sm:$0xff] }
0x22cb   :  { %v4257_v44 = vpack.c.bf16 %v2650_v43, %v2649_v42  ;;  %v3002_v42 = vld [vmem:[#allocation6 + $0x2f8] sm:$0x3] }
0x22d4   :  { %v4571_v45 = vpop.eup %4570 }
0x22d5   :  { %v2361_v47 = vmul.f32 %v4571_v45, %v2359_v46  ;;  %v2651_v45 = vld [vmem:[#allocation6 + $0x1f8] sm:$0xff]  ;;  %v2652_v46 = vld [vmem:[#allocation6 + $0x200] sm:$0xff] }
0x22d7   :  { %2363 = vrot.lane.b32.xlu1 %v2361_v47, %s4659_s24  ;;  %v4260_v47 = vpack.c.bf16 %v2652_v46, %v2651_v45  ;;  %v3531_v46 = vld [vmem:[#allocation6 + $0x2c0] ss:$0 sm:$0xff] }
0x2349   :  { %v2364_v50 = vpop.permute.xlu1 %2363 }
0x234a   :  { %v5052_v10 = vadd.f32 %v2364_v50, %v5046_v41  ;;  %v2734_v50 = vld [vmem:[#allocation6 + $0x218] sm:$0xff] }
0x234c   :  { %v5056_v53 = vsel %vm64_vm0, %v5052_v10, %v2368_v52 }
0x234d   :  { %3739 = vmatmul.mubr.msk.f32.vlgmr.msra.gmra.mrb[30].mxu1 %vm2385_vm3, %v5056_v53 }
0x234e   :  { %4225 = vmatpush3.bf16.msra.mxu1 %v4224_v51  ;;  %3759 = vmatprep.mubr.msk.f32.mxu1 %vm4657_vm2, %v4654_v0 }
0x234f   :  { %4226 = vmatprep.subr.bf16.mxu1 %v4656_v34 }
0x2352   :  { %4228 = vmatpush3.bf16.msra.mxu1 %v4227_v19 }
0x2353   :  { %4229 = vmatprep.subr.bf16.mxu1 %v4656_v34 }
0x2356   :  { %4231 = vmatpush3.bf16.msra.mxu1 %v4230_v54 }
0x2357   :  { %4232 = vmatprep.subr.bf16.mxu1 %v4656_v34 }
0x235a   :  { %4234 = vmatpush3.bf16.msra.mxu1 %v4233_v56  ;;  %v4272_v56 = vpack.c.bf16 %v2740_v55, %v2739_v30  ;;  %v3092_v30 = vld [vmem:[#allocation6 + $0x330] sm:$0xff] }
0x235b   :  { %3757 = vmatprep.subr.mxu1 %v4654_v0 }
0x235e   :  { %3758 = vmatpush3.msra.mxu1 %v2468_v57  ;;  %v2742_v57 = vld [vmem:[#allocation6 + $0x258] sm:$0xff] }
0x235f   :  { %4235 = vmatprep.subr.bf16.mxu1 %v4656_v34 }
0x2420   :  { %v2455_v61 = vpop.f32.mrb[30].mxu1 }
0x2421   :  { %v2456_v62 = vadd.f32 %v3521_v58, %v2455_v61  ;;  %v3740_v63 = vpop.f32.mrb[31].mxu1  ;;  %v2823_v61 = vld [vmem:[#allocation6 + $0x270] sm:$0xff] }
0x2423   :  { %v2459_v2 = vmax.f32 %v2456_v62, 0.0 }
0x2425   :  { %3760 = vmatmul.mubr.msk.f32.vlgmr.msra.gmra.mrb[32].mxu1 %vm2385_vm3, %v2459_v2  ;;  %v4278_v2 = vpack.c.bf16 %v2823_v61, %v2822_v60  ;;  %v3181_v60 = vld [vmem:[#allocation6 + $0x348] sm:$0xff] }
0x2426   :  { %4237 = vmatpush3.bf16.msra.mxu1 %v4236_v1  ;;  %3780 = vmatprep.mubr.msk.f32.mxu1 %vm4657_vm2, %v4654_v0 }
0x2427   :  { %4238 = vmatprep.subr.bf16.mxu1 %v4656_v34 }
0x242a   :  { %4240 = vmatpush3.bf16.msra.mxu1 %v4239_v5  ;;  %v2825_v5 = vld [vmem:[#allocation6 + $0x280] sm:$0xff] }
0x242b   :  { %4241 = vmatprep.subr.bf16.mxu1 %v4656_v34  ;;  %v4281_v6 = vpack.c.bf16 %v2825_v5, %v2824_v4 }
0x242e   :  { %4243 = vmatpush3.bf16.msra.mxu1 %v4242_v9  ;;  %v2827_v9 = vld [vmem:[#allocation6 + $0x290] sm:$0xff] }
0x242f   :  { %4244 = vmatprep.subr.bf16.mxu1 %v4656_v34  ;;  %v4284_v11 = vpack.c.bf16 %v2827_v9, %v2826_v8  ;;  %v3263_v8 = vld [vmem:[#allocation6 + $0x360] sm:$0xff]  ;;  %v3264_v9 = vld [vmem:[#allocation6 + $0x368] sm:$0xff] }
0x2432   :  { %4246 = vmatpush3.bf16.msra.mxu1 %v4245_v13  ;;  %v2829_v13 = vld [vmem:[#allocation6 + $0x2a0] sm:$0xff] }
0x2433   :  { %3778 = vmatprep.subr.mxu1 %v4654_v0 }
0x2436   :  { %3779 = vmatpush3.msra.mxu1 %v2556_v14  ;;  %v4287_v14 = vpack.c.bf16 %v2829_v13, %v2828_v12  ;;  %v4314_v12 = vpack.c.bf16 %v3264_v9, %v3263_v8  ;;  %v3266_v13 = vld [vmem:[#allocation6 + $0x378] sm:$0xff] }
0x2437   :  { %4247 = vmatprep.subr.bf16.mxu1 %v4656_v34 }
0x24f8   :  { %v2543_v17 = vpop.f32.mrb[32].mxu1 }
0x24f9   :  { %v2544_v20 = vadd.f32 %v3523_v16, %v2543_v17  ;;  %v3761_v21 = vpop.f32.mrb[33].mxu1  ;;  %v2830_v16 = vld [vmem:[#allocation6 + $0x2a8] sm:$0xff]  ;;  %v2831_v17 = vld [vmem:[#allocation6 + $0x2b0] sm:$0xff] }
0x24fa   :  { %v3528_v21 = vld [vmem:[#allocation6 + $0x260] ss:$0 sm:$0xff] }
0x24fb   :  { %v2547_v22 = vmax.f32 %v2544_v20, 0.0  ;;  %v4290_v20 = vpack.c.bf16 %v2831_v17, %v2830_v16  ;;  %v3267_v16 = vld [vmem:[#allocation6 + $0x380] sm:$0xff]  ;;  %v3268_v17 = vld [vmem:[#allocation6 + $0x388] sm:$0xff] }
0x24fd   :  { %3781 = vmatmul.mubr.msk.f32.vlgmr.msra.gmra.mrb[34].mxu1 %vm2385_vm3, %v2547_v22 }
0x24fe   :  { %3803 = vmatprep.mubr.msk.f32.mxu1 %vm4657_vm2, %v4654_v0  ;;  %4249 = vmatpush3.bf16.msra.mxu1 %v4248_v32  ;;  %v2997_v32 = vld [vmem:[#allocation6 + $0x2d0] sm:$0xff] }
0x24ff   :  { %4250 = vmatprep.subr.bf16.mxu1 %v4656_v34  ;;  %v4293_v33 = vpack.c.bf16 %v2997_v32, %v2996_v7 }
0x2502   :  { %4252 = vmatpush3.bf16.msra.mxu1 %v4251_v35  ;;  %v2998_v35 = vld [vmem:[#allocation6 + $0x2d8] sm:$0xff] }
0x2503   :  { %4253 = vmatprep.subr.bf16.mxu1 %v4656_v34 }
0x2506   :  { %4255 = vmatpush3.bf16.msra.mxu1 %v4254_v40 }
0x2507   :  { %4256 = vmatprep.subr.bf16.mxu1 %v4656_v34 }
0x250a   :  { %4258 = vmatpush3.bf16.msra.mxu1 %v4257_v44 }
0x250b   :  { %4259 = vmatprep.subr.bf16.mxu1 %v4656_v34 }
0x250e   :  { %4261 = vmatpush3.bf16.msra.mxu1 %v4260_v47 }
0x250f   :  { %4262 = vmatprep.subr.bf16.mxu1 %v4656_v34 }
0x25d0   :  { %v5078_v23 = vpop.f32.mrb[34].mxu1 }
0x25d1   :  { %v2630_v24 = vmul.f32 1.442695, %v5078_v23  ;;  %v3782_v27 = vpop.f32.mrb[35].mxu1 }
0x25d3   :  { %4572 = vpow2.f32 %v2630_v24 }
0x25dd   :  { %v4573_v36 = vpop.eup %4572 }
0x25de   :  { %v2632_v39 = vmul.f32 %v4573_v36, %v5011_v31  ;;  %v2999_v36 = vld [vmem:[#allocation6 + $0x2e0] sm:$0xff] }
0x25df   :  { %v4296_v37 = vpack.c.bf16 %v2999_v36, %v2998_v35  ;;  %v3540_v36 = vld [vmem:[#allocation6 + $0x3a0] ss:$0 sm:$0xff] }
0x25e0   :  { %2634 = vrot.lane.b32.xlu1 %v2632_v39, %s4659_s24  ;;  %v3001_v39 = vld [vmem:[#allocation6 + $0x2f0] sm:$0xff] }
0x25e1   :  { %v4299_v40 = vpack.c.bf16 %v3001_v39, %v3000_v38 }
0x25e4   :  { %2907 = vrot.lane.b32.xlu1 %v5011_v31, %s4659_s24  ;;  %v2733_v31 = vld [vmem:[#allocation6 + $0x210] sm:$0xff] }
0x25e5   :  { %v4263_v51 = vpack.c.bf16 %v2734_v50, %v2733_v31 }
0x2652   :  { %v2635_v48 = vpop.permute.xlu1 %2634 }
0x2653   :  { %v5091_v49 = vadd.f32 %v2635_v48, %v5078_v23 }
0x2655   :  { %3170 = vrot.lane.b32.xlu1 %v5091_v49, %s4653_s13  ;;  %2639 = vrot.lane.b32.xlu0 %v5091_v49, %s4658_s1  ;;  %s4661_s13 = smov 96  }
0x2659   :  { %3350 = vrot.lane.b32.xlu1 %v5046_v41, %s4660_s25  ;;  %v2737_v41 = vld [vmem:[#allocation6 + $0x230] sm:$0xff] }
0x265a   :  { %v4269_v54 = vpack.c.bf16 %v2738_v26, %v2737_v41 }
0x26c7   :  { %v2640_v52 = vpop.permute.xlu0 %2639 }
0x26c8   :  { %v2642_v19 = vsel %vm2385_vm3, %v5056_v53, %v2640_v52  ;;  %v2741_v53 = vld [vmem:[#allocation6 + $0x250] sm:$0xff] }
0x26c9   :  { %3804 = vmatmul.mubr.msk.f32.vlgmr.msra.gmra.mrb[36].mxu1 %vm2658_vm4, %v2642_v19  ;;  %v4275_v58 = vpack.c.bf16 %v2742_v57, %v2741_v53  ;;  %v3088_v52 = vld [vmem:[#allocation6 + $0x310] sm:$0xff]  ;;  %v3090_v19 = vld [vmem:[#allocation6 + $0x320] sm:$0xff] }
0x26ca   :  { %4264 = vmatpush3.bf16.msra.mxu1 %v4263_v51  ;;  %3826 = vmatprep.mubr.msk.f32.mxu1 %vm4657_vm2, %v4654_v0  ;;  %v3087_v51 = vld [vmem:[#allocation6 + $0x308] sm:$0xff] }
0x26cb   :  { %4265 = vmatprep.subr.bf16.mxu1 %v4656_v34  ;;  %v4302_v18 = vpack.c.bf16 %v3088_v52, %v3087_v51 }
0x26ce   :  { %4267 = vmatpush3.bf16.msra.mxu1 %v4266_v25  ;;  %v4305_v25 = vpack.c.bf16 %v3090_v19, %v3089_v15 }
0x26cf   :  { %4268 = vmatprep.subr.bf16.mxu1 %v4656_v34 }
0x26d2   :  { %4270 = vmatpush3.bf16.msra.mxu1 %v4269_v54  ;;  %v3091_v54 = vld [vmem:[#allocation6 + $0x328] sm:$0xff] }
0x26d3   :  { %4271 = vmatprep.subr.bf16.mxu1 %v4656_v34  ;;  %v4308_v55 = vpack.c.bf16 %v3092_v30, %v3091_v54 }
0x26d6   :  { %4273 = vmatpush3.bf16.msra.mxu1 %v4272_v56  ;;  %v3093_v56 = vld [vmem:[#allocation6 + $0x338] sm:$0x3] }
0x26d7   :  { %4274 = vmatprep.subr.bf16.mxu1 %v4656_v34 }
0x26da   :  { %4276 = vmatpush3.bf16.msra.mxu1 %v4275_v58  ;;  %v3533_v58 = vld [vmem:[#allocation6 + $0x300] ss:$0 sm:$0xff] }
0x26db   :  { %4277 = vmatprep.subr.bf16.mxu1 %v4656_v34 }
0x279c   :  { %v2728_v62 = vpop.f32.mrb[36].mxu1 }
0x279d   :  { %v2729_v63 = vadd.f32 %v3526_v59, %v2728_v62  ;;  %v3805_v1 = vpop.f32.mrb[37].mxu1  ;;  %v3180_v59 = vld [vmem:[#allocation6 + $0x340] sm:$0xff] }
0x279e   :  { %v4311_v1 = vpack.c.bf16 %v3181_v60, %v3180_v59 }
0x279f   :  { %v2732_v3 = vmax.f32 %v2729_v63, 0.0 }
0x27a1   :  { %3827 = vmatmul.mubr.msk.f32.vlgmr.msra.gmra.mrb[38].mxu1 %vm2658_vm4, %v2732_v3  ;;  %v3182_v3 = vld [vmem:[#allocation6 + $0x350] sm:$0xff] }
0x27a2   :  { %4279 = vmatpush3.bf16.msra.mxu1 %v4278_v2  ;;  %3849 = vmatprep.mubr.msk.f32.mxu1 %vm4657_vm2, %v4654_v0 }
0x27a3   :  { %4280 = vmatprep.subr.bf16.mxu1 %v4656_v34 }
0x27a6   :  { %4282 = vmatpush3.bf16.msra.mxu1 %v4281_v6 }
0x27a7   :  { %4283 = vmatprep.subr.bf16.mxu1 %v4656_v34 }
0x27aa   :  { %4285 = vmatpush3.bf16.msra.mxu1 %v4284_v11  ;;  %v3265_v11 = vld [vmem:[#allocation6 + $0x370] sm:$0xff] }
0x27ab   :  { %4286 = vmatprep.subr.bf16.mxu1 %v4656_v34 }
0x27ae   :  { %4288 = vmatpush3.bf16.msra.mxu1 %v4287_v14  ;;  %v4317_v14 = vpack.c.bf16 %v3266_v13, %v3265_v11 }
0x27af   :  { %4289 = vmatprep.subr.bf16.mxu1 %v4656_v34 }
0x27b2   :  { %4291 = vmatpush3.bf16.msra.mxu1 %v4290_v20  ;;  %v4320_v20 = vpack.c.bf16 %v3268_v17, %v3267_v16 }
0x27b3   :  { %3852 = vmatprep.subr.mxu1 %v4654_v0 }
0x2874   :  { %v2817_v22 = vpop.f32.mrb[38].mxu1 }
0x2875   :  { %v2818_v24 = vadd.f32 %v3528_v21, %v2817_v22  ;;  %v3828_v27 = vpop.f32.mrb[39].mxu1 }
0x2876   :  { %v3538_v27 = vld [vmem:[#allocation6 + $0x358] ss:$0 sm:$0xff] }
0x2877   :  { %v2821_v28 = vmax.f32 %v2818_v24, 0.0 }
0x2879   :  { %3850 = vmatmul.mubr.msk.f32.vlgmr.msra.gmra.mrb[40].mxu1 %vm2658_vm4, %v2821_v28 }
0x287a   :  { %3853 = vmatpush3.msra.mxu1 %v2916_v29  ;;  %3854 = vmatprep.mubr.msk.f32.mxu1 %vm4657_vm2, %v4654_v0 }
0x287b   :  { %4292 = vmatprep.subr.bf16.mxu1 %v4656_v34 }
0x287d   :  { %3855 = vmatmul.mubr.msk.f32.vlgmr.msra.gmra.mrb[42].mxu1 %vm64_vm0, %v5052_v10 }
0x287e   :  { %4294 = vmatpush3.bf16.msra.mxu1 %v4293_v33  ;;  %3871 = vmatprep.mubr.msk.f32.mxu1 %vm4657_vm2, %v4654_v0 }
0x287f   :  { %4295 = vmatprep.subr.bf16.mxu1 %v4656_v34 }
0x2882   :  { %4297 = vmatpush3.bf16.msra.mxu1 %v4296_v37 }
0x2883   :  { %4298 = vmatprep.subr.bf16.mxu1 %v4656_v34 }
0x2886   :  { %4300 = vmatpush3.bf16.msra.mxu1 %v4299_v40 }
0x2887   :  { %3869 = vmatprep.subr.mxu1 %v4654_v0 }
0x288a   :  { %3870 = vmatpush3.msk.msra.mxu1 %vm3012_vm5, %v3002_v42 }
0x288b   :  { %4301 = vmatprep.subr.bf16.mxu1 %v4656_v34 }
0x294c   :  { %v2901_v43 = vpop.f32.mrb[40].mxu1 }
0x294d   :  { %v2905_v44 = vmul.f32 1.442695, %v2901_v43  ;;  %3358 = vrot.lane.b32.xlu1 %v2901_v43, %s4655_s23  ;;  %v3851_v45 = vpop.f32.mrb[41].mxu1  ;;  %s4663_s23 = smov 48  }
0x294f   :  { %4574 = vpow2.f32 %v2905_v44 }
0x2950   :  { %v2991_v47 = vpop.f32.mrb[42].mxu1 }
0x2951   :  { %v2992_v48 = vadd.f32 %v3531_v46, %v2991_v47  ;;  %3365 = vrot.lane.b32.xlu1 %v5091_v49, %s4661_s13  ;;  %v3856_v31 = vpop.f32.mrb[43].mxu1  ;;  %v2908_v49 = vpop.permute.xlu1 %2907 }
0x2953   :  { %v2995_v50 = vmax.f32 %v2992_v48, 0.0 }
0x2955   :  { %3371 = vrot.lane.b32.xlu1 %v5052_v10, %s4662_s27  ;;  %3872 = vmatmul.mubr.msk.f32.vlgmr.msra.gmra.mrb[44].mxu1 %vm3008_vm6, %v2995_v50 }
0x2956   :  { %3888 = vmatprep.mubr.msk.f32.mxu1 %vm4657_vm2, %v4654_v0  ;;  %4303 = vmatpush3.bf16.msra.mxu1 %v4302_v18 }
0x2957   :  { %4304 = vmatprep.subr.bf16.mxu1 %v4656_v34 }
0x2959   :  { %v4575_v41 = vpop.eup %4574 }
0x295a   :  { %v2910_v26 = vmul.f32 %v4575_v41, %v2908_v49  ;;  %4306 = vmatpush3.bf16.msra.mxu1 %v4305_v25 }
0x295b   :  { %4307 = vmatprep.subr.bf16.mxu1 %v4656_v34 }
0x295c   :  { %2912 = vrot.lane.b32.xlu0 %v2910_v26, %s4659_s24 }
0x295e   :  { %4309 = vmatpush3.bf16.msra.mxu1 %v4308_v55 }
0x295f   :  { %3886 = vmatprep.subr.mxu1 %v4654_v0 }
0x2962   :  { %3887 = vmatpush3.msk.msra.mxu1 %vm3012_vm5, %v3093_v56 }
0x2963   :  { %4310 = vmatprep.subr.bf16.mxu1 %v4656_v34 }
0x29ce   :  { %v2913_v53 = vpop.permute.xlu0 %2912 }
0x29cf   :  { %v2915_v57 = vadd.f32 %v2913_v53, %v2901_v43 }
0x29d1   :  { %3174 = vrot.lane.b32.xlu0 %v2915_v57, %s4650_s26  ;;  %s4664_s26 = smov 80  }
0x29d5   :  { %3354 = vrot.lane.b32.xlu0 %v5078_v23, %s4663_s23  ;;  %v3171_v23 = vpop.permute.xlu1 %3170 }
0x29d6   :  { %v3177_v4 = vsel %vm64_vm0, %v5052_v10, %v3171_v23  ;;  %v3269_v10 = vld [vmem:[#allocation6 + $0x390] sm:$0xff] }
0x29d9   :  { %v3351_v33 = vpop.permute.xlu1 %3350 }
0x29dd   :  { %v3359_v35 = vpop.permute.xlu1 %3358 }
0x29e1   :  { %v3366_v42 = vpop.permute.xlu1 %3365 }
0x29e5   :  { %v3372_v31 = vpop.permute.xlu1 %3371 }
0x2a28   :  { %v3082_v61 = vpop.f32.mrb[44].mxu1 }
0x2a29   :  { %v3083_v62 = vadd.f32 %v3533_v58, %v3082_v61  ;;  %v3873_v63 = vpop.f32.mrb[45].mxu1 }
0x2a2b   :  { %v3086_v2 = vmax.f32 %v3083_v62, 0.0 }
0x2a2d   :  { %3889 = vmatmul.mubr.msk.f32.vlgmr.msra.gmra.mrb[46].mxu1 %vm3008_vm6, %v3086_v2 }
0x2a2e   :  { %4312 = vmatpush3.bf16.msra.mxu1 %v4311_v1  ;;  %3897 = vmatprep.mubr.msk.f32.mxu1 %vm4657_vm2, %v4654_v0 }
0x2a2f   :  { %3895 = vmatprep.subr.mxu1 %v4654_v0 }
0x2a32   :  { %3896 = vmatpush3.msra.mxu1 %v3182_v3 }
0x2a33   :  { %4313 = vmatprep.subr.bf16.mxu1 %v4656_v34 }
0x2a43   :  { %v3175_v5 = vpop.permute.xlu0 %3174 }
0x2a44   :  { %v3179_v6 = vsel %vm3178_vm7, %v3177_v4, %v3175_v5 }
0x2a45   :  { %3898 = vmatmul.mubr.msk.f32.vlgmr.msra.gmra.mrb[48].mxu1 %vm3188_vm8, %v3179_v6 }
0x2a46   :  { %3916 = vmatprep.mubr.msk.f32.mxu1 %vm4657_vm2, %v4654_v0  ;;  %4315 = vmatpush3.bf16.msra.mxu1 %v4314_v12  ;;  %v3270_v0 = vld [vmem:[#allocation6 + $0x398] sm:$0xff] }
0x2a47   :  { %4316 = vmatprep.subr.bf16.mxu1 %v4656_v34  ;;  %v4323_v21 = vpack.c.bf16 %v3270_v0, %v3269_v10 }
0x2a4a   :  { %4318 = vmatpush3.bf16.msra.mxu1 %v4317_v14 }
0x2a4b   :  { %4319 = vmatprep.subr.bf16.mxu1 %v4656_v34 }
0x2a4e   :  { %4321 = vmatpush3.bf16.msra.mxu1 %v4320_v20 }
0x2a4f   :  { %4322 = vmatprep.subr.bf16.mxu1 %v4656_v34  ;;  %v3355_v34 = vpop.permute.xlu0 %3354 }
0x2a52   :  { %4324 = vmatpush3.bf16.msra.mxu1 %v4323_v21 }
0x2b00   :  { %v3166_v22 = vpop.f32.mrb[46].mxu1 }
0x2b01   :  { %3362 = vrot.lane.b32.xlu0 %v3166_v22, %s4664_s26  ;;  %v3890_v24 = vpop.f32.mrb[47].mxu1 }
0x2b05   :  { %3368 = vrot.lane.b32.xlu0 %v2915_v57, %s4665_s28 }
0x2b18   :  { %v3258_v28 = vpop.f32.mrb[48].mxu1 }
0x2b19   :  { %v3259_v29 = vadd.f32 %v3538_v27, %v3258_v28  ;;  %v3899_v7 = vpop.f32.mrb[49].mxu1 }
0x2b1b   :  { %v3262_v32 = vmax.f32 %v3259_v29, 0.0 }
0x2b1d   :  { %3917 = vmatmul.mubr.msk.f32.vlgmr.msra.gmra.mrb[50].mxu1 %vm324_vm1, %v3262_v32 }
0x2b73   :  { %v3363_v38 = vpop.permute.xlu0 %3362 }
0x2b77   :  { %v3369_v47 = vpop.permute.xlu0 %3368 }
0x2bf0   :  { %v3345_v37 = vpop.f32.mrb[50].mxu1 }
0x2bf1   :  { %v3346_v39 = vadd.f32 %v3540_v36, %v3345_v37  ;;  %v3918_v40 = vpop.f32.mrb[51].mxu1 }
0x2bf3   :  { %v3375_v43 = vsel %vm3374_vm9, %v3346_v39, %v3351_v33 }
0x2bf4   :  { %v3377_v44 = vsel %vm3376_vm10, %v3375_v43, %v3355_v34 }
0x2bf5   :  { %v3378_v45 = vsel %vm324_vm1, %v3377_v44, %v3359_v35 }
0x2bf6   :  { %v3379_v46 = vsel %vm2658_vm4, %v3378_v45, %v3363_v38 }
0x2bf7   :  { %v3381_v48 = vsel %vm3380_vm11, %v3379_v46, %v3366_v42 }
0x2bf8   :  { %v3383_v50 = vsel %vm3382_vm12, %v3381_v48, %v3369_v47 }
0x2bf9   :  { %v3385_v51 = vsel %vm3384_vm13, %v3383_v50, %v3372_v31 }
0x2bfa   :  { %v3387_v52 = vsel %vm3386_vm14, %v3385_v51, 0.0 }
0x2bfb   :  { %3388 = vst [vmem:[#allocation8] sm:$0xff] %v3387_v52 }
0x2bfc   :  { %4631 = shalt.err (!%p4628_p6)
}
0x2bfd   :  { %s4632_s8 = scalar_lea.hbm %s5174_s4, 128 }
0x2bfe   :  { %p4633_p7 = scmp.ne.s32.totalorder %s5174_s4, %s4632_s8  ;;  %p4636_p8 = scmp.lt.u32.totalorder %s4632_s8, %s5174_s4 }
0x2c00   :  { %p4638_p9 = pnand %p4636_p8, %p4633_p7 }
0x2c02   :  { %4641 = shalt.err (!%p4638_p9)
}
0x2c03   :  { %3398 = dma.vmem_to_hbm [thread:$0]  %s3396_s30, 128, %s5174_s4, [#allocation5]  }
0x2c04   :  { %4646 = dma.done.wait [#allocation5], 128  }
0x2c05   :  { %4647 = vsyncadd [#allocation5], 4294967168 }
0x2c06   :  { %3402 = vsyncpa [#allocation4], 1 }
0x2c07   :  { %3403 = vsyncpa [#allocation7], 1 }
0x2c08   :  { %3404 = vsyncpa [#allocation5], 1 }

</bundles_post_ra>
